<compile_context>
chip_gen: v5e
topology: v5e:2x2
jax: 0.10.0
libtpu: 0.0.40
codegen_flags: <defaults>
</compile_context>

<pallas_src>
import functools
import math

import jax
import jax.numpy as jnp
from jax.experimental import pallas as pl
from jax.experimental.pallas import tpu as pltpu

LEAKY_SLOPE = 0.2
BN_EPS = 1e-5
VMEM_LIMIT = 32 * 1024 * 1024  # safe on v5e/v6e (128 MiB) and v7x (64 MiB)


def _round_up(x, m):
    return ((x + m - 1) // m) * m


# ------------------------------ Pallas kernels -------------------------------

def _conv_tap_kernel(x_ref, w_ref, b_ref, *rest, k, wp, act, res_mode):
    """Stride-1 'same' conv as a sum of k*k lane-shifted matmuls.

    x_ref : (1, Cin, Lin)    bf16  spatially padded, flattened image (1 batch)
    w_ref : (k*k, Cout, Cin) bf16  BN-folded weights, tap-major
    b_ref : (Cout, 1)        f32   BN-folded bias / conv bias
    rest  : [xres_ref[, wexp_ref]], o_ref   (depends on res_mode)
    o_ref : (1, Cout, Lout)  Lout = H * wp rows of the flattened output
    """
    if res_mode == "none":
        (o_ref,) = rest
        xres_ref = wexp_ref = None
    elif res_mode == "add":
        xres_ref, o_ref = rest
        wexp_ref = None
    else:  # "matmul": identity path is a fused 1x1 conv (conv_expand)
        xres_ref, wexp_ref, o_ref = rest

    cout, lout = o_ref.shape[1], o_ref.shape[2]
    x = x_ref[0]  # (Cin, Lin) bf16

    acc = jnp.zeros((cout, lout), jnp.float32)
    t = 0
    for dy in range(k):
        for dx in range(k):
            off = dy * wp + dx
            acc = acc + jnp.dot(w_ref[t], x[:, off:off + lout],
                                preferred_element_type=jnp.float32)
            t += 1

    acc = acc + b_ref[...]                         # folded BN shift / bias
    if res_mode == "add":
        acc = acc + xres_ref[0].astype(jnp.float32)
    elif res_mode == "matmul":
        acc = acc + jnp.dot(wexp_ref[...], xres_ref[0],
                            preferred_element_type=jnp.float32)

    if act == "leaky":
        acc = jnp.where(acc >= 0, acc, LEAKY_SLOPE * acc)
    elif act == "relu":
        acc = jnp.maximum(acc, 0.0)
    o_ref[0] = acc.astype(o_ref.dtype)


def _fc_kernel(z_ref, w_ref, b_ref, o_ref):
    acc = jnp.dot(z_ref[...], w_ref[...], preferred_element_type=jnp.float32)
    acc = jnp.maximum(acc + b_ref[...], 0.0)       # Linear + ReLU
    o_ref[...] = acc.astype(o_ref.dtype)


# ------------------------------- wrappers -------------------------------------

def conv2d_nchw(x, w_taps, bias, *, k, pad, act="none",
                res=None, res_w=None, out_dtype=jnp.bfloat16):
    """x: (B, Cin, H, W) -> (B, Cout, H, W). Conv is stride 1, 'same' padding."""
    B, cin, H, W = x.shape
    kk, cout, cin_w = w_taps.shape
    assert kk == k * k and cin_w == cin
    wp = W + 2 * pad
    lout = H * wp
    # One extra bottom row keeps every tap slice in-bounds for the (discarded)
    # right-edge garbage columns of the flattened formulation.
    lin = (H + 2 * pad + 1) * wp
    xp = jnp.pad(x.astype(jnp.bfloat16),
                 ((0, 0), (0, 0), (pad, pad + 1), (pad, pad))).reshape(B, cin, lin)

    inputs = [xp, w_taps, bias]
    in_specs = [
        pl.BlockSpec((1, cin, lin), lambda i: (i, 0, 0)),
        pl.BlockSpec((kk, cout, cin), lambda i: (0, 0, 0)),
        pl.BlockSpec((cout, 1), lambda i: (0, 0)),
    ]
    res_mode = "none"
    if res is not None:
        cres = res.shape[1]
        resf = jnp.pad(res.astype(jnp.bfloat16),
                       ((0, 0), (0, 0), (0, 0), (0, 2 * pad))).reshape(B, cres, lout)
        inputs.append(resf)
        in_specs.append(pl.BlockSpec((1, cres, lout), lambda i: (i, 0, 0)))
        if res_w is not None:
            assert res_w.shape == (cout, cres)
            inputs.append(res_w)
            in_specs.append(pl.BlockSpec((cout, cres), lambda i: (0, 0)))
            res_mode = "matmul"
        else:
            assert cres == cout
            res_mode = "add"

    kernel = functools.partial(_conv_tap_kernel, k=k, wp=wp, act=act,
                               res_mode=res_mode)
    out = pl.pallas_call(
        kernel,
        out_shape=jax.ShapeDtypeStruct((B, cout, lout), out_dtype),
        grid=(B,),
        in_specs=in_specs,
        out_specs=pl.BlockSpec((1, cout, lout), lambda i: (i, 0, 0)),
        compiler_params=pltpu.CompilerParams(
            dimension_semantics=("parallel",),
            vmem_limit_bytes=VMEM_LIMIT,
        ),
    )(*inputs)
    # Drop the garbage right-edge columns of the flattened output.
    return out.reshape(B, cout, H, wp)[:, :, :, :W]


def fc_relu(z, w, b):
    B, K = z.shape
    N = w.shape[1]
    return pl.pallas_call(
        _fc_kernel,
        out_shape=jax.ShapeDtypeStruct((B, N), jnp.bfloat16),
        grid=(1,),
        in_specs=[pl.BlockSpec((B, K), lambda i: (0, 0)),
                  pl.BlockSpec((K, N), lambda i: (0, 0)),
                  pl.BlockSpec((1, N), lambda i: (0, 0))],
        out_specs=pl.BlockSpec((B, N), lambda i: (0, 0)),
        compiler_params=pltpu.CompilerParams(
            dimension_semantics=("arbitrary",),
            vmem_limit_bytes=VMEM_LIMIT,
        ),
    )(z.astype(jnp.bfloat16), w, b)


# ------------------------------ model pieces ----------------------------------

def residual_block_forward(x, p):
    # conv1 -> bn1 -> leaky  (BN folded into w1/b1)
    h = conv2d_nchw(x, p["w1"], p["b1"], k=3, pad=1, act="leaky")
    # conv2 -> bn2 -> (+ identity [via fused 1x1 conv_expand or plain add]) -> leaky
    return conv2d_nchw(h, p["w2"], p["b2"], k=3, pad=1, act="leaky",
                       res=x, res_w=p["w_expand"])


def decoder_forward(params, z, y_cond=None):
    B = z.shape[0]
    z = z.reshape(B, -1)
    if params["conditional"] and y_cond is not None:
        z = jnp.concatenate([z, y_cond.reshape(B, -1)], axis=1)

    y = fc_relu(z, params["fc_w"], params["fc_b"])       # (B, num_fc) bf16
    C0, H0, W0 = params["conv_input_size"]
    y = y.reshape(B, C0, H0, W0)                         # torch .view -> NCHW

    for blk in params["blocks"]:
        y = residual_block_forward(y, blk)
        if blk["upsample"]:
            # TODO(synk): fuse the nearest 2x upsample into the consuming conv.
            y = jnp.repeat(jnp.repeat(y, 2, axis=2), 2, axis=3)

    out = conv2d_nchw(y, params["predict_w"], params["predict_b"],
                      k=5, pad=2, act="none", out_dtype=jnp.float32)
    return out[:, :params["cdim"]]                       # drop channel padding


# ------------------------------- param init -----------------------------------

def _conv_w_torch(key, cout, cin, k):
    return jax.random.normal(key, (cout, cin, k, k), jnp.float32) * 0.05


def _torch_conv_to_taps(w):
    """torch (Cout, Cin, kh, kw) -> (kh*kw, Cout, Cin), tap-major."""
    cout, cin, kh, kw = w.shape
    return jnp.transpose(w, (2, 3, 0, 1)).reshape(kh * kw, cout, cin)


def _bn_params(c):
    return dict(gamma=jnp.ones((c,)), beta=jnp.zeros((c,)),
                mean=jnp.zeros((c,)), var=jnp.ones((c,)))


def _fold_bn(w_taps, bn):
    s = bn["gamma"] / jnp.sqrt(bn["var"] + BN_EPS)               # (Cout,)
    w = (w_taps * s[None, :, None]).astype(jnp.bfloat16)
    b = (bn["beta"] - bn["mean"] * s).reshape(-1, 1).astype(jnp.float32)
    return w, b


def _init_block(key, inc, outc, upsample):
    k1, k2, k3 = jax.random.split(key, 3)
    midc = outc  # scale = 1.0
    w1, b1 = _fold_bn(_torch_conv_to_taps(_conv_w_torch(k1, midc, inc, 3)),
                      _bn_params(midc))
    w2, b2 = _fold_bn(_torch_conv_to_taps(_conv_w_torch(k2, outc, midc, 3)),
                      _bn_params(outc))
    w_expand = None
    if inc != outc:
        w_expand = (_conv_w_torch(k3, outc, inc, 1)
                    .reshape(outc, inc).astype(jnp.bfloat16))
    return dict(w1=w1, b1=b1, w2=w2, b2=b2, w_expand=w_expand, upsample=upsample)


def init_decoder_params(key, cdim, zdim, channels, conv_input_size,
                        conditional=False, cond_dim=10):
    num_fc = int(math.prod(conv_input_size))
    in_dim = zdim + cond_dim if conditional else zdim
    n_blocks = len(channels) + 1
    keys = jax.random.split(key, 3 + n_blocks)

    params = dict(conditional=conditional, conv_input_size=conv_input_size,
                  cdim=cdim)
    params["fc_w"] = (jax.random.normal(keys[0], (in_dim, num_fc), jnp.float32)
                      * 0.05).astype(jnp.bfloat16)
    params["fc_b"] = (jax.random.normal(keys[1], (num_fc,), jnp.float32)
                      * 0.05).reshape(1, num_fc).astype(jnp.float32)

    blocks = []
    cc = channels[-1]
    ki = 3
    for ch in channels[::-1]:
        blocks.append(_init_block(keys[ki], cc, ch, upsample=True))
        cc = ch
        ki += 1
    blocks.append(_init_block(keys[ki], cc, cc, upsample=False))
    params["blocks"] = blocks

    # predict conv (5x5, with bias, no BN); pad Cout up to a sublane multiple.
    cout_p = _round_up(cdim, 8)
    w = _torch_conv_to_taps(_conv_w_torch(keys[2], cdim, cc, 5))   # (25, cdim, cc)
    params["predict_w"] = jnp.pad(
        w, ((0, 0), (0, cout_p - cdim), (0, 0))).astype(jnp.bfloat16)
    params["predict_b"] = jnp.zeros((cout_p, 1), jnp.float32)
    return params


# ----------------------------------- main --------------------------------------

if __name__ == "__main__":
    key = jax.random.PRNGKey(0)
    pkey, zkey = jax.random.split(key)

    # Small configuration consistent with the module:
    # channels=(8,16) -> starts at 4x4, two upsamples -> 16x16 output.
    cdim, zdim, channels = 3, 32, (8, 16)
    conv_input_size = (channels[-1], 4, 4)

    params = init_decoder_params(pkey, cdim, zdim, channels, conv_input_size)
    z = jax.random.normal(zkey, (2, zdim), jnp.float32)

    fwd = jax.jit(lambda zz: decoder_forward(params, zz))
    out = jax.block_until_ready(fwd(z))
    assert out.shape == (2, cdim, 16, 16), out.shape
    assert bool(jnp.all(jnp.isfinite(out)))
    print("KERNEL_OK")
</pallas_src>

<mosaic_0001>
module attributes {stable_mosaic.version = 11 : i64} {
  func.func @_fc_kernel(%arg0: i32, %arg1: memref<2x32xbf16, #tpu.memory_space<vmem>>, %arg2: memref<32x256xbf16, #tpu.memory_space<vmem>>, %arg3: memref<1x256xf32, #tpu.memory_space<vmem>>, %arg4: memref<2x256xbf16, #tpu.memory_space<vmem>>) attributes {dimension_semantics = [#tpu.dimension_semantics<arbitrary>], iteration_bounds = array<i64: 1>, scalar_prefetch = 0 : i64, scratch_operands = 0 : i64, tpu.core_type = #tpu.core_type<tc>, window_params = [{pipeline_mode = #tpu.pipeline_mode<synchronous>, transform_indices = @transform_0, window_bounds = array<i64: 2, 32>}, {pipeline_mode = #tpu.pipeline_mode<synchronous>, transform_indices = @transform_1, window_bounds = array<i64: 32, 256>}, {pipeline_mode = #tpu.pipeline_mode<synchronous>, transform_indices = @transform_2, window_bounds = array<i64: 1, 256>}, {pipeline_mode = #tpu.pipeline_mode<synchronous>, transform_indices = @transform_3, window_bounds = array<i64: 2, 256>}]} {
    %c0 = arith.constant 0 : index
    %c0_0 = arith.constant 0 : index
    %0 = vector.load %arg1[%c0, %c0_0] : memref<2x32xbf16, #tpu.memory_space<vmem>>, vector<2x32xbf16>
    %c0_1 = arith.constant 0 : index
    %c0_2 = arith.constant 0 : index
    %1 = vector.load %arg2[%c0_1, %c0_2] : memref<32x256xbf16, #tpu.memory_space<vmem>>, vector<32x256xbf16>
    %cst = arith.constant dense<0.000000e+00> : vector<2x256xf32>
    %2 = tpu.matmul %0, %1, %cst {dimension_numbers = #tpu.dot_dimension_numbers<[1], [0], [0], [1], [0, 0, 1, 1], [], []>} : vector<2x32xbf16>, vector<32x256xbf16>, vector<2x256xf32> -> vector<2x256xf32>
    %c0_3 = arith.constant 0 : index
    %c0_4 = arith.constant 0 : index
    %3 = vector.load %arg3[%c0_3, %c0_4] : memref<1x256xf32, #tpu.memory_space<vmem>>, vector<1x256xf32>
    %4 = vector.broadcast %3 : vector<1x256xf32> to vector<2x256xf32>
    %5 = arith.addf %2, %4 : vector<2x256xf32>
    %cst_5 = arith.constant 0.000000e+00 : f32
    %6 = vector.broadcast %cst_5 : f32 to vector<2x256xf32>
    %7 = arith.maximumf %5, %6 : vector<2x256xf32>
    %8 = arith.truncf %7 : vector<2x256xf32> to vector<2x256xbf16>
    %c0_6 = arith.constant 0 : index
    %c0_7 = arith.constant 0 : index
    %9 = vector.load %arg4[%c0_6, %c0_7] : memref<2x256xbf16, #tpu.memory_space<vmem>>, vector<2x256xbf16>
    tpu.vector_store %arg4[%c0_6, %c0_7], %8 {strides = array<i32>} : memref<2x256xbf16, #tpu.memory_space<vmem>>, vector<2x256xbf16>,
    return
  }
  func.func @transform_0(%arg0: i32) -> (i32, i32) {
    %c0_i32 = arith.constant 0 : i32
    %c0_i32_0 = arith.constant 0 : i32
    %c0_i32_1 = arith.constant 0 : i32
    return %c0_i32, %c0_i32_0 : i32, i32
  }
  func.func @transform_1(%arg0: i32) -> (i32, i32) {
    %c0_i32 = arith.constant 0 : i32
    %c0_i32_0 = arith.constant 0 : i32
    %c0_i32_1 = arith.constant 0 : i32
    return %c0_i32, %c0_i32_0 : i32, i32
  }
  func.func @transform_2(%arg0: i32) -> (i32, i32) {
    %c0_i32 = arith.constant 0 : i32
    %c0_i32_0 = arith.constant 0 : i32
    %c0_i32_1 = arith.constant 0 : i32
    return %c0_i32, %c0_i32_0 : i32, i32
  }
  func.func @transform_3(%arg0: i32) -> (i32, i32) {
    %c0_i32 = arith.constant 0 : i32
    %c0_i32_0 = arith.constant 0 : i32
    %c0_i32_1 = arith.constant 0 : i32
    return %c0_i32, %c0_i32_0 : i32, i32
  }
}

module attributes {stable_mosaic.version = 11 : i64} {
  func.func @_conv_tap_kernel(%arg0: i32, %arg1: memref<1x16x42xbf16, #tpu.memory_space<vmem>>, %arg2: memref<9x16x16xbf16, #tpu.memory_space<vmem>>, %arg3: memref<16x1xf32, #tpu.memory_space<vmem>>, %arg4: memref<1x16x24xbf16, #tpu.memory_space<vmem>>) attributes {dimension_semantics = [#tpu.dimension_semantics<parallel>], iteration_bounds = array<i64: 2>, scalar_prefetch = 0 : i64, scratch_operands = 0 : i64, tpu.core_type = #tpu.core_type<tc>, window_params = [{transform_indices = @transform_0, window_bounds = array<i64: 1, 16, 42>}, {pipeline_mode = #tpu.pipeline_mode<synchronous>, transform_indices = @transform_1, window_bounds = array<i64: 9, 16, 16>}, {pipeline_mode = #tpu.pipeline_mode<synchronous>, transform_indices = @transform_2, window_bounds = array<i64: 16, 1>}, {transform_indices = @transform_3, window_bounds = array<i64: 1, 16, 24>}]} {
    %c0 = arith.constant 0 : index
    %c0_0 = arith.constant 0 : index
    %c0_1 = arith.constant 0 : index
    %0 = vector.load %arg1[%c0, %c0_0, %c0_1] : memref<1x16x42xbf16, #tpu.memory_space<vmem>>, vector<1x16x42xbf16>
    %1 = vector.shape_cast %0 : vector<1x16x42xbf16> to vector<16x42xbf16>
    %cst = arith.constant 0.000000e+00 : f32
    %2 = vector.broadcast %cst : f32 to vector<16x24xf32>
    %c0_2 = arith.constant 0 : index
    %c0_3 = arith.constant 0 : index
    %c0_4 = arith.constant 0 : index
    %3 = vector.load %arg2[%c0_2, %c0_3, %c0_4] : memref<9x16x16xbf16, #tpu.memory_space<vmem>>, vector<1x16x16xbf16>
    %4 = vector.shape_cast %3 : vector<1x16x16xbf16> to vector<16x16xbf16>
    %5 = vector.extract_strided_slice %1 {offsets = [0, 0], sizes = [16, 24], strides = [1, 1]} : vector<16x42xbf16> to vector<16x24xbf16>
    %cst_5 = arith.constant dense<0.000000e+00> : vector<16x24xf32>
    %6 = tpu.matmul %4, %5, %cst_5 {dimension_numbers = #tpu.dot_dimension_numbers<[1], [0], [0], [1], [0, 0, 1, 1], [], []>} : vector<16x16xbf16>, vector<16x24xbf16>, vector<16x24xf32> -> vector<16x24xf32>
    %7 = arith.addf %2, %6 : vector<16x24xf32>
    %c1 = arith.constant 1 : index
    %c0_6 = arith.constant 0 : index
    %c0_7 = arith.constant 0 : index
    %8 = vector.load %arg2[%c1, %c0_6, %c0_7] : memref<9x16x16xbf16, #tpu.memory_space<vmem>>, vector<1x16x16xbf16>
    %9 = vector.shape_cast %8 : vector<1x16x16xbf16> to vector<16x16xbf16>
    %10 = vector.extract_strided_slice %1 {offsets = [0, 1], sizes = [16, 24], strides = [1, 1]} : vector<16x42xbf16> to vector<16x24xbf16>
    %cst_8 = arith.constant dense<0.000000e+00> : vector<16x24xf32>
    %11 = tpu.matmul %9, %10, %cst_8 {dimension_numbers = #tpu.dot_dimension_numbers<[1], [0], [0], [1], [0, 0, 1, 1], [], []>} : vector<16x16xbf16>, vector<16x24xbf16>, vector<16x24xf32> -> vector<16x24xf32>
    %12 = arith.addf %7, %11 : vector<16x24xf32>
    %c2 = arith.constant 2 : index
    %c0_9 = arith.constant 0 : index
    %c0_10 = arith.constant 0 : index
    %13 = vector.load %arg2[%c2, %c0_9, %c0_10] : memref<9x16x16xbf16, #tpu.memory_space<vmem>>, vector<1x16x16xbf16>
    %14 = vector.shape_cast %13 : vector<1x16x16xbf16> to vector<16x16xbf16>
    %15 = vector.extract_strided_slice %1 {offsets = [0, 2], sizes = [16, 24], strides = [1, 1]} : vector<16x42xbf16> to vector<16x24xbf16>
    %cst_11 = arith.constant dense<0.000000e+00> : vector<16x24xf32>
    %16 = tpu.matmul %14, %15, %cst_11 {dimension_numbers = #tpu.dot_dimension_numbers<[1], [0], [0], [1], [0, 0, 1, 1], [], []>} : vector<16x16xbf16>, vector<16x24xbf16>, vector<16x24xf32> -> vector<16x24xf32>
    %17 = arith.addf %12, %16 : vector<16x24xf32>
    %c3 = arith.constant 3 : index
    %c0_12 = arith.constant 0 : index
    %c0_13 = arith.constant 0 : index
    %18 = vector.load %arg2[%c3, %c0_12, %c0_13] : memref<9x16x16xbf16, #tpu.memory_space<vmem>>, vector<1x16x16xbf16>
    %19 = vector.shape_cast %18 : vector<1x16x16xbf16> to vector<16x16xbf16>
    %20 = vector.extract_strided_slice %1 {offsets = [0, 6], sizes = [16, 24], strides = [1, 1]} : vector<16x42xbf16> to vector<16x24xbf16>
    %cst_14 = arith.constant dense<0.000000e+00> : vector<16x24xf32>
    %21 = tpu.matmul %19, %20, %cst_14 {dimension_numbers = #tpu.dot_dimension_numbers<[1], [0], [0], [1], [0, 0, 1, 1], [], []>} : vector<16x16xbf16>, vector<16x24xbf16>, vector<16x24xf32> -> vector<16x24xf32>
    %22 = arith.addf %17, %21 : vector<16x24xf32>
    %c4 = arith.constant 4 : index
    %c0_15 = arith.constant 0 : index
    %c0_16 = arith.constant 0 : index
    %23 = vector.load %arg2[%c4, %c0_15, %c0_16] : memref<9x16x16xbf16, #tpu.memory_space<vmem>>, vector<1x16x16xbf16>
    %24 = vector.shape_cast %23 : vector<1x16x16xbf16> to vector<16x16xbf16>
    %25 = vector.extract_strided_slice %1 {offsets = [0, 7], sizes = [16, 24], strides = [1, 1]} : vector<16x42xbf16> to vector<16x24xbf16>
    %cst_17 = arith.constant dense<0.000000e+00> : vector<16x24xf32>
    %26 = tpu.matmul %24, %25, %cst_17 {dimension_numbers = #tpu.dot_dimension_numbers<[1], [0], [0], [1], [0, 0, 1, 1], [], []>} : vector<16x16xbf16>, vector<16x24xbf16>, vector<16x24xf32> -> vector<16x24xf32>
    %27 = arith.addf %22, %26 : vector<16x24xf32>
    %c5 = arith.constant 5 : index
    %c0_18 = arith.constant 0 : index
    %c0_19 = arith.constant 0 : index
    %28 = vector.load %arg2[%c5, %c0_18, %c0_19] : memref<9x16x16xbf16, #tpu.memory_space<vmem>>, vector<1x16x16xbf16>
    %29 = vector.shape_cast %28 : vector<1x16x16xbf16> to vector<16x16xbf16>
    %30 = vector.extract_strided_slice %1 {offsets = [0, 8], sizes = [16, 24], strides = [1, 1]} : vector<16x42xbf16> to vector<16x24xbf16>
    %cst_20 = arith.constant dense<0.000000e+00> : vector<16x24xf32>
    %31 = tpu.matmul %29, %30, %cst_20 {dimension_numbers = #tpu.dot_dimension_numbers<[1], [0], [0], [1], [0, 0, 1, 1], [], []>} : vector<16x16xbf16>, vector<16x24xbf16>, vector<16x24xf32> -> vector<16x24xf32>
    %32 = arith.addf %27, %31 : vector<16x24xf32>
    %c6 = arith.constant 6 : index
    %c0_21 = arith.constant 0 : index
    %c0_22 = arith.constant 0 : index
    %33 = vector.load %arg2[%c6, %c0_21, %c0_22] : memref<9x16x16xbf16, #tpu.memory_space<vmem>>, vector<1x16x16xbf16>
    %34 = vector.shape_cast %33 : vector<1x16x16xbf16> to vector<16x16xbf16>
    %35 = vector.extract_strided_slice %1 {offsets = [0, 12], sizes = [16, 24], strides = [1, 1]} : vector<16x42xbf16> to vector<16x24xbf16>
    %cst_23 = arith.constant dense<0.000000e+00> : vector<16x24xf32>
    %36 = tpu.matmul %34, %35, %cst_23 {dimension_numbers = #tpu.dot_dimension_numbers<[1], [0], [0], [1], [0, 0, 1, 1], [], []>} : vector<16x16xbf16>, vector<16x24xbf16>, vector<16x24xf32> -> vector<16x24xf32>
    %37 = arith.addf %32, %36 : vector<16x24xf32>
    %c7 = arith.constant 7 : index
    %c0_24 = arith.constant 0 : index
    %c0_25 = arith.constant 0 : index
    %38 = vector.load %arg2[%c7, %c0_24, %c0_25] : memref<9x16x16xbf16, #tpu.memory_space<vmem>>, vector<1x16x16xbf16>
    %39 = vector.shape_cast %38 : vector<1x16x16xbf16> to vector<16x16xbf16>
    %40 = vector.extract_strided_slice %1 {offsets = [0, 13], sizes = [16, 24], strides = [1, 1]} : vector<16x42xbf16> to vector<16x24xbf16>
    %cst_26 = arith.constant dense<0.000000e+00> : vector<16x24xf32>
    %41 = tpu.matmul %39, %40, %cst_26 {dimension_numbers = #tpu.dot_dimension_numbers<[1], [0], [0], [1], [0, 0, 1, 1], [], []>} : vector<16x16xbf16>, vector<16x24xbf16>, vector<16x24xf32> -> vector<16x24xf32>
    %42 = arith.addf %37, %41 : vector<16x24xf32>
    %c8 = arith.constant 8 : index
    %c0_27 = arith.constant 0 : index
    %c0_28 = arith.constant 0 : index
    %43 = vector.load %arg2[%c8, %c0_27, %c0_28] : memref<9x16x16xbf16, #tpu.memory_space<vmem>>, vector<1x16x16xbf16>
    %44 = vector.shape_cast %43 : vector<1x16x16xbf16> to vector<16x16xbf16>
    %45 = vector.extract_strided_slice %1 {offsets = [0, 14], sizes = [16, 24], strides = [1, 1]} : vector<16x42xbf16> to vector<16x24xbf16>
    %cst_29 = arith.constant dense<0.000000e+00> : vector<16x24xf32>
    %46 = tpu.matmul %44, %45, %cst_29 {dimension_numbers = #tpu.dot_dimension_numbers<[1], [0], [0], [1], [0, 0, 1, 1], [], []>} : vector<16x16xbf16>, vector<16x24xbf16>, vector<16x24xf32> -> vector<16x24xf32>
    %47 = arith.addf %42, %46 : vector<16x24xf32>
    %c0_30 = arith.constant 0 : index
    %c0_31 = arith.constant 0 : index
    %48 = vector.load %arg3[%c0_30, %c0_31] : memref<16x1xf32, #tpu.memory_space<vmem>>, vector<16x1xf32>
    %49 = vector.broadcast %48 : vector<16x1xf32> to vector<16x24xf32>
    %50 = arith.addf %47, %49 : vector<16x24xf32>
    %cst_32 = arith.constant 0.000000e+00 : f32
    %51 = vector.broadcast %cst_32 : f32 to vector<16x24xf32>
    %52 = arith.cmpf oge, %50, %51 : vector<16x24xf32>
    %cst_33 = arith.constant 2.000000e-01 : f32
    %53 = vector.broadcast %cst_33 : f32 to vector<16x24xf32>
    %54 = arith.mulf %53, %50 : vector<16x24xf32>
    %55 = arith.select %52, %50, %54 : vector<16x24xi1>, vector<16x24xf32>
    %56 = arith.truncf %55 : vector<16x24xf32> to vector<16x24xbf16>
    %c0_34 = arith.constant 0 : index
    %c0_35 = arith.constant 0 : index
    %c0_36 = arith.constant 0 : index
    %57 = vector.load %arg4[%c0_34, %c0_35, %c0_36] : memref<1x16x24xbf16, #tpu.memory_space<vmem>>, vector<1x16x24xbf16>
    %58 = vector.shape_cast %57 : vector<1x16x24xbf16> to vector<16x24xbf16>
    %59 = vector.shape_cast %56 : vector<16x24xbf16> to vector<1x16x24xbf16>
    tpu.vector_store %arg4[%c0_34, %c0_35, %c0_36], %59 {strides = array<i32>} : memref<1x16x24xbf16, #tpu.memory_space<vmem>>, vector<1x16x24xbf16>,
    return
  }
  func.func @transform_0(%arg0: i32) -> (i32, i32, i32) {
    %c0_i32 = arith.constant 0 : i32
    %c0_i32_0 = arith.constant 0 : i32
    %c0_i32_1 = arith.constant 0 : i32
    return %arg0, %c0_i32, %c0_i32_0 : i32, i32, i32
  }
  func.func @transform_1(%arg0: i32) -> (i32, i32, i32) {
    %c0_i32 = arith.constant 0 : i32
    %c0_i32_0 = arith.constant 0 : i32
    %c0_i32_1 = arith.constant 0 : i32
    %c0_i32_2 = arith.constant 0 : i32
    return %c0_i32, %c0_i32_0, %c0_i32_1 : i32, i32, i32
  }
  func.func @transform_2(%arg0: i32) -> (i32, i32) {
    %c0_i32 = arith.constant 0 : i32
    %c0_i32_0 = arith.constant 0 : i32
    %c0_i32_1 = arith.constant 0 : i32
    return %c0_i32, %c0_i32_0 : i32, i32
  }
  func.func @transform_3(%arg0: i32) -> (i32, i32, i32) {
    %c0_i32 = arith.constant 0 : i32
    %c0_i32_0 = arith.constant 0 : i32
    %c0_i32_1 = arith.constant 0 : i32
    return %arg0, %c0_i32, %c0_i32_0 : i32, i32, i32
  }
}

module attributes {stable_mosaic.version = 11 : i64} {
  func.func @_conv_tap_kernel(%arg0: i32, %arg1: memref<1x16x42xbf16, #tpu.memory_space<vmem>>, %arg2: memref<9x16x16xbf16, #tpu.memory_space<vmem>>, %arg3: memref<16x1xf32, #tpu.memory_space<vmem>>, %arg4: memref<1x16x24xbf16, #tpu.memory_space<vmem>>, %arg5: memref<1x16x24xbf16, #tpu.memory_space<vmem>>) attributes {dimension_semantics = [#tpu.dimension_semantics<parallel>], iteration_bounds = array<i64: 2>, scalar_prefetch = 0 : i64, scratch_operands = 0 : i64, tpu.core_type = #tpu.core_type<tc>, window_params = [{transform_indices = @transform_0, window_bounds = array<i64: 1, 16, 42>}, {pipeline_mode = #tpu.pipeline_mode<synchronous>, transform_indices = @transform_1, window_bounds = array<i64: 9, 16, 16>}, {pipeline_mode = #tpu.pipeline_mode<synchronous>, transform_indices = @transform_2, window_bounds = array<i64: 16, 1>}, {transform_indices = @transform_3, window_bounds = array<i64: 1, 16, 24>}, {transform_indices = @transform_4, window_bounds = array<i64: 1, 16, 24>}]} {
    %c0 = arith.constant 0 : index
    %c0_0 = arith.constant 0 : index
    %c0_1 = arith.constant 0 : index
    %0 = vector.load %arg1[%c0, %c0_0, %c0_1] : memref<1x16x42xbf16, #tpu.memory_space<vmem>>, vector<1x16x42xbf16>
    %1 = vector.shape_cast %0 : vector<1x16x42xbf16> to vector<16x42xbf16>
    %cst = arith.constant 0.000000e+00 : f32
    %2 = vector.broadcast %cst : f32 to vector<16x24xf32>
    %c0_2 = arith.constant 0 : index
    %c0_3 = arith.constant 0 : index
    %c0_4 = arith.constant 0 : index
    %3 = vector.load %arg2[%c0_2, %c0_3, %c0_4] : memref<9x16x16xbf16, #tpu.memory_space<vmem>>, vector<1x16x16xbf16>
    %4 = vector.shape_cast %3 : vector<1x16x16xbf16> to vector<16x16xbf16>
    %5 = vector.extract_strided_slice %1 {offsets = [0, 0], sizes = [16, 24], strides = [1, 1]} : vector<16x42xbf16> to vector<16x24xbf16>
    %cst_5 = arith.constant dense<0.000000e+00> : vector<16x24xf32>
    %6 = tpu.matmul %4, %5, %cst_5 {dimension_numbers = #tpu.dot_dimension_numbers<[1], [0], [0], [1], [0, 0, 1, 1], [], []>} : vector<16x16xbf16>, vector<16x24xbf16>, vector<16x24xf32> -> vector<16x24xf32>
    %7 = arith.addf %2, %6 : vector<16x24xf32>
    %c1 = arith.constant 1 : index
    %c0_6 = arith.constant 0 : index
    %c0_7 = arith.constant 0 : index
    %8 = vector.load %arg2[%c1, %c0_6, %c0_7] : memref<9x16x16xbf16, #tpu.memory_space<vmem>>, vector<1x16x16xbf16>
    %9 = vector.shape_cast %8 : vector<1x16x16xbf16> to vector<16x16xbf16>
    %10 = vector.extract_strided_slice %1 {offsets = [0, 1], sizes = [16, 24], strides = [1, 1]} : vector<16x42xbf16> to vector<16x24xbf16>
    %cst_8 = arith.constant dense<0.000000e+00> : vector<16x24xf32>
    %11 = tpu.matmul %9, %10, %cst_8 {dimension_numbers = #tpu.dot_dimension_numbers<[1], [0], [0], [1], [0, 0, 1, 1], [], []>} : vector<16x16xbf16>, vector<16x24xbf16>, vector<16x24xf32> -> vector<16x24xf32>
    %12 = arith.addf %7, %11 : vector<16x24xf32>
    %c2 = arith.constant 2 : index
    %c0_9 = arith.constant 0 : index
    %c0_10 = arith.constant 0 : index
    %13 = vector.load %arg2[%c2, %c0_9, %c0_10] : memref<9x16x16xbf16, #tpu.memory_space<vmem>>, vector<1x16x16xbf16>
    %14 = vector.shape_cast %13 : vector<1x16x16xbf16> to vector<16x16xbf16>
    %15 = vector.extract_strided_slice %1 {offsets = [0, 2], sizes = [16, 24], strides = [1, 1]} : vector<16x42xbf16> to vector<16x24xbf16>
    %cst_11 = arith.constant dense<0.000000e+00> : vector<16x24xf32>
    %16 = tpu.matmul %14, %15, %cst_11 {dimension_numbers = #tpu.dot_dimension_numbers<[1], [0], [0], [1], [0, 0, 1, 1], [], []>} : vector<16x16xbf16>, vector<16x24xbf16>, vector<16x24xf32> -> vector<16x24xf32>
    %17 = arith.addf %12, %16 : vector<16x24xf32>
    %c3 = arith.constant 3 : index
    %c0_12 = arith.constant 0 : index
    %c0_13 = arith.constant 0 : index
    %18 = vector.load %arg2[%c3, %c0_12, %c0_13] : memref<9x16x16xbf16, #tpu.memory_space<vmem>>, vector<1x16x16xbf16>
    %19 = vector.shape_cast %18 : vector<1x16x16xbf16> to vector<16x16xbf16>
    %20 = vector.extract_strided_slice %1 {offsets = [0, 6], sizes = [16, 24], strides = [1, 1]} : vector<16x42xbf16> to vector<16x24xbf16>
    %cst_14 = arith.constant dense<0.000000e+00> : vector<16x24xf32>
    %21 = tpu.matmul %19, %20, %cst_14 {dimension_numbers = #tpu.dot_dimension_numbers<[1], [0], [0], [1], [0, 0, 1, 1], [], []>} : vector<16x16xbf16>, vector<16x24xbf16>, vector<16x24xf32> -> vector<16x24xf32>
    %22 = arith.addf %17, %21 : vector<16x24xf32>
    %c4 = arith.constant 4 : index
    %c0_15 = arith.constant 0 : index
    %c0_16 = arith.constant 0 : index
    %23 = vector.load %arg2[%c4, %c0_15, %c0_16] : memref<9x16x16xbf16, #tpu.memory_space<vmem>>, vector<1x16x16xbf16>
    %24 = vector.shape_cast %23 : vector<1x16x16xbf16> to vector<16x16xbf16>
    %25 = vector.extract_strided_slice %1 {offsets = [0, 7], sizes = [16, 24], strides = [1, 1]} : vector<16x42xbf16> to vector<16x24xbf16>
    %cst_17 = arith.constant dense<0.000000e+00> : vector<16x24xf32>
    %26 = tpu.matmul %24, %25, %cst_17 {dimension_numbers = #tpu.dot_dimension_numbers<[1], [0], [0], [1], [0, 0, 1, 1], [], []>} : vector<16x16xbf16>, vector<16x24xbf16>, vector<16x24xf32> -> vector<16x24xf32>
    %27 = arith.addf %22, %26 : vector<16x24xf32>
    %c5 = arith.constant 5 : index
    %c0_18 = arith.constant 0 : index
    %c0_19 = arith.constant 0 : index
    %28 = vector.load %arg2[%c5, %c0_18, %c0_19] : memref<9x16x16xbf16, #tpu.memory_space<vmem>>, vector<1x16x16xbf16>
    %29 = vector.shape_cast %28 : vector<1x16x16xbf16> to vector<16x16xbf16>
    %30 = vector.extract_strided_slice %1 {offsets = [0, 8], sizes = [16, 24], strides = [1, 1]} : vector<16x42xbf16> to vector<16x24xbf16>
    %cst_20 = arith.constant dense<0.000000e+00> : vector<16x24xf32>
    %31 = tpu.matmul %29, %30, %cst_20 {dimension_numbers = #tpu.dot_dimension_numbers<[1], [0], [0], [1], [0, 0, 1, 1], [], []>} : vector<16x16xbf16>, vector<16x24xbf16>, vector<16x24xf32> -> vector<16x24xf32>
    %32 = arith.addf %27, %31 : vector<16x24xf32>
    %c6 = arith.constant 6 : index
    %c0_21 = arith.constant 0 : index
    %c0_22 = arith.constant 0 : index
    %33 = vector.load %arg2[%c6, %c0_21, %c0_22] : memref<9x16x16xbf16, #tpu.memory_space<vmem>>, vector<1x16x16xbf16>
    %34 = vector.shape_cast %33 : vector<1x16x16xbf16> to vector<16x16xbf16>
    %35 = vector.extract_strided_slice %1 {offsets = [0, 12], sizes = [16, 24], strides = [1, 1]} : vector<16x42xbf16> to vector<16x24xbf16>
    %cst_23 = arith.constant dense<0.000000e+00> : vector<16x24xf32>
    %36 = tpu.matmul %34, %35, %cst_23 {dimension_numbers = #tpu.dot_dimension_numbers<[1], [0], [0], [1], [0, 0, 1, 1], [], []>} : vector<16x16xbf16>, vector<16x24xbf16>, vector<16x24xf32> -> vector<16x24xf32>
    %37 = arith.addf %32, %36 : vector<16x24xf32>
    %c7 = arith.constant 7 : index
    %c0_24 = arith.constant 0 : index
    %c0_25 = arith.constant 0 : index
    %38 = vector.load %arg2[%c7, %c0_24, %c0_25] : memref<9x16x16xbf16, #tpu.memory_space<vmem>>, vector<1x16x16xbf16>
    %39 = vector.shape_cast %38 : vector<1x16x16xbf16> to vector<16x16xbf16>
    %40 = vector.extract_strided_slice %1 {offsets = [0, 13], sizes = [16, 24], strides = [1, 1]} : vector<16x42xbf16> to vector<16x24xbf16>
    %cst_26 = arith.constant dense<0.000000e+00> : vector<16x24xf32>
    %41 = tpu.matmul %39, %40, %cst_26 {dimension_numbers = #tpu.dot_dimension_numbers<[1], [0], [0], [1], [0, 0, 1, 1], [], []>} : vector<16x16xbf16>, vector<16x24xbf16>, vector<16x24xf32> -> vector<16x24xf32>
    %42 = arith.addf %37, %41 : vector<16x24xf32>
    %c8 = arith.constant 8 : index
    %c0_27 = arith.constant 0 : index
    %c0_28 = arith.constant 0 : index
    %43 = vector.load %arg2[%c8, %c0_27, %c0_28] : memref<9x16x16xbf16, #tpu.memory_space<vmem>>, vector<1x16x16xbf16>
    %44 = vector.shape_cast %43 : vector<1x16x16xbf16> to vector<16x16xbf16>
    %45 = vector.extract_strided_slice %1 {offsets = [0, 14], sizes = [16, 24], strides = [1, 1]} : vector<16x42xbf16> to vector<16x24xbf16>
    %cst_29 = arith.constant dense<0.000000e+00> : vector<16x24xf32>
    %46 = tpu.matmul %44, %45, %cst_29 {dimension_numbers = #tpu.dot_dimension_numbers<[1], [0], [0], [1], [0, 0, 1, 1], [], []>} : vector<16x16xbf16>, vector<16x24xbf16>, vector<16x24xf32> -> vector<16x24xf32>
    %47 = arith.addf %42, %46 : vector<16x24xf32>
    %c0_30 = arith.constant 0 : index
    %c0_31 = arith.constant 0 : index
    %48 = vector.load %arg3[%c0_30, %c0_31] : memref<16x1xf32, #tpu.memory_space<vmem>>, vector<16x1xf32>
    %49 = vector.broadcast %48 : vector<16x1xf32> to vector<16x24xf32>
    %50 = arith.addf %47, %49 : vector<16x24xf32>
    %c0_32 = arith.constant 0 : index
    %c0_33 = arith.constant 0 : index
    %c0_34 = arith.constant 0 : index
    %51 = vector.load %arg4[%c0_32, %c0_33, %c0_34] : memref<1x16x24xbf16, #tpu.memory_space<vmem>>, vector<1x16x24xbf16>
    %52 = vector.shape_cast %51 : vector<1x16x24xbf16> to vector<16x24xbf16>
    %53 = arith.extf %52 : vector<16x24xbf16> to vector<16x24xf32>
    %54 = arith.addf %50, %53 : vector<16x24xf32>
    %cst_35 = arith.constant 0.000000e+00 : f32
    %55 = vector.broadcast %cst_35 : f32 to vector<16x24xf32>
    %56 = arith.cmpf oge, %54, %55 : vector<16x24xf32>
    %cst_36 = arith.constant 2.000000e-01 : f32
    %57 = vector.broadcast %cst_36 : f32 to vector<16x24xf32>
    %58 = arith.mulf %57, %54 : vector<16x24xf32>
    %59 = arith.select %56, %54, %58 : vector<16x24xi1>, vector<16x24xf32>
    %60 = arith.truncf %59 : vector<16x24xf32> to vector<16x24xbf16>
    %c0_37 = arith.constant 0 : index
    %c0_38 = arith.constant 0 : index
    %c0_39 = arith.constant 0 : index
    %61 = vector.load %arg5[%c0_37, %c0_38, %c0_39] : memref<1x16x24xbf16, #tpu.memory_space<vmem>>, vector<1x16x24xbf16>
    %62 = vector.shape_cast %61 : vector<1x16x24xbf16> to vector<16x24xbf16>
    %63 = vector.shape_cast %60 : vector<16x24xbf16> to vector<1x16x24xbf16>
    tpu.vector_store %arg5[%c0_37, %c0_38, %c0_39], %63 {strides = array<i32>} : memref<1x16x24xbf16, #tpu.memory_space<vmem>>, vector<1x16x24xbf16>,
    return
  }
  func.func @transform_0(%arg0: i32) -> (i32, i32, i32) {
    %c0_i32 = arith.constant 0 : i32
    %c0_i32_0 = arith.constant 0 : i32
    %c0_i32_1 = arith.constant 0 : i32
    return %arg0, %c0_i32, %c0_i32_0 : i32, i32, i32
  }
  func.func @transform_1(%arg0: i32) -> (i32, i32, i32) {
    %c0_i32 = arith.constant 0 : i32
    %c0_i32_0 = arith.constant 0 : i32
    %c0_i32_1 = arith.constant 0 : i32
    %c0_i32_2 = arith.constant 0 : i32
    return %c0_i32, %c0_i32_0, %c0_i32_1 : i32, i32, i32
  }
  func.func @transform_2(%arg0: i32) -> (i32, i32) {
    %c0_i32 = arith.constant 0 : i32
    %c0_i32_0 = arith.constant 0 : i32
    %c0_i32_1 = arith.constant 0 : i32
    return %c0_i32, %c0_i32_0 : i32, i32
  }
  func.func @transform_3(%arg0: i32) -> (i32, i32, i32) {
    %c0_i32 = arith.constant 0 : i32
    %c0_i32_0 = arith.constant 0 : i32
    %c0_i32_1 = arith.constant 0 : i32
    return %arg0, %c0_i32, %c0_i32_0 : i32, i32, i32
  }
  func.func @transform_4(%arg0: i32) -> (i32, i32, i32) {
    %c0_i32 = arith.constant 0 : i32
    %c0_i32_0 = arith.constant 0 : i32
    %c0_i32_1 = arith.constant 0 : i32
    return %arg0, %c0_i32, %c0_i32_0 : i32, i32, i32
  }
}

module attributes {stable_mosaic.version = 11 : i64} {
  func.func @_conv_tap_kernel(%arg0: i32, %arg1: memref<1x16x110xbf16, #tpu.memory_space<vmem>>, %arg2: memref<9x8x16xbf16, #tpu.memory_space<vmem>>, %arg3: memref<8x1xf32, #tpu.memory_space<vmem>>, %arg4: memref<1x8x80xbf16, #tpu.memory_space<vmem>>) attributes {dimension_semantics = [#tpu.dimension_semantics<parallel>], iteration_bounds = array<i64: 2>, scalar_prefetch = 0 : i64, scratch_operands = 0 : i64, tpu.core_type = #tpu.core_type<tc>, window_params = [{transform_indices = @transform_0, window_bounds = array<i64: 1, 16, 110>}, {pipeline_mode = #tpu.pipeline_mode<synchronous>, transform_indices = @transform_1, window_bounds = array<i64: 9, 8, 16>}, {pipeline_mode = #tpu.pipeline_mode<synchronous>, transform_indices = @transform_2, window_bounds = array<i64: 8, 1>}, {transform_indices = @transform_3, window_bounds = array<i64: 1, 8, 80>}]} {
    %c0 = arith.constant 0 : index
    %c0_0 = arith.constant 0 : index
    %c0_1 = arith.constant 0 : index
    %0 = vector.load %arg1[%c0, %c0_0, %c0_1] : memref<1x16x110xbf16, #tpu.memory_space<vmem>>, vector<1x16x110xbf16>
    %1 = vector.shape_cast %0 : vector<1x16x110xbf16> to vector<16x110xbf16>
    %cst = arith.constant 0.000000e+00 : f32
    %2 = vector.broadcast %cst : f32 to vector<8x80xf32>
    %c0_2 = arith.constant 0 : index
    %c0_3 = arith.constant 0 : index
    %c0_4 = arith.constant 0 : index
    %3 = vector.load %arg2[%c0_2, %c0_3, %c0_4] : memref<9x8x16xbf16, #tpu.memory_space<vmem>>, vector<1x8x16xbf16>
    %4 = vector.shape_cast %3 : vector<1x8x16xbf16> to vector<8x16xbf16>
    %5 = vector.extract_strided_slice %1 {offsets = [0, 0], sizes = [16, 80], strides = [1, 1]} : vector<16x110xbf16> to vector<16x80xbf16>
    %cst_5 = arith.constant dense<0.000000e+00> : vector<8x80xf32>
    %6 = tpu.matmul %4, %5, %cst_5 {dimension_numbers = #tpu.dot_dimension_numbers<[1], [0], [0], [1], [0, 0, 1, 1], [], []>} : vector<8x16xbf16>, vector<16x80xbf16>, vector<8x80xf32> -> vector<8x80xf32>
    %7 = arith.addf %2, %6 : vector<8x80xf32>
    %c1 = arith.constant 1 : index
    %c0_6 = arith.constant 0 : index
    %c0_7 = arith.constant 0 : index
    %8 = vector.load %arg2[%c1, %c0_6, %c0_7] : memref<9x8x16xbf16, #tpu.memory_space<vmem>>, vector<1x8x16xbf16>
    %9 = vector.shape_cast %8 : vector<1x8x16xbf16> to vector<8x16xbf16>
    %10 = vector.extract_strided_slice %1 {offsets = [0, 1], sizes = [16, 80], strides = [1, 1]} : vector<16x110xbf16> to vector<16x80xbf16>
    %cst_8 = arith.constant dense<0.000000e+00> : vector<8x80xf32>
    %11 = tpu.matmul %9, %10, %cst_8 {dimension_numbers = #tpu.dot_dimension_numbers<[1], [0], [0], [1], [0, 0, 1, 1], [], []>} : vector<8x16xbf16>, vector<16x80xbf16>, vector<8x80xf32> -> vector<8x80xf32>
    %12 = arith.addf %7, %11 : vector<8x80xf32>
    %c2 = arith.constant 2 : index
    %c0_9 = arith.constant 0 : index
    %c0_10 = arith.constant 0 : index
    %13 = vector.load %arg2[%c2, %c0_9, %c0_10] : memref<9x8x16xbf16, #tpu.memory_space<vmem>>, vector<1x8x16xbf16>
    %14 = vector.shape_cast %13 : vector<1x8x16xbf16> to vector<8x16xbf16>
    %15 = vector.extract_strided_slice %1 {offsets = [0, 2], sizes = [16, 80], strides = [1, 1]} : vector<16x110xbf16> to vector<16x80xbf16>
    %cst_11 = arith.constant dense<0.000000e+00> : vector<8x80xf32>
    %16 = tpu.matmul %14, %15, %cst_11 {dimension_numbers = #tpu.dot_dimension_numbers<[1], [0], [0], [1], [0, 0, 1, 1], [], []>} : vector<8x16xbf16>, vector<16x80xbf16>, vector<8x80xf32> -> vector<8x80xf32>
    %17 = arith.addf %12, %16 : vector<8x80xf32>
    %c3 = arith.constant 3 : index
    %c0_12 = arith.constant 0 : index
    %c0_13 = arith.constant 0 : index
    %18 = vector.load %arg2[%c3, %c0_12, %c0_13] : memref<9x8x16xbf16, #tpu.memory_space<vmem>>, vector<1x8x16xbf16>
    %19 = vector.shape_cast %18 : vector<1x8x16xbf16> to vector<8x16xbf16>
    %20 = vector.extract_strided_slice %1 {offsets = [0, 10], sizes = [16, 80], strides = [1, 1]} : vector<16x110xbf16> to vector<16x80xbf16>
    %cst_14 = arith.constant dense<0.000000e+00> : vector<8x80xf32>
    %21 = tpu.matmul %19, %20, %cst_14 {dimension_numbers = #tpu.dot_dimension_numbers<[1], [0], [0], [1], [0, 0, 1, 1], [], []>} : vector<8x16xbf16>, vector<16x80xbf16>, vector<8x80xf32> -> vector<8x80xf32>
    %22 = arith.addf %17, %21 : vector<8x80xf32>
    %c4 = arith.constant 4 : index
    %c0_15 = arith.constant 0 : index
    %c0_16 = arith.constant 0 : index
    %23 = vector.load %arg2[%c4, %c0_15, %c0_16] : memref<9x8x16xbf16, #tpu.memory_space<vmem>>, vector<1x8x16xbf16>
    %24 = vector.shape_cast %23 : vector<1x8x16xbf16> to vector<8x16xbf16>
    %25 = vector.extract_strided_slice %1 {offsets = [0, 11], sizes = [16, 80], strides = [1, 1]} : vector<16x110xbf16> to vector<16x80xbf16>
    %cst_17 = arith.constant dense<0.000000e+00> : vector<8x80xf32>
    %26 = tpu.matmul %24, %25, %cst_17 {dimension_numbers = #tpu.dot_dimension_numbers<[1], [0], [0], [1], [0, 0, 1, 1], [], []>} : vector<8x16xbf16>, vector<16x80xbf16>, vector<8x80xf32> -> vector<8x80xf32>
    %27 = arith.addf %22, %26 : vector<8x80xf32>
    %c5 = arith.constant 5 : index
    %c0_18 = arith.constant 0 : index
    %c0_19 = arith.constant 0 : index
    %28 = vector.load %arg2[%c5, %c0_18, %c0_19] : memref<9x8x16xbf16, #tpu.memory_space<vmem>>, vector<1x8x16xbf16>
    %29 = vector.shape_cast %28 : vector<1x8x16xbf16> to vector<8x16xbf16>
    %30 = vector.extract_strided_slice %1 {offsets = [0, 12], sizes = [16, 80], strides = [1, 1]} : vector<16x110xbf16> to vector<16x80xbf16>
    %cst_20 = arith.constant dense<0.000000e+00> : vector<8x80xf32>
    %31 = tpu.matmul %29, %30, %cst_20 {dimension_numbers = #tpu.dot_dimension_numbers<[1], [0], [0], [1], [0, 0, 1, 1], [], []>} : vector<8x16xbf16>, vector<16x80xbf16>, vector<8x80xf32> -> vector<8x80xf32>
    %32 = arith.addf %27, %31 : vector<8x80xf32>
    %c6 = arith.constant 6 : index
    %c0_21 = arith.constant 0 : index
    %c0_22 = arith.constant 0 : index
    %33 = vector.load %arg2[%c6, %c0_21, %c0_22] : memref<9x8x16xbf16, #tpu.memory_space<vmem>>, vector<1x8x16xbf16>
    %34 = vector.shape_cast %33 : vector<1x8x16xbf16> to vector<8x16xbf16>
    %35 = vector.extract_strided_slice %1 {offsets = [0, 20], sizes = [16, 80], strides = [1, 1]} : vector<16x110xbf16> to vector<16x80xbf16>
    %cst_23 = arith.constant dense<0.000000e+00> : vector<8x80xf32>
    %36 = tpu.matmul %34, %35, %cst_23 {dimension_numbers = #tpu.dot_dimension_numbers<[1], [0], [0], [1], [0, 0, 1, 1], [], []>} : vector<8x16xbf16>, vector<16x80xbf16>, vector<8x80xf32> -> vector<8x80xf32>
    %37 = arith.addf %32, %36 : vector<8x80xf32>
    %c7 = arith.constant 7 : index
    %c0_24 = arith.constant 0 : index
    %c0_25 = arith.constant 0 : index
    %38 = vector.load %arg2[%c7, %c0_24, %c0_25] : memref<9x8x16xbf16, #tpu.memory_space<vmem>>, vector<1x8x16xbf16>
    %39 = vector.shape_cast %38 : vector<1x8x16xbf16> to vector<8x16xbf16>
    %40 = vector.extract_strided_slice %1 {offsets = [0, 21], sizes = [16, 80], strides = [1, 1]} : vector<16x110xbf16> to vector<16x80xbf16>
    %cst_26 = arith.constant dense<0.000000e+00> : vector<8x80xf32>
    %41 = tpu.matmul %39, %40, %cst_26 {dimension_numbers = #tpu.dot_dimension_numbers<[1], [0], [0], [1], [0, 0, 1, 1], [], []>} : vector<8x16xbf16>, vector<16x80xbf16>, vector<8x80xf32> -> vector<8x80xf32>
    %42 = arith.addf %37, %41 : vector<8x80xf32>
    %c8 = arith.constant 8 : index
    %c0_27 = arith.constant 0 : index
    %c0_28 = arith.constant 0 : index
    %43 = vector.load %arg2[%c8, %c0_27, %c0_28] : memref<9x8x16xbf16, #tpu.memory_space<vmem>>, vector<1x8x16xbf16>
    %44 = vector.shape_cast %43 : vector<1x8x16xbf16> to vector<8x16xbf16>
    %45 = vector.extract_strided_slice %1 {offsets = [0, 22], sizes = [16, 80], strides = [1, 1]} : vector<16x110xbf16> to vector<16x80xbf16>
    %cst_29 = arith.constant dense<0.000000e+00> : vector<8x80xf32>
    %46 = tpu.matmul %44, %45, %cst_29 {dimension_numbers = #tpu.dot_dimension_numbers<[1], [0], [0], [1], [0, 0, 1, 1], [], []>} : vector<8x16xbf16>, vector<16x80xbf16>, vector<8x80xf32> -> vector<8x80xf32>
    %47 = arith.addf %42, %46 : vector<8x80xf32>
    %c0_30 = arith.constant 0 : index
    %c0_31 = arith.constant 0 : index
    %48 = vector.load %arg3[%c0_30, %c0_31] : memref<8x1xf32, #tpu.memory_space<vmem>>, vector<8x1xf32>
    %49 = vector.broadcast %48 : vector<8x1xf32> to vector<8x80xf32>
    %50 = arith.addf %47, %49 : vector<8x80xf32>
    %cst_32 = arith.constant 0.000000e+00 : f32
    %51 = vector.broadcast %cst_32 : f32 to vector<8x80xf32>
    %52 = arith.cmpf oge, %50, %51 : vector<8x80xf32>
    %cst_33 = arith.constant 2.000000e-01 : f32
    %53 = vector.broadcast %cst_33 : f32 to vector<8x80xf32>
    %54 = arith.mulf %53, %50 : vector<8x80xf32>
    %55 = arith.select %52, %50, %54 : vector<8x80xi1>, vector<8x80xf32>
    %56 = arith.truncf %55 : vector<8x80xf32> to vector<8x80xbf16>
    %c0_34 = arith.constant 0 : index
    %c0_35 = arith.constant 0 : index
    %c0_36 = arith.constant 0 : index
    %57 = vector.load %arg4[%c0_34, %c0_35, %c0_36] : memref<1x8x80xbf16, #tpu.memory_space<vmem>>, vector<1x8x80xbf16>
    %58 = vector.shape_cast %57 : vector<1x8x80xbf16> to vector<8x80xbf16>
    %59 = vector.shape_cast %56 : vector<8x80xbf16> to vector<1x8x80xbf16>
    tpu.vector_store %arg4[%c0_34, %c0_35, %c0_36], %59 {strides = array<i32>} : memref<1x8x80xbf16, #tpu.memory_space<vmem>>, vector<1x8x80xbf16>,
    return
  }
  func.func @transform_0(%arg0: i32) -> (i32, i32, i32) {
    %c0_i32 = arith.constant 0 : i32
    %c0_i32_0 = arith.constant 0 : i32
    %c0_i32_1 = arith.constant 0 : i32
    return %arg0, %c0_i32, %c0_i32_0 : i32, i32, i32
  }
  func.func @transform_1(%arg0: i32) -> (i32, i32, i32) {
    %c0_i32 = arith.constant 0 : i32
    %c0_i32_0 = arith.constant 0 : i32
    %c0_i32_1 = arith.constant 0 : i32
    %c0_i32_2 = arith.constant 0 : i32
    return %c0_i32, %c0_i32_0, %c0_i32_1 : i32, i32, i32
  }
  func.func @transform_2(%arg0: i32) -> (i32, i32) {
    %c0_i32 = arith.constant 0 : i32
    %c0_i32_0 = arith.constant 0 : i32
    %c0_i32_1 = arith.constant 0 : i32
    return %c0_i32, %c0_i32_0 : i32, i32
  }
  func.func @transform_3(%arg0: i32) -> (i32, i32, i32) {
    %c0_i32 = arith.constant 0 : i32
    %c0_i32_0 = arith.constant 0 : i32
    %c0_i32_1 = arith.constant 0 : i32
    return %arg0, %c0_i32, %c0_i32_0 : i32, i32, i32
  }
}

module attributes {stable_mosaic.version = 11 : i64} {
  func.func @_conv_tap_kernel(%arg0: i32, %arg1: memref<1x8x110xbf16, #tpu.memory_space<vmem>>, %arg2: memref<9x8x8xbf16, #tpu.memory_space<vmem>>, %arg3: memref<8x1xf32, #tpu.memory_space<vmem>>, %arg4: memref<1x16x80xbf16, #tpu.memory_space<vmem>>, %arg5: memref<8x16xbf16, #tpu.memory_space<vmem>>, %arg6: memref<1x8x80xbf16, #tpu.memory_space<vmem>>) attributes {dimension_semantics = [#tpu.dimension_semantics<parallel>], iteration_bounds = array<i64: 2>, scalar_prefetch = 0 : i64, scratch_operands = 0 : i64, tpu.core_type = #tpu.core_type<tc>, window_params = [{transform_indices = @transform_0, window_bounds = array<i64: 1, 8, 110>}, {pipeline_mode = #tpu.pipeline_mode<synchronous>, transform_indices = @transform_1, window_bounds = array<i64: 9, 8, 8>}, {pipeline_mode = #tpu.pipeline_mode<synchronous>, transform_indices = @transform_2, window_bounds = array<i64: 8, 1>}, {transform_indices = @transform_3, window_bounds = array<i64: 1, 16, 80>}, {pipeline_mode = #tpu.pipeline_mode<synchronous>, transform_indices = @transform_4, window_bounds = array<i64: 8, 16>}, {transform_indices = @transform_5, window_bounds = array<i64: 1, 8, 80>}]} {
    %c0 = arith.constant 0 : index
    %c0_0 = arith.constant 0 : index
    %c0_1 = arith.constant 0 : index
    %0 = vector.load %arg1[%c0, %c0_0, %c0_1] : memref<1x8x110xbf16, #tpu.memory_space<vmem>>, vector<1x8x110xbf16>
    %1 = vector.shape_cast %0 : vector<1x8x110xbf16> to vector<8x110xbf16>
    %cst = arith.constant 0.000000e+00 : f32
    %2 = vector.broadcast %cst : f32 to vector<8x80xf32>
    %c0_2 = arith.constant 0 : index
    %c0_3 = arith.constant 0 : index
    %c0_4 = arith.constant 0 : index
    %3 = vector.load %arg2[%c0_2, %c0_3, %c0_4] : memref<9x8x8xbf16, #tpu.memory_space<vmem>>, vector<1x8x8xbf16>
    %4 = vector.shape_cast %3 : vector<1x8x8xbf16> to vector<8x8xbf16>
    %5 = vector.extract_strided_slice %1 {offsets = [0, 0], sizes = [8, 80], strides = [1, 1]} : vector<8x110xbf16> to vector<8x80xbf16>
    %cst_5 = arith.constant dense<0.000000e+00> : vector<8x80xf32>
    %6 = tpu.matmul %4, %5, %cst_5 {dimension_numbers = #tpu.dot_dimension_numbers<[1], [0], [0], [1], [0, 0, 1, 1], [], []>} : vector<8x8xbf16>, vector<8x80xbf16>, vector<8x80xf32> -> vector<8x80xf32>
    %7 = arith.addf %2, %6 : vector<8x80xf32>
    %c1 = arith.constant 1 : index
    %c0_6 = arith.constant 0 : index
    %c0_7 = arith.constant 0 : index
    %8 = vector.load %arg2[%c1, %c0_6, %c0_7] : memref<9x8x8xbf16, #tpu.memory_space<vmem>>, vector<1x8x8xbf16>
    %9 = vector.shape_cast %8 : vector<1x8x8xbf16> to vector<8x8xbf16>
    %10 = vector.extract_strided_slice %1 {offsets = [0, 1], sizes = [8, 80], strides = [1, 1]} : vector<8x110xbf16> to vector<8x80xbf16>
    %cst_8 = arith.constant dense<0.000000e+00> : vector<8x80xf32>
    %11 = tpu.matmul %9, %10, %cst_8 {dimension_numbers = #tpu.dot_dimension_numbers<[1], [0], [0], [1], [0, 0, 1, 1], [], []>} : vector<8x8xbf16>, vector<8x80xbf16>, vector<8x80xf32> -> vector<8x80xf32>
    %12 = arith.addf %7, %11 : vector<8x80xf32>
    %c2 = arith.constant 2 : index
    %c0_9 = arith.constant 0 : index
    %c0_10 = arith.constant 0 : index
    %13 = vector.load %arg2[%c2, %c0_9, %c0_10] : memref<9x8x8xbf16, #tpu.memory_space<vmem>>, vector<1x8x8xbf16>
    %14 = vector.shape_cast %13 : vector<1x8x8xbf16> to vector<8x8xbf16>
    %15 = vector.extract_strided_slice %1 {offsets = [0, 2], sizes = [8, 80], strides = [1, 1]} : vector<8x110xbf16> to vector<8x80xbf16>
    %cst_11 = arith.constant dense<0.000000e+00> : vector<8x80xf32>
    %16 = tpu.matmul %14, %15, %cst_11 {dimension_numbers = #tpu.dot_dimension_numbers<[1], [0], [0], [1], [0, 0, 1, 1], [], []>} : vector<8x8xbf16>, vector<8x80xbf16>, vector<8x80xf32> -> vector<8x80xf32>
    %17 = arith.addf %12, %16 : vector<8x80xf32>
    %c3 = arith.constant 3 : index
    %c0_12 = arith.constant 0 : index
    %c0_13 = arith.constant 0 : index
    %18 = vector.load %arg2[%c3, %c0_12, %c0_13] : memref<9x8x8xbf16, #tpu.memory_space<vmem>>, vector<1x8x8xbf16>
    %19 = vector.shape_cast %18 : vector<1x8x8xbf16> to vector<8x8xbf16>
    %20 = vector.extract_strided_slice %1 {offsets = [0, 10], sizes = [8, 80], strides = [1, 1]} : vector<8x110xbf16> to vector<8x80xbf16>
    %cst_14 = arith.constant dense<0.000000e+00> : vector<8x80xf32>
    %21 = tpu.matmul %19, %20, %cst_14 {dimension_numbers = #tpu.dot_dimension_numbers<[1], [0], [0], [1], [0, 0, 1, 1], [], []>} : vector<8x8xbf16>, vector<8x80xbf16>, vector<8x80xf32> -> vector<8x80xf32>
    %22 = arith.addf %17, %21 : vector<8x80xf32>
    %c4 = arith.constant 4 : index
    %c0_15 = arith.constant 0 : index
    %c0_16 = arith.constant 0 : index
    %23 = vector.load %arg2[%c4, %c0_15, %c0_16] : memref<9x8x8xbf16, #tpu.memory_space<vmem>>, vector<1x8x8xbf16>
    %24 = vector.shape_cast %23 : vector<1x8x8xbf16> to vector<8x8xbf16>
    %25 = vector.extract_strided_slice %1 {offsets = [0, 11], sizes = [8, 80], strides = [1, 1]} : vector<8x110xbf16> to vector<8x80xbf16>
    %cst_17 = arith.constant dense<0.000000e+00> : vector<8x80xf32>
    %26 = tpu.matmul %24, %25, %cst_17 {dimension_numbers = #tpu.dot_dimension_numbers<[1], [0], [0], [1], [0, 0, 1, 1], [], []>} : vector<8x8xbf16>, vector<8x80xbf16>, vector<8x80xf32> -> vector<8x80xf32>
    %27 = arith.addf %22, %26 : vector<8x80xf32>
    %c5 = arith.constant 5 : index
    %c0_18 = arith.constant 0 : index
    %c0_19 = arith.constant 0 : index
    %28 = vector.load %arg2[%c5, %c0_18, %c0_19] : memref<9x8x8xbf16, #tpu.memory_space<vmem>>, vector<1x8x8xbf16>
    %29 = vector.shape_cast %28 : vector<1x8x8xbf16> to vector<8x8xbf16>
    %30 = vector.extract_strided_slice %1 {offsets = [0, 12], sizes = [8, 80], strides = [1, 1]} : vector<8x110xbf16> to vector<8x80xbf16>
    %cst_20 = arith.constant dense<0.000000e+00> : vector<8x80xf32>
    %31 = tpu.matmul %29, %30, %cst_20 {dimension_numbers = #tpu.dot_dimension_numbers<[1], [0], [0], [1], [0, 0, 1, 1], [], []>} : vector<8x8xbf16>, vector<8x80xbf16>, vector<8x80xf32> -> vector<8x80xf32>
    %32 = arith.addf %27, %31 : vector<8x80xf32>
    %c6 = arith.constant 6 : index
    %c0_21 = arith.constant 0 : index
    %c0_22 = arith.constant 0 : index
    %33 = vector.load %arg2[%c6, %c0_21, %c0_22] : memref<9x8x8xbf16, #tpu.memory_space<vmem>>, vector<1x8x8xbf16>
    %34 = vector.shape_cast %33 : vector<1x8x8xbf16> to vector<8x8xbf16>
    %35 = vector.extract_strided_slice %1 {offsets = [0, 20], sizes = [8, 80], strides = [1, 1]} : vector<8x110xbf16> to vector<8x80xbf16>
    %cst_23 = arith.constant dense<0.000000e+00> : vector<8x80xf32>
    %36 = tpu.matmul %34, %35, %cst_23 {dimension_numbers = #tpu.dot_dimension_numbers<[1], [0], [0], [1], [0, 0, 1, 1], [], []>} : vector<8x8xbf16>, vector<8x80xbf16>, vector<8x80xf32> -> vector<8x80xf32>
    %37 = arith.addf %32, %36 : vector<8x80xf32>
    %c7 = arith.constant 7 : index
    %c0_24 = arith.constant 0 : index
    %c0_25 = arith.constant 0 : index
    %38 = vector.load %arg2[%c7, %c0_24, %c0_25] : memref<9x8x8xbf16, #tpu.memory_space<vmem>>, vector<1x8x8xbf16>
    %39 = vector.shape_cast %38 : vector<1x8x8xbf16> to vector<8x8xbf16>
    %40 = vector.extract_strided_slice %1 {offsets = [0, 21], sizes = [8, 80], strides = [1, 1]} : vector<8x110xbf16> to vector<8x80xbf16>
    %cst_26 = arith.constant dense<0.000000e+00> : vector<8x80xf32>
    %41 = tpu.matmul %39, %40, %cst_26 {dimension_numbers = #tpu.dot_dimension_numbers<[1], [0], [0], [1], [0, 0, 1, 1], [], []>} : vector<8x8xbf16>, vector<8x80xbf16>, vector<8x80xf32> -> vector<8x80xf32>
    %42 = arith.addf %37, %41 : vector<8x80xf32>
    %c8 = arith.constant 8 : index
    %c0_27 = arith.constant 0 : index
    %c0_28 = arith.constant 0 : index
    %43 = vector.load %arg2[%c8, %c0_27, %c0_28] : memref<9x8x8xbf16, #tpu.memory_space<vmem>>, vector<1x8x8xbf16>
    %44 = vector.shape_cast %43 : vector<1x8x8xbf16> to vector<8x8xbf16>
    %45 = vector.extract_strided_slice %1 {offsets = [0, 22], sizes = [8, 80], strides = [1, 1]} : vector<8x110xbf16> to vector<8x80xbf16>
    %cst_29 = arith.constant dense<0.000000e+00> : vector<8x80xf32>
    %46 = tpu.matmul %44, %45, %cst_29 {dimension_numbers = #tpu.dot_dimension_numbers<[1], [0], [0], [1], [0, 0, 1, 1], [], []>} : vector<8x8xbf16>, vector<8x80xbf16>, vector<8x80xf32> -> vector<8x80xf32>
    %47 = arith.addf %42, %46 : vector<8x80xf32>
    %c0_30 = arith.constant 0 : index
    %c0_31 = arith.constant 0 : index
    %48 = vector.load %arg3[%c0_30, %c0_31] : memref<8x1xf32, #tpu.memory_space<vmem>>, vector<8x1xf32>
    %49 = vector.broadcast %48 : vector<8x1xf32> to vector<8x80xf32>
    %50 = arith.addf %47, %49 : vector<8x80xf32>
    %c0_32 = arith.constant 0 : index
    %c0_33 = arith.constant 0 : index
    %51 = vector.load %arg5[%c0_32, %c0_33] : memref<8x16xbf16, #tpu.memory_space<vmem>>, vector<8x16xbf16>
    %c0_34 = arith.constant 0 : index
    %c0_35 = arith.constant 0 : index
    %c0_36 = arith.constant 0 : index
    %52 = vector.load %arg4[%c0_34, %c0_35, %c0_36] : memref<1x16x80xbf16, #tpu.memory_space<vmem>>, vector<1x16x80xbf16>
    %53 = vector.shape_cast %52 : vector<1x16x80xbf16> to vector<16x80xbf16>
    %cst_37 = arith.constant dense<0.000000e+00> : vector<8x80xf32>
    %54 = tpu.matmul %51, %53, %cst_37 {dimension_numbers = #tpu.dot_dimension_numbers<[1], [0], [0], [1], [0, 0, 1, 1], [], []>} : vector<8x16xbf16>, vector<16x80xbf16>, vector<8x80xf32> -> vector<8x80xf32>
    %55 = arith.addf %50, %54 : vector<8x80xf32>
    %cst_38 = arith.constant 0.000000e+00 : f32
    %56 = vector.broadcast %cst_38 : f32 to vector<8x80xf32>
    %57 = arith.cmpf oge, %55, %56 : vector<8x80xf32>
    %cst_39 = arith.constant 2.000000e-01 : f32
    %58 = vector.broadcast %cst_39 : f32 to vector<8x80xf32>
    %59 = arith.mulf %58, %55 : vector<8x80xf32>
    %60 = arith.select %57, %55, %59 : vector<8x80xi1>, vector<8x80xf32>
    %61 = arith.truncf %60 : vector<8x80xf32> to vector<8x80xbf16>
    %c0_40 = arith.constant 0 : index
    %c0_41 = arith.constant 0 : index
    %c0_42 = arith.constant 0 : index
    %62 = vector.load %arg6[%c0_40, %c0_41, %c0_42] : memref<1x8x80xbf16, #tpu.memory_space<vmem>>, vector<1x8x80xbf16>
    %63 = vector.shape_cast %62 : vector<1x8x80xbf16> to vector<8x80xbf16>
    %64 = vector.shape_cast %61 : vector<8x80xbf16> to vector<1x8x80xbf16>
    tpu.vector_store %arg6[%c0_40, %c0_41, %c0_42], %64 {strides = array<i32>} : memref<1x8x80xbf16, #tpu.memory_space<vmem>>, vector<1x8x80xbf16>,
    return
  }
  func.func @transform_0(%arg0: i32) -> (i32, i32, i32) {
    %c0_i32 = arith.constant 0 : i32
    %c0_i32_0 = arith.constant 0 : i32
    %c0_i32_1 = arith.constant 0 : i32
    return %arg0, %c0_i32, %c0_i32_0 : i32, i32, i32
  }
  func.func @transform_1(%arg0: i32) -> (i32, i32, i32) {
    %c0_i32 = arith.constant 0 : i32
    %c0_i32_0 = arith.constant 0 : i32
    %c0_i32_1 = arith.constant 0 : i32
    %c0_i32_2 = arith.constant 0 : i32
    return %c0_i32, %c0_i32_0, %c0_i32_1 : i32, i32, i32
  }
  func.func @transform_2(%arg0: i32) -> (i32, i32) {
    %c0_i32 = arith.constant 0 : i32
    %c0_i32_0 = arith.constant 0 : i32
    %c0_i32_1 = arith.constant 0 : i32
    return %c0_i32, %c0_i32_0 : i32, i32
  }
  func.func @transform_3(%arg0: i32) -> (i32, i32, i32) {
    %c0_i32 = arith.constant 0 : i32
    %c0_i32_0 = arith.constant 0 : i32
    %c0_i32_1 = arith.constant 0 : i32
    return %arg0, %c0_i32, %c0_i32_0 : i32, i32, i32
  }
  func.func @transform_4(%arg0: i32) -> (i32, i32) {
    %c0_i32 = arith.constant 0 : i32
    %c0_i32_0 = arith.constant 0 : i32
    %c0_i32_1 = arith.constant 0 : i32
    return %c0_i32, %c0_i32_0 : i32, i32
  }
  func.func @transform_5(%arg0: i32) -> (i32, i32, i32) {
    %c0_i32 = arith.constant 0 : i32
    %c0_i32_0 = arith.constant 0 : i32
    %c0_i32_1 = arith.constant 0 : i32
    return %arg0, %c0_i32, %c0_i32_0 : i32, i32, i32
  }
}

module attributes {stable_mosaic.version = 11 : i64} {
  func.func @_conv_tap_kernel(%arg0: i32, %arg1: memref<1x8x342xbf16, #tpu.memory_space<vmem>>, %arg2: memref<9x8x8xbf16, #tpu.memory_space<vmem>>, %arg3: memref<8x1xf32, #tpu.memory_space<vmem>>, %arg4: memref<1x8x288xbf16, #tpu.memory_space<vmem>>) attributes {dimension_semantics = [#tpu.dimension_semantics<parallel>], iteration_bounds = array<i64: 2>, scalar_prefetch = 0 : i64, scratch_operands = 0 : i64, tpu.core_type = #tpu.core_type<tc>, window_params = [{transform_indices = @transform_0, window_bounds = array<i64: 1, 8, 342>}, {pipeline_mode = #tpu.pipeline_mode<synchronous>, transform_indices = @transform_1, window_bounds = array<i64: 9, 8, 8>}, {pipeline_mode = #tpu.pipeline_mode<synchronous>, transform_indices = @transform_2, window_bounds = array<i64: 8, 1>}, {transform_indices = @transform_3, window_bounds = array<i64: 1, 8, 288>}]} {
    %c0 = arith.constant 0 : index
    %c0_0 = arith.constant 0 : index
    %c0_1 = arith.constant 0 : index
    %0 = vector.load %arg1[%c0, %c0_0, %c0_1] : memref<1x8x342xbf16, #tpu.memory_space<vmem>>, vector<1x8x342xbf16>
    %1 = vector.shape_cast %0 : vector<1x8x342xbf16> to vector<8x342xbf16>
    %cst = arith.constant 0.000000e+00 : f32
    %2 = vector.broadcast %cst : f32 to vector<8x288xf32>
    %c0_2 = arith.constant 0 : index
    %c0_3 = arith.constant 0 : index
    %c0_4 = arith.constant 0 : index
    %3 = vector.load %arg2[%c0_2, %c0_3, %c0_4] : memref<9x8x8xbf16, #tpu.memory_space<vmem>>, vector<1x8x8xbf16>
    %4 = vector.shape_cast %3 : vector<1x8x8xbf16> to vector<8x8xbf16>
    %5 = vector.extract_strided_slice %1 {offsets = [0, 0], sizes = [8, 288], strides = [1, 1]} : vector<8x342xbf16> to vector<8x288xbf16>
    %cst_5 = arith.constant dense<0.000000e+00> : vector<8x288xf32>
    %6 = tpu.matmul %4, %5, %cst_5 {dimension_numbers = #tpu.dot_dimension_numbers<[1], [0], [0], [1], [0, 0, 1, 1], [], []>} : vector<8x8xbf16>, vector<8x288xbf16>, vector<8x288xf32> -> vector<8x288xf32>
    %7 = arith.addf %2, %6 : vector<8x288xf32>
    %c1 = arith.constant 1 : index
    %c0_6 = arith.constant 0 : index
    %c0_7 = arith.constant 0 : index
    %8 = vector.load %arg2[%c1, %c0_6, %c0_7] : memref<9x8x8xbf16, #tpu.memory_space<vmem>>, vector<1x8x8xbf16>
    %9 = vector.shape_cast %8 : vector<1x8x8xbf16> to vector<8x8xbf16>
    %10 = vector.extract_strided_slice %1 {offsets = [0, 1], sizes = [8, 288], strides = [1, 1]} : vector<8x342xbf16> to vector<8x288xbf16>
    %cst_8 = arith.constant dense<0.000000e+00> : vector<8x288xf32>
    %11 = tpu.matmul %9, %10, %cst_8 {dimension_numbers = #tpu.dot_dimension_numbers<[1], [0], [0], [1], [0, 0, 1, 1], [], []>} : vector<8x8xbf16>, vector<8x288xbf16>, vector<8x288xf32> -> vector<8x288xf32>
    %12 = arith.addf %7, %11 : vector<8x288xf32>
    %c2 = arith.constant 2 : index
    %c0_9 = arith.constant 0 : index
    %c0_10 = arith.constant 0 : index
    %13 = vector.load %arg2[%c2, %c0_9, %c0_10] : memref<9x8x8xbf16, #tpu.memory_space<vmem>>, vector<1x8x8xbf16>
    %14 = vector.shape_cast %13 : vector<1x8x8xbf16> to vector<8x8xbf16>
    %15 = vector.extract_strided_slice %1 {offsets = [0, 2], sizes = [8, 288], strides = [1, 1]} : vector<8x342xbf16> to vector<8x288xbf16>
    %cst_11 = arith.constant dense<0.000000e+00> : vector<8x288xf32>
    %16 = tpu.matmul %14, %15, %cst_11 {dimension_numbers = #tpu.dot_dimension_numbers<[1], [0], [0], [1], [0, 0, 1, 1], [], []>} : vector<8x8xbf16>, vector<8x288xbf16>, vector<8x288xf32> -> vector<8x288xf32>
    %17 = arith.addf %12, %16 : vector<8x288xf32>
    %c3 = arith.constant 3 : index
    %c0_12 = arith.constant 0 : index
    %c0_13 = arith.constant 0 : index
    %18 = vector.load %arg2[%c3, %c0_12, %c0_13] : memref<9x8x8xbf16, #tpu.memory_space<vmem>>, vector<1x8x8xbf16>
    %19 = vector.shape_cast %18 : vector<1x8x8xbf16> to vector<8x8xbf16>
    %20 = vector.extract_strided_slice %1 {offsets = [0, 18], sizes = [8, 288], strides = [1, 1]} : vector<8x342xbf16> to vector<8x288xbf16>
    %cst_14 = arith.constant dense<0.000000e+00> : vector<8x288xf32>
    %21 = tpu.matmul %19, %20, %cst_14 {dimension_numbers = #tpu.dot_dimension_numbers<[1], [0], [0], [1], [0, 0, 1, 1], [], []>} : vector<8x8xbf16>, vector<8x288xbf16>, vector<8x288xf32> -> vector<8x288xf32>
    %22 = arith.addf %17, %21 : vector<8x288xf32>
    %c4 = arith.constant 4 : index
    %c0_15 = arith.constant 0 : index
    %c0_16 = arith.constant 0 : index
    %23 = vector.load %arg2[%c4, %c0_15, %c0_16] : memref<9x8x8xbf16, #tpu.memory_space<vmem>>, vector<1x8x8xbf16>
    %24 = vector.shape_cast %23 : vector<1x8x8xbf16> to vector<8x8xbf16>
    %25 = vector.extract_strided_slice %1 {offsets = [0, 19], sizes = [8, 288], strides = [1, 1]} : vector<8x342xbf16> to vector<8x288xbf16>
    %cst_17 = arith.constant dense<0.000000e+00> : vector<8x288xf32>
    %26 = tpu.matmul %24, %25, %cst_17 {dimension_numbers = #tpu.dot_dimension_numbers<[1], [0], [0], [1], [0, 0, 1, 1], [], []>} : vector<8x8xbf16>, vector<8x288xbf16>, vector<8x288xf32> -> vector<8x288xf32>
    %27 = arith.addf %22, %26 : vector<8x288xf32>
    %c5 = arith.constant 5 : index
    %c0_18 = arith.constant 0 : index
    %c0_19 = arith.constant 0 : index
    %28 = vector.load %arg2[%c5, %c0_18, %c0_19] : memref<9x8x8xbf16, #tpu.memory_space<vmem>>, vector<1x8x8xbf16>
    %29 = vector.shape_cast %28 : vector<1x8x8xbf16> to vector<8x8xbf16>
    %30 = vector.extract_strided_slice %1 {offsets = [0, 20], sizes = [8, 288], strides = [1, 1]} : vector<8x342xbf16> to vector<8x288xbf16>
    %cst_20 = arith.constant dense<0.000000e+00> : vector<8x288xf32>
    %31 = tpu.matmul %29, %30, %cst_20 {dimension_numbers = #tpu.dot_dimension_numbers<[1], [0], [0], [1], [0, 0, 1, 1], [], []>} : vector<8x8xbf16>, vector<8x288xbf16>, vector<8x288xf32> -> vector<8x288xf32>
    %32 = arith.addf %27, %31 : vector<8x288xf32>
    %c6 = arith.constant 6 : index
    %c0_21 = arith.constant 0 : index
    %c0_22 = arith.constant 0 : index
    %33 = vector.load %arg2[%c6, %c0_21, %c0_22] : memref<9x8x8xbf16, #tpu.memory_space<vmem>>, vector<1x8x8xbf16>
    %34 = vector.shape_cast %33 : vector<1x8x8xbf16> to vector<8x8xbf16>
    %35 = vector.extract_strided_slice %1 {offsets = [0, 36], sizes = [8, 288], strides = [1, 1]} : vector<8x342xbf16> to vector<8x288xbf16>
    %cst_23 = arith.constant dense<0.000000e+00> : vector<8x288xf32>
    %36 = tpu.matmul %34, %35, %cst_23 {dimension_numbers = #tpu.dot_dimension_numbers<[1], [0], [0], [1], [0, 0, 1, 1], [], []>} : vector<8x8xbf16>, vector<8x288xbf16>, vector<8x288xf32> -> vector<8x288xf32>
    %37 = arith.addf %32, %36 : vector<8x288xf32>
    %c7 = arith.constant 7 : index
    %c0_24 = arith.constant 0 : index
    %c0_25 = arith.constant 0 : index
    %38 = vector.load %arg2[%c7, %c0_24, %c0_25] : memref<9x8x8xbf16, #tpu.memory_space<vmem>>, vector<1x8x8xbf16>
    %39 = vector.shape_cast %38 : vector<1x8x8xbf16> to vector<8x8xbf16>
    %40 = vector.extract_strided_slice %1 {offsets = [0, 37], sizes = [8, 288], strides = [1, 1]} : vector<8x342xbf16> to vector<8x288xbf16>
    %cst_26 = arith.constant dense<0.000000e+00> : vector<8x288xf32>
    %41 = tpu.matmul %39, %40, %cst_26 {dimension_numbers = #tpu.dot_dimension_numbers<[1], [0], [0], [1], [0, 0, 1, 1], [], []>} : vector<8x8xbf16>, vector<8x288xbf16>, vector<8x288xf32> -> vector<8x288xf32>
    %42 = arith.addf %37, %41 : vector<8x288xf32>
    %c8 = arith.constant 8 : index
    %c0_27 = arith.constant 0 : index
    %c0_28 = arith.constant 0 : index
    %43 = vector.load %arg2[%c8, %c0_27, %c0_28] : memref<9x8x8xbf16, #tpu.memory_space<vmem>>, vector<1x8x8xbf16>
    %44 = vector.shape_cast %43 : vector<1x8x8xbf16> to vector<8x8xbf16>
    %45 = vector.extract_strided_slice %1 {offsets = [0, 38], sizes = [8, 288], strides = [1, 1]} : vector<8x342xbf16> to vector<8x288xbf16>
    %cst_29 = arith.constant dense<0.000000e+00> : vector<8x288xf32>
    %46 = tpu.matmul %44, %45, %cst_29 {dimension_numbers = #tpu.dot_dimension_numbers<[1], [0], [0], [1], [0, 0, 1, 1], [], []>} : vector<8x8xbf16>, vector<8x288xbf16>, vector<8x288xf32> -> vector<8x288xf32>
    %47 = arith.addf %42, %46 : vector<8x288xf32>
    %c0_30 = arith.constant 0 : index
    %c0_31 = arith.constant 0 : index
    %48 = vector.load %arg3[%c0_30, %c0_31] : memref<8x1xf32, #tpu.memory_space<vmem>>, vector<8x1xf32>
    %49 = vector.broadcast %48 : vector<8x1xf32> to vector<8x288xf32>
    %50 = arith.addf %47, %49 : vector<8x288xf32>
    %cst_32 = arith.constant 0.000000e+00 : f32
    %51 = vector.broadcast %cst_32 : f32 to vector<8x288xf32>
    %52 = arith.cmpf oge, %50, %51 : vector<8x288xf32>
    %cst_33 = arith.constant 2.000000e-01 : f32
    %53 = vector.broadcast %cst_33 : f32 to vector<8x288xf32>
    %54 = arith.mulf %53, %50 : vector<8x288xf32>
    %55 = arith.select %52, %50, %54 : vector<8x288xi1>, vector<8x288xf32>
    %56 = arith.truncf %55 : vector<8x288xf32> to vector<8x288xbf16>
    %c0_34 = arith.constant 0 : index
    %c0_35 = arith.constant 0 : index
    %c0_36 = arith.constant 0 : index
    %57 = vector.load %arg4[%c0_34, %c0_35, %c0_36] : memref<1x8x288xbf16, #tpu.memory_space<vmem>>, vector<1x8x288xbf16>
    %58 = vector.shape_cast %57 : vector<1x8x288xbf16> to vector<8x288xbf16>
    %59 = vector.shape_cast %56 : vector<8x288xbf16> to vector<1x8x288xbf16>
    tpu.vector_store %arg4[%c0_34, %c0_35, %c0_36], %59 {strides = array<i32>} : memref<1x8x288xbf16, #tpu.memory_space<vmem>>, vector<1x8x288xbf16>,
    return
  }
  func.func @transform_0(%arg0: i32) -> (i32, i32, i32) {
    %c0_i32 = arith.constant 0 : i32
    %c0_i32_0 = arith.constant 0 : i32
    %c0_i32_1 = arith.constant 0 : i32
    return %arg0, %c0_i32, %c0_i32_0 : i32, i32, i32
  }
  func.func @transform_1(%arg0: i32) -> (i32, i32, i32) {
    %c0_i32 = arith.constant 0 : i32
    %c0_i32_0 = arith.constant 0 : i32
    %c0_i32_1 = arith.constant 0 : i32
    %c0_i32_2 = arith.constant 0 : i32
    return %c0_i32, %c0_i32_0, %c0_i32_1 : i32, i32, i32
  }
  func.func @transform_2(%arg0: i32) -> (i32, i32) {
    %c0_i32 = arith.constant 0 : i32
    %c0_i32_0 = arith.constant 0 : i32
    %c0_i32_1 = arith.constant 0 : i32
    return %c0_i32, %c0_i32_0 : i32, i32
  }
  func.func @transform_3(%arg0: i32) -> (i32, i32, i32) {
    %c0_i32 = arith.constant 0 : i32
    %c0_i32_0 = arith.constant 0 : i32
    %c0_i32_1 = arith.constant 0 : i32
    return %arg0, %c0_i32, %c0_i32_0 : i32, i32, i32
  }
}

module attributes {stable_mosaic.version = 11 : i64} {
  func.func @_conv_tap_kernel(%arg0: i32, %arg1: memref<1x8x342xbf16, #tpu.memory_space<vmem>>, %arg2: memref<9x8x8xbf16, #tpu.memory_space<vmem>>, %arg3: memref<8x1xf32, #tpu.memory_space<vmem>>, %arg4: memref<1x8x288xbf16, #tpu.memory_space<vmem>>, %arg5: memref<1x8x288xbf16, #tpu.memory_space<vmem>>) attributes {dimension_semantics = [#tpu.dimension_semantics<parallel>], iteration_bounds = array<i64: 2>, scalar_prefetch = 0 : i64, scratch_operands = 0 : i64, tpu.core_type = #tpu.core_type<tc>, window_params = [{transform_indices = @transform_0, window_bounds = array<i64: 1, 8, 342>}, {pipeline_mode = #tpu.pipeline_mode<synchronous>, transform_indices = @transform_1, window_bounds = array<i64: 9, 8, 8>}, {pipeline_mode = #tpu.pipeline_mode<synchronous>, transform_indices = @transform_2, window_bounds = array<i64: 8, 1>}, {transform_indices = @transform_3, window_bounds = array<i64: 1, 8, 288>}, {transform_indices = @transform_4, window_bounds = array<i64: 1, 8, 288>}]} {
    %c0 = arith.constant 0 : index
    %c0_0 = arith.constant 0 : index
    %c0_1 = arith.constant 0 : index
    %0 = vector.load %arg1[%c0, %c0_0, %c0_1] : memref<1x8x342xbf16, #tpu.memory_space<vmem>>, vector<1x8x342xbf16>
    %1 = vector.shape_cast %0 : vector<1x8x342xbf16> to vector<8x342xbf16>
    %cst = arith.constant 0.000000e+00 : f32
    %2 = vector.broadcast %cst : f32 to vector<8x288xf32>
    %c0_2 = arith.constant 0 : index
    %c0_3 = arith.constant 0 : index
    %c0_4 = arith.constant 0 : index
    %3 = vector.load %arg2[%c0_2, %c0_3, %c0_4] : memref<9x8x8xbf16, #tpu.memory_space<vmem>>, vector<1x8x8xbf16>
    %4 = vector.shape_cast %3 : vector<1x8x8xbf16> to vector<8x8xbf16>
    %5 = vector.extract_strided_slice %1 {offsets = [0, 0], sizes = [8, 288], strides = [1, 1]} : vector<8x342xbf16> to vector<8x288xbf16>
    %cst_5 = arith.constant dense<0.000000e+00> : vector<8x288xf32>
    %6 = tpu.matmul %4, %5, %cst_5 {dimension_numbers = #tpu.dot_dimension_numbers<[1], [0], [0], [1], [0, 0, 1, 1], [], []>} : vector<8x8xbf16>, vector<8x288xbf16>, vector<8x288xf32> -> vector<8x288xf32>
    %7 = arith.addf %2, %6 : vector<8x288xf32>
    %c1 = arith.constant 1 : index
    %c0_6 = arith.constant 0 : index
    %c0_7 = arith.constant 0 : index
    %8 = vector.load %arg2[%c1, %c0_6, %c0_7] : memref<9x8x8xbf16, #tpu.memory_space<vmem>>, vector<1x8x8xbf16>
    %9 = vector.shape_cast %8 : vector<1x8x8xbf16> to vector<8x8xbf16>
    %10 = vector.extract_strided_slice %1 {offsets = [0, 1], sizes = [8, 288], strides = [1, 1]} : vector<8x342xbf16> to vector<8x288xbf16>
    %cst_8 = arith.constant dense<0.000000e+00> : vector<8x288xf32>
    %11 = tpu.matmul %9, %10, %cst_8 {dimension_numbers = #tpu.dot_dimension_numbers<[1], [0], [0], [1], [0, 0, 1, 1], [], []>} : vector<8x8xbf16>, vector<8x288xbf16>, vector<8x288xf32> -> vector<8x288xf32>
    %12 = arith.addf %7, %11 : vector<8x288xf32>
    %c2 = arith.constant 2 : index
    %c0_9 = arith.constant 0 : index
    %c0_10 = arith.constant 0 : index
    %13 = vector.load %arg2[%c2, %c0_9, %c0_10] : memref<9x8x8xbf16, #tpu.memory_space<vmem>>, vector<1x8x8xbf16>
    %14 = vector.shape_cast %13 : vector<1x8x8xbf16> to vector<8x8xbf16>
    %15 = vector.extract_strided_slice %1 {offsets = [0, 2], sizes = [8, 288], strides = [1, 1]} : vector<8x342xbf16> to vector<8x288xbf16>
    %cst_11 = arith.constant dense<0.000000e+00> : vector<8x288xf32>
    %16 = tpu.matmul %14, %15, %cst_11 {dimension_numbers = #tpu.dot_dimension_numbers<[1], [0], [0], [1], [0, 0, 1, 1], [], []>} : vector<8x8xbf16>, vector<8x288xbf16>, vector<8x288xf32> -> vector<8x288xf32>
    %17 = arith.addf %12, %16 : vector<8x288xf32>
    %c3 = arith.constant 3 : index
    %c0_12 = arith.constant 0 : index
    %c0_13 = arith.constant 0 : index
    %18 = vector.load %arg2[%c3, %c0_12, %c0_13] : memref<9x8x8xbf16, #tpu.memory_space<vmem>>, vector<1x8x8xbf16>
    %19 = vector.shape_cast %18 : vector<1x8x8xbf16> to vector<8x8xbf16>
    %20 = vector.extract_strided_slice %1 {offsets = [0, 18], sizes = [8, 288], strides = [1, 1]} : vector<8x342xbf16> to vector<8x288xbf16>
    %cst_14 = arith.constant dense<0.000000e+00> : vector<8x288xf32>
    %21 = tpu.matmul %19, %20, %cst_14 {dimension_numbers = #tpu.dot_dimension_numbers<[1], [0], [0], [1], [0, 0, 1, 1], [], []>} : vector<8x8xbf16>, vector<8x288xbf16>, vector<8x288xf32> -> vector<8x288xf32>
    %22 = arith.addf %17, %21 : vector<8x288xf32>
    %c4 = arith.constant 4 : index
    %c0_15 = arith.constant 0 : index
    %c0_16 = arith.constant 0 : index
    %23 = vector.load %arg2[%c4, %c0_15, %c0_16] : memref<9x8x8xbf16, #tpu.memory_space<vmem>>, vector<1x8x8xbf16>
    %24 = vector.shape_cast %23 : vector<1x8x8xbf16> to vector<8x8xbf16>
    %25 = vector.extract_strided_slice %1 {offsets = [0, 19], sizes = [8, 288], strides = [1, 1]} : vector<8x342xbf16> to vector<8x288xbf16>
    %cst_17 = arith.constant dense<0.000000e+00> : vector<8x288xf32>
    %26 = tpu.matmul %24, %25, %cst_17 {dimension_numbers = #tpu.dot_dimension_numbers<[1], [0], [0], [1], [0, 0, 1, 1], [], []>} : vector<8x8xbf16>, vector<8x288xbf16>, vector<8x288xf32> -> vector<8x288xf32>
    %27 = arith.addf %22, %26 : vector<8x288xf32>
    %c5 = arith.constant 5 : index
    %c0_18 = arith.constant 0 : index
    %c0_19 = arith.constant 0 : index
    %28 = vector.load %arg2[%c5, %c0_18, %c0_19] : memref<9x8x8xbf16, #tpu.memory_space<vmem>>, vector<1x8x8xbf16>
    %29 = vector.shape_cast %28 : vector<1x8x8xbf16> to vector<8x8xbf16>
    %30 = vector.extract_strided_slice %1 {offsets = [0, 20], sizes = [8, 288], strides = [1, 1]} : vector<8x342xbf16> to vector<8x288xbf16>
    %cst_20 = arith.constant dense<0.000000e+00> : vector<8x288xf32>
    %31 = tpu.matmul %29, %30, %cst_20 {dimension_numbers = #tpu.dot_dimension_numbers<[1], [0], [0], [1], [0, 0, 1, 1], [], []>} : vector<8x8xbf16>, vector<8x288xbf16>, vector<8x288xf32> -> vector<8x288xf32>
    %32 = arith.addf %27, %31 : vector<8x288xf32>
    %c6 = arith.constant 6 : index
    %c0_21 = arith.constant 0 : index
    %c0_22 = arith.constant 0 : index
    %33 = vector.load %arg2[%c6, %c0_21, %c0_22] : memref<9x8x8xbf16, #tpu.memory_space<vmem>>, vector<1x8x8xbf16>
    %34 = vector.shape_cast %33 : vector<1x8x8xbf16> to vector<8x8xbf16>
    %35 = vector.extract_strided_slice %1 {offsets = [0, 36], sizes = [8, 288], strides = [1, 1]} : vector<8x342xbf16> to vector<8x288xbf16>
    %cst_23 = arith.constant dense<0.000000e+00> : vector<8x288xf32>
    %36 = tpu.matmul %34, %35, %cst_23 {dimension_numbers = #tpu.dot_dimension_numbers<[1], [0], [0], [1], [0, 0, 1, 1], [], []>} : vector<8x8xbf16>, vector<8x288xbf16>, vector<8x288xf32> -> vector<8x288xf32>
    %37 = arith.addf %32, %36 : vector<8x288xf32>
    %c7 = arith.constant 7 : index
    %c0_24 = arith.constant 0 : index
    %c0_25 = arith.constant 0 : index
    %38 = vector.load %arg2[%c7, %c0_24, %c0_25] : memref<9x8x8xbf16, #tpu.memory_space<vmem>>, vector<1x8x8xbf16>
    %39 = vector.shape_cast %38 : vector<1x8x8xbf16> to vector<8x8xbf16>
    %40 = vector.extract_strided_slice %1 {offsets = [0, 37], sizes = [8, 288], strides = [1, 1]} : vector<8x342xbf16> to vector<8x288xbf16>
    %cst_26 = arith.constant dense<0.000000e+00> : vector<8x288xf32>
    %41 = tpu.matmul %39, %40, %cst_26 {dimension_numbers = #tpu.dot_dimension_numbers<[1], [0], [0], [1], [0, 0, 1, 1], [], []>} : vector<8x8xbf16>, vector<8x288xbf16>, vector<8x288xf32> -> vector<8x288xf32>
    %42 = arith.addf %37, %41 : vector<8x288xf32>
    %c8 = arith.constant 8 : index
    %c0_27 = arith.constant 0 : index
    %c0_28 = arith.constant 0 : index
    %43 = vector.load %arg2[%c8, %c0_27, %c0_28] : memref<9x8x8xbf16, #tpu.memory_space<vmem>>, vector<1x8x8xbf16>
    %44 = vector.shape_cast %43 : vector<1x8x8xbf16> to vector<8x8xbf16>
    %45 = vector.extract_strided_slice %1 {offsets = [0, 38], sizes = [8, 288], strides = [1, 1]} : vector<8x342xbf16> to vector<8x288xbf16>
    %cst_29 = arith.constant dense<0.000000e+00> : vector<8x288xf32>
    %46 = tpu.matmul %44, %45, %cst_29 {dimension_numbers = #tpu.dot_dimension_numbers<[1], [0], [0], [1], [0, 0, 1, 1], [], []>} : vector<8x8xbf16>, vector<8x288xbf16>, vector<8x288xf32> -> vector<8x288xf32>
    %47 = arith.addf %42, %46 : vector<8x288xf32>
    %c0_30 = arith.constant 0 : index
    %c0_31 = arith.constant 0 : index
    %48 = vector.load %arg3[%c0_30, %c0_31] : memref<8x1xf32, #tpu.memory_space<vmem>>, vector<8x1xf32>
    %49 = vector.broadcast %48 : vector<8x1xf32> to vector<8x288xf32>
    %50 = arith.addf %47, %49 : vector<8x288xf32>
    %c0_32 = arith.constant 0 : index
    %c0_33 = arith.constant 0 : index
    %c0_34 = arith.constant 0 : index
    %51 = vector.load %arg4[%c0_32, %c0_33, %c0_34] : memref<1x8x288xbf16, #tpu.memory_space<vmem>>, vector<1x8x288xbf16>
    %52 = vector.shape_cast %51 : vector<1x8x288xbf16> to vector<8x288xbf16>
    %53 = arith.extf %52 : vector<8x288xbf16> to vector<8x288xf32>
    %54 = arith.addf %50, %53 : vector<8x288xf32>
    %cst_35 = arith.constant 0.000000e+00 : f32
    %55 = vector.broadcast %cst_35 : f32 to vector<8x288xf32>
    %56 = arith.cmpf oge, %54, %55 : vector<8x288xf32>
    %cst_36 = arith.constant 2.000000e-01 : f32
    %57 = vector.broadcast %cst_36 : f32 to vector<8x288xf32>
    %58 = arith.mulf %57, %54 : vector<8x288xf32>
    %59 = arith.select %56, %54, %58 : vector<8x288xi1>, vector<8x288xf32>
    %60 = arith.truncf %59 : vector<8x288xf32> to vector<8x288xbf16>
    %c0_37 = arith.constant 0 : index
    %c0_38 = arith.constant 0 : index
    %c0_39 = arith.constant 0 : index
    %61 = vector.load %arg5[%c0_37, %c0_38, %c0_39] : memref<1x8x288xbf16, #tpu.memory_space<vmem>>, vector<1x8x288xbf16>
    %62 = vector.shape_cast %61 : vector<1x8x288xbf16> to vector<8x288xbf16>
    %63 = vector.shape_cast %60 : vector<8x288xbf16> to vector<1x8x288xbf16>
    tpu.vector_store %arg5[%c0_37, %c0_38, %c0_39], %63 {strides = array<i32>} : memref<1x8x288xbf16, #tpu.memory_space<vmem>>, vector<1x8x288xbf16>,
    return
  }
  func.func @transform_0(%arg0: i32) -> (i32, i32, i32) {
    %c0_i32 = arith.constant 0 : i32
    %c0_i32_0 = arith.constant 0 : i32
    %c0_i32_1 = arith.constant 0 : i32
    return %arg0, %c0_i32, %c0_i32_0 : i32, i32, i32
  }
  func.func @transform_1(%arg0: i32) -> (i32, i32, i32) {
    %c0_i32 = arith.constant 0 : i32
    %c0_i32_0 = arith.constant 0 : i32
    %c0_i32_1 = arith.constant 0 : i32
    %c0_i32_2 = arith.constant 0 : i32
    return %c0_i32, %c0_i32_0, %c0_i32_1 : i32, i32, i32
  }
  func.func @transform_2(%arg0: i32) -> (i32, i32) {
    %c0_i32 = arith.constant 0 : i32
    %c0_i32_0 = arith.constant 0 : i32
    %c0_i32_1 = arith.constant 0 : i32
    return %c0_i32, %c0_i32_0 : i32, i32
  }
  func.func @transform_3(%arg0: i32) -> (i32, i32, i32) {
    %c0_i32 = arith.constant 0 : i32
    %c0_i32_0 = arith.constant 0 : i32
    %c0_i32_1 = arith.constant 0 : i32
    return %arg0, %c0_i32, %c0_i32_0 : i32, i32, i32
  }
  func.func @transform_4(%arg0: i32) -> (i32, i32, i32) {
    %c0_i32 = arith.constant 0 : i32
    %c0_i32_0 = arith.constant 0 : i32
    %c0_i32_1 = arith.constant 0 : i32
    return %arg0, %c0_i32, %c0_i32_0 : i32, i32, i32
  }
}

module attributes {stable_mosaic.version = 11 : i64} {
  func.func @_conv_tap_kernel(%arg0: i32, %arg1: memref<1x8x420xbf16, #tpu.memory_space<vmem>>, %arg2: memref<25x8x8xbf16, #tpu.memory_space<vmem>>, %arg3: memref<8x1xf32, #tpu.memory_space<vmem>>, %arg4: memref<1x8x320xf32, #tpu.memory_space<vmem>>) attributes {dimension_semantics = [#tpu.dimension_semantics<parallel>], iteration_bounds = array<i64: 2>, scalar_prefetch = 0 : i64, scratch_operands = 0 : i64, tpu.core_type = #tpu.core_type<tc>, window_params = [{transform_indices = @transform_0, window_bounds = array<i64: 1, 8, 420>}, {pipeline_mode = #tpu.pipeline_mode<synchronous>, transform_indices = @transform_1, window_bounds = array<i64: 25, 8, 8>}, {pipeline_mode = #tpu.pipeline_mode<synchronous>, transform_indices = @transform_2, window_bounds = array<i64: 8, 1>}, {transform_indices = @transform_3, window_bounds = array<i64: 1, 8, 320>}]} {
    %c0 = arith.constant 0 : index
    %c0_0 = arith.constant 0 : index
    %c0_1 = arith.constant 0 : index
    %0 = vector.load %arg1[%c0, %c0_0, %c0_1] : memref<1x8x420xbf16, #tpu.memory_space<vmem>>, vector<1x8x420xbf16>
    %1 = vector.shape_cast %0 : vector<1x8x420xbf16> to vector<8x420xbf16>
    %cst = arith.constant 0.000000e+00 : f32
    %2 = vector.broadcast %cst : f32 to vector<8x320xf32>
    %c0_2 = arith.constant 0 : index
    %c0_3 = arith.constant 0 : index
    %c0_4 = arith.constant 0 : index
    %3 = vector.load %arg2[%c0_2, %c0_3, %c0_4] : memref<25x8x8xbf16, #tpu.memory_space<vmem>>, vector<1x8x8xbf16>
    %4 = vector.shape_cast %3 : vector<1x8x8xbf16> to vector<8x8xbf16>
    %5 = vector.extract_strided_slice %1 {offsets = [0, 0], sizes = [8, 320], strides = [1, 1]} : vector<8x420xbf16> to vector<8x320xbf16>
    %cst_5 = arith.constant dense<0.000000e+00> : vector<8x320xf32>
    %6 = tpu.matmul %4, %5, %cst_5 {dimension_numbers = #tpu.dot_dimension_numbers<[1], [0], [0], [1], [0, 0, 1, 1], [], []>} : vector<8x8xbf16>, vector<8x320xbf16>, vector<8x320xf32> -> vector<8x320xf32>
    %7 = arith.addf %2, %6 : vector<8x320xf32>
    %c1 = arith.constant 1 : index
    %c0_6 = arith.constant 0 : index
    %c0_7 = arith.constant 0 : index
    %8 = vector.load %arg2[%c1, %c0_6, %c0_7] : memref<25x8x8xbf16, #tpu.memory_space<vmem>>, vector<1x8x8xbf16>
    %9 = vector.shape_cast %8 : vector<1x8x8xbf16> to vector<8x8xbf16>
    %10 = vector.extract_strided_slice %1 {offsets = [0, 1], sizes = [8, 320], strides = [1, 1]} : vector<8x420xbf16> to vector<8x320xbf16>
    %cst_8 = arith.constant dense<0.000000e+00> : vector<8x320xf32>
    %11 = tpu.matmul %9, %10, %cst_8 {dimension_numbers = #tpu.dot_dimension_numbers<[1], [0], [0], [1], [0, 0, 1, 1], [], []>} : vector<8x8xbf16>, vector<8x320xbf16>, vector<8x320xf32> -> vector<8x320xf32>
    %12 = arith.addf %7, %11 : vector<8x320xf32>
    %c2 = arith.constant 2 : index
    %c0_9 = arith.constant 0 : index
    %c0_10 = arith.constant 0 : index
    %13 = vector.load %arg2[%c2, %c0_9, %c0_10] : memref<25x8x8xbf16, #tpu.memory_space<vmem>>, vector<1x8x8xbf16>
    %14 = vector.shape_cast %13 : vector<1x8x8xbf16> to vector<8x8xbf16>
    %15 = vector.extract_strided_slice %1 {offsets = [0, 2], sizes = [8, 320], strides = [1, 1]} : vector<8x420xbf16> to vector<8x320xbf16>
    %cst_11 = arith.constant dense<0.000000e+00> : vector<8x320xf32>
    %16 = tpu.matmul %14, %15, %cst_11 {dimension_numbers = #tpu.dot_dimension_numbers<[1], [0], [0], [1], [0, 0, 1, 1], [], []>} : vector<8x8xbf16>, vector<8x320xbf16>, vector<8x320xf32> -> vector<8x320xf32>
    %17 = arith.addf %12, %16 : vector<8x320xf32>
    %c3 = arith.constant 3 : index
    %c0_12 = arith.constant 0 : index
    %c0_13 = arith.constant 0 : index
    %18 = vector.load %arg2[%c3, %c0_12, %c0_13] : memref<25x8x8xbf16, #tpu.memory_space<vmem>>, vector<1x8x8xbf16>
    %19 = vector.shape_cast %18 : vector<1x8x8xbf16> to vector<8x8xbf16>
    %20 = vector.extract_strided_slice %1 {offsets = [0, 3], sizes = [8, 320], strides = [1, 1]} : vector<8x420xbf16> to vector<8x320xbf16>
    %cst_14 = arith.constant dense<0.000000e+00> : vector<8x320xf32>
    %21 = tpu.matmul %19, %20, %cst_14 {dimension_numbers = #tpu.dot_dimension_numbers<[1], [0], [0], [1], [0, 0, 1, 1], [], []>} : vector<8x8xbf16>, vector<8x320xbf16>, vector<8x320xf32> -> vector<8x320xf32>
    %22 = arith.addf %17, %21 : vector<8x320xf32>
    %c4 = arith.constant 4 : index
    %c0_15 = arith.constant 0 : index
    %c0_16 = arith.constant 0 : index
    %23 = vector.load %arg2[%c4, %c0_15, %c0_16] : memref<25x8x8xbf16, #tpu.memory_space<vmem>>, vector<1x8x8xbf16>
    %24 = vector.shape_cast %23 : vector<1x8x8xbf16> to vector<8x8xbf16>
    %25 = vector.extract_strided_slice %1 {offsets = [0, 4], sizes = [8, 320], strides = [1, 1]} : vector<8x420xbf16> to vector<8x320xbf16>
    %cst_17 = arith.constant dense<0.000000e+00> : vector<8x320xf32>
    %26 = tpu.matmul %24, %25, %cst_17 {dimension_numbers = #tpu.dot_dimension_numbers<[1], [0], [0], [1], [0, 0, 1, 1], [], []>} : vector<8x8xbf16>, vector<8x320xbf16>, vector<8x320xf32> -> vector<8x320xf32>
    %27 = arith.addf %22, %26 : vector<8x320xf32>
    %c5 = arith.constant 5 : index
    %c0_18 = arith.constant 0 : index
    %c0_19 = arith.constant 0 : index
    %28 = vector.load %arg2[%c5, %c0_18, %c0_19] : memref<25x8x8xbf16, #tpu.memory_space<vmem>>, vector<1x8x8xbf16>
    %29 = vector.shape_cast %28 : vector<1x8x8xbf16> to vector<8x8xbf16>
    %30 = vector.extract_strided_slice %1 {offsets = [0, 20], sizes = [8, 320], strides = [1, 1]} : vector<8x420xbf16> to vector<8x320xbf16>
    %cst_20 = arith.constant dense<0.000000e+00> : vector<8x320xf32>
    %31 = tpu.matmul %29, %30, %cst_20 {dimension_numbers = #tpu.dot_dimension_numbers<[1], [0], [0], [1], [0, 0, 1, 1], [], []>} : vector<8x8xbf16>, vector<8x320xbf16>, vector<8x320xf32> -> vector<8x320xf32>
    %32 = arith.addf %27, %31 : vector<8x320xf32>
    %c6 = arith.constant 6 : index
    %c0_21 = arith.constant 0 : index
    %c0_22 = arith.constant 0 : index
    %33 = vector.load %arg2[%c6, %c0_21, %c0_22] : memref<25x8x8xbf16, #tpu.memory_space<vmem>>, vector<1x8x8xbf16>
    %34 = vector.shape_cast %33 : vector<1x8x8xbf16> to vector<8x8xbf16>
    %35 = vector.extract_strided_slice %1 {offsets = [0, 21], sizes = [8, 320], strides = [1, 1]} : vector<8x420xbf16> to vector<8x320xbf16>
    %cst_23 = arith.constant dense<0.000000e+00> : vector<8x320xf32>
    %36 = tpu.matmul %34, %35, %cst_23 {dimension_numbers = #tpu.dot_dimension_numbers<[1], [0], [0], [1], [0, 0, 1, 1], [], []>} : vector<8x8xbf16>, vector<8x320xbf16>, vector<8x320xf32> -> vector<8x320xf32>
    %37 = arith.addf %32, %36 : vector<8x320xf32>
    %c7 = arith.constant 7 : index
    %c0_24 = arith.constant 0 : index
    %c0_25 = arith.constant 0 : index
    %38 = vector.load %arg2[%c7, %c0_24, %c0_25] : memref<25x8x8xbf16, #tpu.memory_space<vmem>>, vector<1x8x8xbf16>
    %39 = vector.shape_cast %38 : vector<1x8x8xbf16> to vector<8x8xbf16>
    %40 = vector.extract_strided_slice %1 {offsets = [0, 22], sizes = [8, 320], strides = [1, 1]} : vector<8x420xbf16> to vector<8x320xbf16>
    %cst_26 = arith.constant dense<0.000000e+00> : vector<8x320xf32>
    %41 = tpu.matmul %39, %40, %cst_26 {dimension_numbers = #tpu.dot_dimension_numbers<[1], [0], [0], [1], [0, 0, 1, 1], [], []>} : vector<8x8xbf16>, vector<8x320xbf16>, vector<8x320xf32> -> vector<8x320xf32>
    %42 = arith.addf %37, %41 : vector<8x320xf32>
    %c8 = arith.constant 8 : index
    %c0_27 = arith.constant 0 : index
    %c0_28 = arith.constant 0 : index
    %43 = vector.load %arg2[%c8, %c0_27, %c0_28] : memref<25x8x8xbf16, #tpu.memory_space<vmem>>, vector<1x8x8xbf16>
    %44 = vector.shape_cast %43 : vector<1x8x8xbf16> to vector<8x8xbf16>
    %45 = vector.extract_strided_slice %1 {offsets = [0, 23], sizes = [8, 320], strides = [1, 1]} : vector<8x420xbf16> to vector<8x320xbf16>
    %cst_29 = arith.constant dense<0.000000e+00> : vector<8x320xf32>
    %46 = tpu.matmul %44, %45, %cst_29 {dimension_numbers = #tpu.dot_dimension_numbers<[1], [0], [0], [1], [0, 0, 1, 1], [], []>} : vector<8x8xbf16>, vector<8x320xbf16>, vector<8x320xf32> -> vector<8x320xf32>
    %47 = arith.addf %42, %46 : vector<8x320xf32>
    %c9 = arith.constant 9 : index
    %c0_30 = arith.constant 0 : index
    %c0_31 = arith.constant 0 : index
    %48 = vector.load %arg2[%c9, %c0_30, %c0_31] : memref<25x8x8xbf16, #tpu.memory_space<vmem>>, vector<1x8x8xbf16>
    %49 = vector.shape_cast %48 : vector<1x8x8xbf16> to vector<8x8xbf16>
    %50 = vector.extract_strided_slice %1 {offsets = [0, 24], sizes = [8, 320], strides = [1, 1]} : vector<8x420xbf16> to vector<8x320xbf16>
    %cst_32 = arith.constant dense<0.000000e+00> : vector<8x320xf32>
    %51 = tpu.matmul %49, %50, %cst_32 {dimension_numbers = #tpu.dot_dimension_numbers<[1], [0], [0], [1], [0, 0, 1, 1], [], []>} : vector<8x8xbf16>, vector<8x320xbf16>, vector<8x320xf32> -> vector<8x320xf32>
    %52 = arith.addf %47, %51 : vector<8x320xf32>
    %c10 = arith.constant 10 : index
    %c0_33 = arith.constant 0 : index
    %c0_34 = arith.constant 0 : index
    %53 = vector.load %arg2[%c10, %c0_33, %c0_34] : memref<25x8x8xbf16, #tpu.memory_space<vmem>>, vector<1x8x8xbf16>
    %54 = vector.shape_cast %53 : vector<1x8x8xbf16> to vector<8x8xbf16>
    %55 = vector.extract_strided_slice %1 {offsets = [0, 40], sizes = [8, 320], strides = [1, 1]} : vector<8x420xbf16> to vector<8x320xbf16>
    %cst_35 = arith.constant dense<0.000000e+00> : vector<8x320xf32>
    %56 = tpu.matmul %54, %55, %cst_35 {dimension_numbers = #tpu.dot_dimension_numbers<[1], [0], [0], [1], [0, 0, 1, 1], [], []>} : vector<8x8xbf16>, vector<8x320xbf16>, vector<8x320xf32> -> vector<8x320xf32>
    %57 = arith.addf %52, %56 : vector<8x320xf32>
    %c11 = arith.constant 11 : index
    %c0_36 = arith.constant 0 : index
    %c0_37 = arith.constant 0 : index
    %58 = vector.load %arg2[%c11, %c0_36, %c0_37] : memref<25x8x8xbf16, #tpu.memory_space<vmem>>, vector<1x8x8xbf16>
    %59 = vector.shape_cast %58 : vector<1x8x8xbf16> to vector<8x8xbf16>
    %60 = vector.extract_strided_slice %1 {offsets = [0, 41], sizes = [8, 320], strides = [1, 1]} : vector<8x420xbf16> to vector<8x320xbf16>
    %cst_38 = arith.constant dense<0.000000e+00> : vector<8x320xf32>
    %61 = tpu.matmul %59, %60, %cst_38 {dimension_numbers = #tpu.dot_dimension_numbers<[1], [0], [0], [1], [0, 0, 1, 1], [], []>} : vector<8x8xbf16>, vector<8x320xbf16>, vector<8x320xf32> -> vector<8x320xf32>
    %62 = arith.addf %57, %61 : vector<8x320xf32>
    %c12 = arith.constant 12 : index
    %c0_39 = arith.constant 0 : index
    %c0_40 = arith.constant 0 : index
    %63 = vector.load %arg2[%c12, %c0_39, %c0_40] : memref<25x8x8xbf16, #tpu.memory_space<vmem>>, vector<1x8x8xbf16>
    %64 = vector.shape_cast %63 : vector<1x8x8xbf16> to vector<8x8xbf16>
    %65 = vector.extract_strided_slice %1 {offsets = [0, 42], sizes = [8, 320], strides = [1, 1]} : vector<8x420xbf16> to vector<8x320xbf16>
    %cst_41 = arith.constant dense<0.000000e+00> : vector<8x320xf32>
    %66 = tpu.matmul %64, %65, %cst_41 {dimension_numbers = #tpu.dot_dimension_numbers<[1], [0], [0], [1], [0, 0, 1, 1], [], []>} : vector<8x8xbf16>, vector<8x320xbf16>, vector<8x320xf32> -> vector<8x320xf32>
    %67 = arith.addf %62, %66 : vector<8x320xf32>
    %c13 = arith.constant 13 : index
    %c0_42 = arith.constant 0 : index
    %c0_43 = arith.constant 0 : index
    %68 = vector.load %arg2[%c13, %c0_42, %c0_43] : memref<25x8x8xbf16, #tpu.memory_space<vmem>>, vector<1x8x8xbf16>
    %69 = vector.shape_cast %68 : vector<1x8x8xbf16> to vector<8x8xbf16>
    %70 = vector.extract_strided_slice %1 {offsets = [0, 43], sizes = [8, 320], strides = [1, 1]} : vector<8x420xbf16> to vector<8x320xbf16>
    %cst_44 = arith.constant dense<0.000000e+00> : vector<8x320xf32>
    %71 = tpu.matmul %69, %70, %cst_44 {dimension_numbers = #tpu.dot_dimension_numbers<[1], [0], [0], [1], [0, 0, 1, 1], [], []>} : vector<8x8xbf16>, vector<8x320xbf16>, vector<8x320xf32> -> vector<8x320xf32>
    %72 = arith.addf %67, %71 : vector<8x320xf32>
    %c14 = arith.constant 14 : index
    %c0_45 = arith.constant 0 : index
    %c0_46 = arith.constant 0 : index
    %73 = vector.load %arg2[%c14, %c0_45, %c0_46] : memref<25x8x8xbf16, #tpu.memory_space<vmem>>, vector<1x8x8xbf16>
    %74 = vector.shape_cast %73 : vector<1x8x8xbf16> to vector<8x8xbf16>
    %75 = vector.extract_strided_slice %1 {offsets = [0, 44], sizes = [8, 320], strides = [1, 1]} : vector<8x420xbf16> to vector<8x320xbf16>
    %cst_47 = arith.constant dense<0.000000e+00> : vector<8x320xf32>
    %76 = tpu.matmul %74, %75, %cst_47 {dimension_numbers = #tpu.dot_dimension_numbers<[1], [0], [0], [1], [0, 0, 1, 1], [], []>} : vector<8x8xbf16>, vector<8x320xbf16>, vector<8x320xf32> -> vector<8x320xf32>
    %77 = arith.addf %72, %76 : vector<8x320xf32>
    %c15 = arith.constant 15 : index
    %c0_48 = arith.constant 0 : index
    %c0_49 = arith.constant 0 : index
    %78 = vector.load %arg2[%c15, %c0_48, %c0_49] : memref<25x8x8xbf16, #tpu.memory_space<vmem>>, vector<1x8x8xbf16>
    %79 = vector.shape_cast %78 : vector<1x8x8xbf16> to vector<8x8xbf16>
    %80 = vector.extract_strided_slice %1 {offsets = [0, 60], sizes = [8, 320], strides = [1, 1]} : vector<8x420xbf16> to vector<8x320xbf16>
    %cst_50 = arith.constant dense<0.000000e+00> : vector<8x320xf32>
    %81 = tpu.matmul %79, %80, %cst_50 {dimension_numbers = #tpu.dot_dimension_numbers<[1], [0], [0], [1], [0, 0, 1, 1], [], []>} : vector<8x8xbf16>, vector<8x320xbf16>, vector<8x320xf32> -> vector<8x320xf32>
    %82 = arith.addf %77, %81 : vector<8x320xf32>
    %c16 = arith.constant 16 : index
    %c0_51 = arith.constant 0 : index
    %c0_52 = arith.constant 0 : index
    %83 = vector.load %arg2[%c16, %c0_51, %c0_52] : memref<25x8x8xbf16, #tpu.memory_space<vmem>>, vector<1x8x8xbf16>
    %84 = vector.shape_cast %83 : vector<1x8x8xbf16> to vector<8x8xbf16>
    %85 = vector.extract_strided_slice %1 {offsets = [0, 61], sizes = [8, 320], strides = [1, 1]} : vector<8x420xbf16> to vector<8x320xbf16>
    %cst_53 = arith.constant dense<0.000000e+00> : vector<8x320xf32>
    %86 = tpu.matmul %84, %85, %cst_53 {dimension_numbers = #tpu.dot_dimension_numbers<[1], [0], [0], [1], [0, 0, 1, 1], [], []>} : vector<8x8xbf16>, vector<8x320xbf16>, vector<8x320xf32> -> vector<8x320xf32>
    %87 = arith.addf %82, %86 : vector<8x320xf32>
    %c17 = arith.constant 17 : index
    %c0_54 = arith.constant 0 : index
    %c0_55 = arith.constant 0 : index
    %88 = vector.load %arg2[%c17, %c0_54, %c0_55] : memref<25x8x8xbf16, #tpu.memory_space<vmem>>, vector<1x8x8xbf16>
    %89 = vector.shape_cast %88 : vector<1x8x8xbf16> to vector<8x8xbf16>
    %90 = vector.extract_strided_slice %1 {offsets = [0, 62], sizes = [8, 320], strides = [1, 1]} : vector<8x420xbf16> to vector<8x320xbf16>
    %cst_56 = arith.constant dense<0.000000e+00> : vector<8x320xf32>
    %91 = tpu.matmul %89, %90, %cst_56 {dimension_numbers = #tpu.dot_dimension_numbers<[1], [0], [0], [1], [0, 0, 1, 1], [], []>} : vector<8x8xbf16>, vector<8x320xbf16>, vector<8x320xf32> -> vector<8x320xf32>
    %92 = arith.addf %87, %91 : vector<8x320xf32>
    %c18 = arith.constant 18 : index
    %c0_57 = arith.constant 0 : index
    %c0_58 = arith.constant 0 : index
    %93 = vector.load %arg2[%c18, %c0_57, %c0_58] : memref<25x8x8xbf16, #tpu.memory_space<vmem>>, vector<1x8x8xbf16>
    %94 = vector.shape_cast %93 : vector<1x8x8xbf16> to vector<8x8xbf16>
    %95 = vector.extract_strided_slice %1 {offsets = [0, 63], sizes = [8, 320], strides = [1, 1]} : vector<8x420xbf16> to vector<8x320xbf16>
    %cst_59 = arith.constant dense<0.000000e+00> : vector<8x320xf32>
    %96 = tpu.matmul %94, %95, %cst_59 {dimension_numbers = #tpu.dot_dimension_numbers<[1], [0], [0], [1], [0, 0, 1, 1], [], []>} : vector<8x8xbf16>, vector<8x320xbf16>, vector<8x320xf32> -> vector<8x320xf32>
    %97 = arith.addf %92, %96 : vector<8x320xf32>
    %c19 = arith.constant 19 : index
    %c0_60 = arith.constant 0 : index
    %c0_61 = arith.constant 0 : index
    %98 = vector.load %arg2[%c19, %c0_60, %c0_61] : memref<25x8x8xbf16, #tpu.memory_space<vmem>>, vector<1x8x8xbf16>
    %99 = vector.shape_cast %98 : vector<1x8x8xbf16> to vector<8x8xbf16>
    %100 = vector.extract_strided_slice %1 {offsets = [0, 64], sizes = [8, 320], strides = [1, 1]} : vector<8x420xbf16> to vector<8x320xbf16>
    %cst_62 = arith.constant dense<0.000000e+00> : vector<8x320xf32>
    %101 = tpu.matmul %99, %100, %cst_62 {dimension_numbers = #tpu.dot_dimension_numbers<[1], [0], [0], [1], [0, 0, 1, 1], [], []>} : vector<8x8xbf16>, vector<8x320xbf16>, vector<8x320xf32> -> vector<8x320xf32>
    %102 = arith.addf %97, %101 : vector<8x320xf32>
    %c20 = arith.constant 20 : index
    %c0_63 = arith.constant 0 : index
    %c0_64 = arith.constant 0 : index
    %103 = vector.load %arg2[%c20, %c0_63, %c0_64] : memref<25x8x8xbf16, #tpu.memory_space<vmem>>, vector<1x8x8xbf16>
    %104 = vector.shape_cast %103 : vector<1x8x8xbf16> to vector<8x8xbf16>
    %105 = vector.extract_strided_slice %1 {offsets = [0, 80], sizes = [8, 320], strides = [1, 1]} : vector<8x420xbf16> to vector<8x320xbf16>
    %cst_65 = arith.constant dense<0.000000e+00> : vector<8x320xf32>
    %106 = tpu.matmul %104, %105, %cst_65 {dimension_numbers = #tpu.dot_dimension_numbers<[1], [0], [0], [1], [0, 0, 1, 1], [], []>} : vector<8x8xbf16>, vector<8x320xbf16>, vector<8x320xf32> -> vector<8x320xf32>
    %107 = arith.addf %102, %106 : vector<8x320xf32>
    %c21 = arith.constant 21 : index
    %c0_66 = arith.constant 0 : index
    %c0_67 = arith.constant 0 : index
    %108 = vector.load %arg2[%c21, %c0_66, %c0_67] : memref<25x8x8xbf16, #tpu.memory_space<vmem>>, vector<1x8x8xbf16>
    %109 = vector.shape_cast %108 : vector<1x8x8xbf16> to vector<8x8xbf16>
    %110 = vector.extract_strided_slice %1 {offsets = [0, 81], sizes = [8, 320], strides = [1, 1]} : vector<8x420xbf16> to vector<8x320xbf16>
    %cst_68 = arith.constant dense<0.000000e+00> : vector<8x320xf32>
    %111 = tpu.matmul %109, %110, %cst_68 {dimension_numbers = #tpu.dot_dimension_numbers<[1], [0], [0], [1], [0, 0, 1, 1], [], []>} : vector<8x8xbf16>, vector<8x320xbf16>, vector<8x320xf32> -> vector<8x320xf32>
    %112 = arith.addf %107, %111 : vector<8x320xf32>
    %c22 = arith.constant 22 : index
    %c0_69 = arith.constant 0 : index
    %c0_70 = arith.constant 0 : index
    %113 = vector.load %arg2[%c22, %c0_69, %c0_70] : memref<25x8x8xbf16, #tpu.memory_space<vmem>>, vector<1x8x8xbf16>
    %114 = vector.shape_cast %113 : vector<1x8x8xbf16> to vector<8x8xbf16>
    %115 = vector.extract_strided_slice %1 {offsets = [0, 82], sizes = [8, 320], strides = [1, 1]} : vector<8x420xbf16> to vector<8x320xbf16>
    %cst_71 = arith.constant dense<0.000000e+00> : vector<8x320xf32>
    %116 = tpu.matmul %114, %115, %cst_71 {dimension_numbers = #tpu.dot_dimension_numbers<[1], [0], [0], [1], [0, 0, 1, 1], [], []>} : vector<8x8xbf16>, vector<8x320xbf16>, vector<8x320xf32> -> vector<8x320xf32>
    %117 = arith.addf %112, %116 : vector<8x320xf32>
    %c23 = arith.constant 23 : index
    %c0_72 = arith.constant 0 : index
    %c0_73 = arith.constant 0 : index
    %118 = vector.load %arg2[%c23, %c0_72, %c0_73] : memref<25x8x8xbf16, #tpu.memory_space<vmem>>, vector<1x8x8xbf16>
    %119 = vector.shape_cast %118 : vector<1x8x8xbf16> to vector<8x8xbf16>
    %120 = vector.extract_strided_slice %1 {offsets = [0, 83], sizes = [8, 320], strides = [1, 1]} : vector<8x420xbf16> to vector<8x320xbf16>
    %cst_74 = arith.constant dense<0.000000e+00> : vector<8x320xf32>
    %121 = tpu.matmul %119, %120, %cst_74 {dimension_numbers = #tpu.dot_dimension_numbers<[1], [0], [0], [1], [0, 0, 1, 1], [], []>} : vector<8x8xbf16>, vector<8x320xbf16>, vector<8x320xf32> -> vector<8x320xf32>
    %122 = arith.addf %117, %121 : vector<8x320xf32>
    %c24 = arith.constant 24 : index
    %c0_75 = arith.constant 0 : index
    %c0_76 = arith.constant 0 : index
    %123 = vector.load %arg2[%c24, %c0_75, %c0_76] : memref<25x8x8xbf16, #tpu.memory_space<vmem>>, vector<1x8x8xbf16>
    %124 = vector.shape_cast %123 : vector<1x8x8xbf16> to vector<8x8xbf16>
    %125 = vector.extract_strided_slice %1 {offsets = [0, 84], sizes = [8, 320], strides = [1, 1]} : vector<8x420xbf16> to vector<8x320xbf16>
    %cst_77 = arith.constant dense<0.000000e+00> : vector<8x320xf32>
    %126 = tpu.matmul %124, %125, %cst_77 {dimension_numbers = #tpu.dot_dimension_numbers<[1], [0], [0], [1], [0, 0, 1, 1], [], []>} : vector<8x8xbf16>, vector<8x320xbf16>, vector<8x320xf32> -> vector<8x320xf32>
    %127 = arith.addf %122, %126 : vector<8x320xf32>
    %c0_78 = arith.constant 0 : index
    %c0_79 = arith.constant 0 : index
    %128 = vector.load %arg3[%c0_78, %c0_79] : memref<8x1xf32, #tpu.memory_space<vmem>>, vector<8x1xf32>
    %129 = vector.broadcast %128 : vector<8x1xf32> to vector<8x320xf32>
    %130 = arith.addf %127, %129 : vector<8x320xf32>
    %c0_80 = arith.constant 0 : index
    %c0_81 = arith.constant 0 : index
    %c0_82 = arith.constant 0 : index
    %131 = vector.load %arg4[%c0_80, %c0_81, %c0_82] : memref<1x8x320xf32, #tpu.memory_space<vmem>>, vector<1x8x320xf32>
    %132 = vector.shape_cast %131 : vector<1x8x320xf32> to vector<8x320xf32>
    %133 = vector.shape_cast %130 : vector<8x320xf32> to vector<1x8x320xf32>
    tpu.vector_store %arg4[%c0_80, %c0_81, %c0_82], %133 {strides = array<i32>} : memref<1x8x320xf32, #tpu.memory_space<vmem>>, vector<1x8x320xf32>,
    return
  }
  func.func @transform_0(%arg0: i32) -> (i32, i32, i32) {
    %c0_i32 = arith.constant 0 : i32
    %c0_i32_0 = arith.constant 0 : i32
    %c0_i32_1 = arith.constant 0 : i32
    return %arg0, %c0_i32, %c0_i32_0 : i32, i32, i32
  }
  func.func @transform_1(%arg0: i32) -> (i32, i32, i32) {
    %c0_i32 = arith.constant 0 : i32
    %c0_i32_0 = arith.constant 0 : i32
    %c0_i32_1 = arith.constant 0 : i32
    %c0_i32_2 = arith.constant 0 : i32
    return %c0_i32, %c0_i32_0, %c0_i32_1 : i32, i32, i32
  }
  func.func @transform_2(%arg0: i32) -> (i32, i32) {
    %c0_i32 = arith.constant 0 : i32
    %c0_i32_0 = arith.constant 0 : i32
    %c0_i32_1 = arith.constant 0 : i32
    return %c0_i32, %c0_i32_0 : i32, i32
  }
  func.func @transform_3(%arg0: i32) -> (i32, i32, i32) {
    %c0_i32 = arith.constant 0 : i32
    %c0_i32_0 = arith.constant 0 : i32
    %c0_i32_1 = arith.constant 0 : i32
    return %arg0, %c0_i32, %c0_i32_0 : i32, i32, i32
  }
}

</mosaic_0001>

<bundles_post_ra>
// kernel: _lambda_.8
= control target key start
LH: loop header
LB: loop body
LE: loop exit
PB: predicated region body
PF: predicated region fallthrough
CT: control target
= control target key end

     0   :  { %8 = vsyncpa [#allocation3], 0  ;;  %s159_s15 = smov [#allocation2]   ;;  %s160_s17 = smov 128   ;;  %s194_s0 = inlined_call_operand.vmem [shape: bf16[2,32], index: 0, kind: input, shape index: {}]   ;;  %s195_s1 = inlined_call_operand.hbm [shape: bf16[32,256], index: 1, kind: input, shape index: {}]   ;;  %s196_s2 = inlined_call_operand.vmem [shape: f32[1,256], index: 2, kind: input, shape index: {}]   ;;  %s197_s3 = inlined_call_operand.vmem [shape: bf16[2,256], index: 3, kind: output, shape index: {}]  }
   0x1   :  { %s15_s14 = sshll.u32 %s195_s1, 4  ;;  %s17_s16 = sshll.u32 %s159_s15, 4  ;;  %s16_s14 = int_to_ptr.hbm [resolvable:$true] %s15_s14  ;;  %s18_s16 = int_to_ptr.vmem [resolvable:$true] %s17_s16 }
   0x2   :  { %s161_s18 = smov 8  }
   0x3   :  { %23 = dma.hbm_to_vmem [thread:$0]  %s16_s14, 512, %s18_s16, [#allocation3], %s160_s17, %s160_s17, %s161_s18  }
   0x4   :  { %157 = dma.done.wait [#allocation3], 512  }
   0x5   :  { %158 = vsyncadd [#allocation3], 4294966784  ;;  %v118_v0 = vld [vmem:[#allocation2 + $0x10] sm:$0xf]  ;;  %v129_v1 = vld [vmem:[#allocation2 + $0x14] sm:$0xf0] }
   0x6   :  { %v128_v2 = vld [vmem:[#allocation2 + $0x14] sm:$0xf]  ;;  %v119_v3 = vor.u32 %v129_v1, %v118_v0  ;;  %v120_v4 = vld [vmem:[#allocation2 + $0x18] sm:$0xf0]  ;;  %v110_v5 = vld [vmem:[#allocation2] sm:$0xf] }
   0x7   :  { %v127_v6 = vld [vmem:[#allocation2 + $0x4] sm:$0xf0]  ;;  %v123_v7 = vor.u32 %v128_v2, %v120_v4  ;;  %v126_v8 = vld [vmem:[#allocation2 + $0x4] sm:$0xf]  ;;  %v112_v9 = vld [vmem:[#allocation2 + $0x8] sm:$0xf0] }
   0x8   :  { %72 = vmatpush.bf16.msra.mxu0 %v119_v3  ;;  %v111_v10 = vor.u32 %v127_v6, %v110_v5  ;;  %v115_v11 = vor.u32 %v126_v8, %v112_v9  ;;  %v31_v12 = vld [vmem:[%s194_s0] sm:$0x1]  ;;  %vm62_vm0 = vcmask 261120   ;;  %vm97_vm1 = vcmask 1040384  }
   0x9   :  { %85 = vmatpush.bf16.msra.mxu1 %v123_v7  ;;  %v36_v13 = vld [vmem:[%s196_s2] sm:$0x3] }
   0xa   :  { %v38_v14 = vperm.slane %v36_v13, 0  ;;  %v39_v15 = vperm.slane %v36_v13, 1 }
   0xc   :  { %73 = vmatpush.bf16.msra.mxu0 %v111_v10 }
   0xd   :  { %86 = vmatpush.bf16.msra.mxu1 %v115_v11 }
   0xf   :  { %124 = vmatmul.msk.bf16.vlgmr.msra.gmra.mxu0 %vm62_vm0, %v31_v12 }
  0x10   :  { %125 = vmatmul.msk.bf16.vlgmr.msra.gmra.mxu1 %vm62_vm0, %v31_v12 }
  0x8c   :  { %v75_v16 = vpop.f32.mrf.mxu0 }
  0x8d   :  { %v76_v17 = vadd.f32 %v75_v16, %v38_v14  ;;  %v88_v18 = vpop.f32.mrf.mxu1 }
  0x8e   :  { %v89_v19 = vadd.f32 %v88_v18, %v39_v15 }
  0x8f   :  { %v92_v20 = vmax.f32 %v76_v17, 0.0 }
  0x90   :  { %v93_v21 = vmax.f32 %v89_v19, 0.0 }
  0x92   :  { %v94_v22 = vpack.c.bf16 %v93_v21, %v92_v20 }
  0x94   :  { %v96_v23 = vrot.slane %v94_v22, 3  ;;  %v77_v24 = vpop.f32.mrf.mxu0 }
  0x95   :  { %v90_v25 = vpop.f32.mrf.mxu1 }
  0x96   :  { %v100_v26 = vsel %vm97_vm1, %v94_v22, %v96_v23 }
  0x97   :  { %102 = vst [vmem:[%s197_s3] sm:$0x3] %v100_v26 }
  0x98   :  { %107 = vsyncpa [#allocation3], 1 }

// kernel: _lambda_.9
= control target key start
LH: loop header
LB: loop body
LE: loop exit
PB: predicated region body
PF: predicated region fallthrough
CT: control target
= control target key end

     0   :  { %s667_s12 = smov 0   ;;  %s733_s0 = inlined_call_operand.vmem [shape: bf16[2,16,42], index: 0, kind: input, shape index: {}]   ;;  %s734_s1 = inlined_call_operand.vmem [shape: bf16[9,16,16], index: 1, kind: input, shape index: {}]   ;;  %s735_s2 = inlined_call_operand.vmem [shape: f32[16,1], index: 2, kind: input, shape index: {}]   ;;  %s736_s3 = inlined_call_operand.vmem [shape: bf16[2,16,24], index: 3, kind: output, shape index: {}]  }
   0x1 LB: > { %s523_s13 = sadd.s32 4294967295, %s636_s12   ;;  %p527_p0 = scmp.ge.s32.totalorder %s636_s12, 1  ;;  %s636_s12 = sphi %s667_s12, %s13_s12  }
   0x2   : > { %p137_p1 = scmp.lt.s32.totalorder %s636_s12, 3 }
   0x4   : > { %p138_p2 = pnand %p527_p0, %p137_p1 }
   0x5   : > { %p161_p3 = scmp.lt.s32.totalorder (!%p138_p2), %s523_s13, 1  ;;  %s638_s18 = smov (!%p138_p2), 122  }
   0x6   : > { %141 = sbr.rel (%p138_p2) target bundleno = 311 (0x137), region = 32  ;;  %s639_s19 = smov (!%p138_p2), 127  }
   0x7   : > { %s640_s20 = smov (!%p138_p2), 116   ;;  %s641_s21 = smov (!%p138_p2), 121  }
   0x8   : > { %s642_s22 = smov (!%p138_p2), 126   ;;  %s643_s23 = smov (!%p138_p2), 115  }
   0x9   : > { %s644_s24 = smov (!%p138_p2), 120   ;;  %s645_s25 = smov (!%p138_p2), 114  }
   0xb   : > { %s738_s13 = smov (!%p161_p3, %s523_s13), 1  ;;  %vm192_vm0 = vcmask 130048   ;;  %v602_v1 = vld [vmem:[%s734_s1] sm:$0xff]  ;;  %v603_v6 = vld [vmem:[%s734_s1 + $0x8] sm:$0xff]  ;;  %v605_v7 = vld [vmem:[%s734_s1 + $0x18] sm:$0xff]  ;;  %v646_v10 = vmov 0  }
   0xc   : > { %s599_s14 = sshll.u32 %s738_s13, 3  ;;  %v444_v8 = vld [vmem:[%s735_s2 + $0x8] sm:$0xff]  ;;  %v443_v9 = vld [vmem:[%s735_s2] sm:$0xff]  ;;  %629 = vset.pattern.permute.xlu0 %v646_v10  ;;  %628 = vset.pattern.permute.xlu2 %v646_v10  ;;  %v604_v13 = vld [vmem:[%s734_s1 + $0x10] sm:$0xff]  ;;  %vm465_vm2 = vcmask 191488  }
   0xd   : > { %s165_s17 = scalar_lea.vmem %s733_s0, %s599_s14  ;;  %v606_v15 = vld [vmem:[%s734_s1 + $0x20] sm:$0xff]  ;;  %v607_v17 = vld [vmem:[%s734_s1 + $0x28] sm:$0xff]  ;;  %v609_v18 = vld [vmem:[%s734_s1 + $0x38] sm:$0xff]  ;;  %s170_s26 = scalar_lea.vmem %s736_s3, %s599_s14 }
   0xe   : > { %v601_v0 = vld [vmem:[%s165_s17] sm:$0xff]  ;;  %v608_v19 = vld [vmem:[%s734_s1 + $0x30] sm:$0xff] }
   0xf   : > { %271 = vrot.lane.b32.xlu1 %v601_v0, %s638_s18  ;;  %189 = vrot.lane.b32.xlu0 %v601_v0, %s639_s19  ;;  %v610_v20 = vld [vmem:[%s734_s1 + $0x40] sm:$0xff] }
  0x10   : > { %361 = vrot.lane.b32.xlu2 %v601_v0, %s640_s20  ;;  %226 = vmatpush.bf16.msra.mxu1 %v601_v0 }
  0x13   : > { %547 = vmatmul.msk.bf16.vlgmr.msra.gmra.mxu1 %vm192_vm0, %v602_v1 }
  0x17   : > { %301 = vrot.lane.b32.xlu1 %v601_v0, %s641_s21  ;;  %241 = vrot.lane.b32.xlu0 %v601_v0, %s642_s22 }
  0x18   : > { %391 = vrot.lane.b32.xlu2 %v601_v0, %s643_s23 }
  0x1f   : > { %331 = vrot.lane.b32.xlu0 %v601_v0, %s644_s24  ;;  %421 = vrot.lane.b32.xlu1 %v601_v0, %s645_s25 }
  0x20   : > { %447 = vperm.xlu2 %628, %v443_v9  }
  0x27   : > { %452 = vperm.xlu0 %629, %v444_v8  }
  0x6a   : > { %v362_v2 = vpop.permute.xlu2 %361 }
  0x72   : > { %v392_v3 = vpop.permute.xlu2 %391 }
  0x7a   : > { %v448_v47 = vpop.permute.xlu2 %447 }
  0x81   : > { %v272_v4 = vpop.permute.xlu1 %271  ;;  %v190_v5 = vpop.permute.xlu0 %189 }
  0x82   : > { %203 = vmatpush.bf16.msra.mxu0 %v190_v5  ;;  %284 = vmatpush.bf16.msra.mxu3 %v272_v4 }
  0x85   : > { %542 = vmatmul.msk.bf16.vlgmr.msra.gmra.mxu0 %vm192_vm0, %v603_v6  ;;  %561 = vmatmul.msk.bf16.vlgmr.msra.gmra.mxu3 %vm192_vm0, %v605_v7 }
  0x86   : > { %404 = vmatpush.bf16.msrb.mxu3 %v392_v3 }
  0x89   : > { %v302_v11 = vpop.permute.xlu1 %301  ;;  %v242_v12 = vpop.permute.xlu0 %241 }
  0x8a   : > { %254 = vmatpush.bf16.msra.mxu2 %v242_v12  ;;  %314 = vmatpush.bf16.msrb.mxu0 %v302_v11 }
  0x8d   : > { %554 = vmatmul.msk.bf16.vlgmr.msra.gmra.mxu2 %vm192_vm0, %v604_v13 }
  0x8e   : > { %374 = vmatpush.bf16.msrb.mxu2 %v362_v2 }
  0x90   : > { %v228_v22 = vpop.f32.mrf.mxu1 }
  0x91   : > { %v332_v14 = vpop.permute.xlu0 %331  ;;  %v422_v16 = vpop.permute.xlu1 %421 }
  0x92   : > { %344 = vmatpush.bf16.msrb.mxu1 %v332_v14  ;;  %434 = vmatpush.bf16.msra.mxu0 %v422_v16 }
  0x95   : > { %568 = vmatmul.msk.bf16.vlgmr.msrb.gmra.mxu0 %vm192_vm0, %v606_v15  ;;  %575 = vmatmul.msk.bf16.vlgmr.msrb.gmra.mxu1 %vm192_vm0, %v607_v17 }
  0x96   : > { %589 = vmatmul.msk.bf16.vlgmr.msrb.gmra.mxu3 %vm192_vm0, %v609_v18 }
  0x98   : > { %v230_v27 = vpop.f32.mrf.mxu1 }
  0x99   : > { %v453_v59 = vpop.permute.xlu0 %452 }
  0x9d   : > { %582 = vmatmul.msk.bf16.vlgmr.msrb.gmra.mxu2 %vm192_vm0, %v608_v19 }
  0xa5   : > { %596 = vmatmul.msk.bf16.vlgmr.msra.gmra.mxu0 %vm192_vm0, %v610_v20 }
 0x102   : > { %v205_v21 = vpop.f32.mrf.mxu0 }
 0x103   : > { %v229_v26 = vadd.f32 %v228_v22, %v205_v21 }
 0x108   : > { %v286_v24 = vpop.f32.mrf.mxu3 }
 0x10a   : > { %v207_v23 = vpop.f32.mrf.mxu0 }
 0x10b   : > { %v231_v33 = vadd.f32 %v230_v27, %v207_v23 }
 0x110   : > { %v256_v25 = vpop.f32.mrf.mxu2  ;;  %v288_v30 = vpop.f32.mrf.mxu3 }
 0x111   : > { %v261_v29 = vadd.f32 %v256_v25, %v229_v26 }
 0x112   : > { %v316_v28 = vpop.f32.mrf.mxu0  ;;  %v346_v34 = vpop.f32.mrf.mxu1 }
 0x113   : > { %v291_v31 = vadd.f32 %v286_v24, %v261_v29 }
 0x115   : > { %v321_v36 = vadd.f32 %v316_v28, %v291_v31 }
 0x117   : > { %v351_v38 = vadd.f32 %v346_v34, %v321_v36 }
 0x118   : > { %v258_v32 = vpop.f32.mrf.mxu2 }
 0x119   : > { %v262_v37 = vadd.f32 %v258_v32, %v231_v33  ;;  %v406_v40 = vpop.f32.mrf.mxu3 }
 0x11a   : > { %v318_v35 = vpop.f32.mrf.mxu0  ;;  %v348_v46 = vpop.f32.mrf.mxu1 }
 0x11b   : > { %v292_v39 = vadd.f32 %v288_v30, %v262_v37 }
 0x11d   : > { %v322_v44 = vadd.f32 %v318_v35, %v292_v39 }
 0x11f   : > { %v352_v49 = vadd.f32 %v348_v46, %v322_v44 }
 0x120   : > { %v376_v41 = vpop.f32.mrf.mxu2 }
 0x121   : > { %v381_v42 = vadd.f32 %v376_v41, %v351_v38  ;;  %v408_v54 = vpop.f32.mrf.mxu3 }
 0x122   : > { %v436_v43 = vpop.f32.mrf.mxu0 }
 0x123   : > { %v411_v45 = vadd.f32 %v406_v40, %v381_v42 }
 0x125   : > { %v441_v48 = vadd.f32 %v436_v43, %v411_v45 }
 0x127   : > { %v455_v50 = vadd.f32 %v448_v47, %v441_v48 }
 0x128   : > { %v378_v51 = vpop.f32.mrf.mxu2 }
 0x129   : > { %vm457_vm1 = vcmp.ge.f32.partialorder %v455_v50, 0.0  ;;  %v459_v52 = vmul.f32 0.2, %v455_v50  ;;  %v382_v53 = vadd.f32 %v378_v51, %v352_v49 }
 0x12a   : > { %v438_v58 = vpop.f32.mrf.mxu0 }
 0x12b   : > { %v461_v55 = vsel %vm457_vm1, %v455_v50, %v459_v52  ;;  %v412_v56 = vadd.f32 %v408_v54, %v382_v53 }
 0x12c   : > { %v463_v57 = vpack.c.bf16 %v461_v55, %v461_v55 }
 0x12d   : > { %v442_v60 = vadd.f32 %v438_v58, %v412_v56 }
 0x12e   : > { %466 = vst.msk [vmem:[%s170_s26] sm:$0xf] %vm465_vm2, %v463_v57 }
 0x12f   : > { %v456_v61 = vadd.f32 %v453_v59, %v442_v60 }
 0x131   : > { %vm458_vm3 = vcmp.ge.f32.partialorder %v456_v61, 0.0  ;;  %v460_v62 = vmul.f32 0.2, %v456_v61 }
 0x133   : > { %v462_v63 = vsel %vm458_vm3, %v456_v61, %v460_v62 }
 0x134   : > { %v464_v0 = vpack.c.bf16 %v462_v63, %v462_v63 }
 0x136   : > { %467 = vst.msk [vmem:[%s170_s26 + $0x4] sm:$0xf] %vm465_vm2, %v464_v0 }
 0x137 PF: > { %s13_s12 = sadd.s32 1, %s636_s12  }
 0x138   : > { %p10_p4 = scmp.ge.s32.totalorder %s13_s12, 4  }
 0x13a   :  { %12 = sbr.rel (!%p10_p4) target bundleno = 1 (0x1), region = 70 }

// kernel: _lambda_.10
= control target key start
LH: loop header
LB: loop body
LE: loop exit
PB: predicated region body
PF: predicated region fallthrough
CT: control target
= control target key end

     0   :  { %s744_s15 = smov 0   ;;  %s811_s0 = inlined_call_operand.vmem [shape: bf16[2,16,42], index: 0, kind: input, shape index: {}]   ;;  %s812_s1 = inlined_call_operand.vmem [shape: bf16[9,16,16], index: 1, kind: input, shape index: {}]   ;;  %s813_s2 = inlined_call_operand.vmem [shape: f32[16,1], index: 2, kind: input, shape index: {}]   ;;  %s814_s3 = inlined_call_operand.vmem [shape: bf16[2,16,24], index: 3, kind: input, shape index: {}]   ;;  %s815_s4 = inlined_call_operand.vmem [shape: bf16[2,16,24], index: 4, kind: output, shape index: {}]  }
   0x1 LB: > { %s588_s16 = sadd.s32 4294967295, %s708_s15   ;;  %p592_p0 = scmp.ge.s32.totalorder %s708_s15, 1  ;;  %s708_s15 = sphi %s744_s15, %s14_s15  }
   0x2   : > { %p172_p1 = scmp.lt.s32.totalorder %s708_s15, 3 }
   0x4   : > { %p173_p2 = pnand %p592_p0, %p172_p1 }
   0x5   : > { %p203_p3 = scmp.lt.s32.totalorder (!%p173_p2), %s588_s16, 1  ;;  %s710_s21 = smov (!%p173_p2), 122  }
   0x6   : > { %176 = sbr.rel (%p173_p2) target bundleno = 313 (0x139), region = 36  ;;  %s711_s22 = smov (!%p173_p2), 127  }
   0x7   : > { %s712_s23 = smov (!%p173_p2), 116   ;;  %s713_s24 = smov (!%p173_p2), 121  }
   0x8   : > { %s714_s25 = smov (!%p173_p2), 126   ;;  %s715_s26 = smov (!%p173_p2), 115  }
   0x9   : > { %s716_s27 = smov (!%p173_p2), 120   ;;  %s717_s28 = smov (!%p173_p2), 114  }
   0xb   : > { %s817_s16 = smov (!%p203_p3, %s588_s16), 1  ;;  %vm239_vm0 = vcmask 130048   ;;  %v670_v1 = vld [vmem:[%s812_s1] sm:$0xff]  ;;  %v671_v6 = vld [vmem:[%s812_s1 + $0x8] sm:$0xff]  ;;  %v673_v7 = vld [vmem:[%s812_s1 + $0x18] sm:$0xff]  ;;  %v718_v10 = vmov 0  }
   0xc   : > { %s752_s17 = sshll.u32 %s817_s16, 3  ;;  %v491_v8 = vld [vmem:[%s813_s2 + $0x8] sm:$0xff]  ;;  %v490_v9 = vld [vmem:[%s813_s2] sm:$0xff]  ;;  %701 = vset.pattern.permute.xlu0 %v718_v10  ;;  %700 = vset.pattern.permute.xlu2 %v718_v10  ;;  %v672_v13 = vld [vmem:[%s812_s1 + $0x10] sm:$0xff]  ;;  %vm518_vm2 = vcmask 191488  }
   0xd   : > { %s207_s20 = scalar_lea.vmem %s811_s0, %s752_s17  ;;  %v674_v15 = vld [vmem:[%s812_s1 + $0x20] sm:$0xff]  ;;  %v675_v17 = vld [vmem:[%s812_s1 + $0x28] sm:$0xff]  ;;  %v677_v18 = vld [vmem:[%s812_s1 + $0x38] sm:$0xff]  ;;  %s212_s29 = scalar_lea.vmem %s814_s3, %s752_s17 }
   0xe   : > { %v669_v0 = vld [vmem:[%s207_s20] sm:$0xff]  ;;  %v676_v19 = vld [vmem:[%s812_s1 + $0x30] sm:$0xff]  ;;  %s217_s6 = scalar_lea.vmem %s815_s4, %s752_s17 }
   0xf   : > { %318 = vrot.lane.b32.xlu1 %v669_v0, %s710_s21  ;;  %236 = vrot.lane.b32.xlu0 %v669_v0, %s711_s22  ;;  %v678_v20 = vld [vmem:[%s812_s1 + $0x40] sm:$0xff] }
  0x10   : > { %408 = vrot.lane.b32.xlu2 %v669_v0, %s712_s23  ;;  %273 = vmatpush.bf16.msra.mxu1 %v669_v0  ;;  %v680_v44 = vld [vmem:[%s212_s29] sm:$0xff]  }
  0x11   : > { %v681_v50 = vunpack.c.l.bf16 %v680_v44  ;;  %v682_v63 = vunpack.c.h.bf16 %v680_v44 }
  0x13   : > { %614 = vmatmul.msk.bf16.vlgmr.msra.gmra.mxu1 %vm239_vm0, %v670_v1 }
  0x17   : > { %348 = vrot.lane.b32.xlu1 %v669_v0, %s713_s24  ;;  %288 = vrot.lane.b32.xlu0 %v669_v0, %s714_s25 }
  0x18   : > { %438 = vrot.lane.b32.xlu2 %v669_v0, %s715_s26 }
  0x1f   : > { %378 = vrot.lane.b32.xlu0 %v669_v0, %s716_s27  ;;  %468 = vrot.lane.b32.xlu1 %v669_v0, %s717_s28 }
  0x20   : > { %494 = vperm.xlu2 %700, %v490_v9  }
  0x27   : > { %499 = vperm.xlu0 %701, %v491_v8  }
  0x6a   : > { %v409_v2 = vpop.permute.xlu2 %408 }
  0x72   : > { %v439_v3 = vpop.permute.xlu2 %438 }
  0x7a   : > { %v495_v48 = vpop.permute.xlu2 %494 }
  0x81   : > { %v319_v4 = vpop.permute.xlu1 %318  ;;  %v237_v5 = vpop.permute.xlu0 %236 }
  0x82   : > { %250 = vmatpush.bf16.msra.mxu0 %v237_v5  ;;  %331 = vmatpush.bf16.msra.mxu3 %v319_v4 }
  0x85   : > { %609 = vmatmul.msk.bf16.vlgmr.msra.gmra.mxu0 %vm239_vm0, %v671_v6  ;;  %628 = vmatmul.msk.bf16.vlgmr.msra.gmra.mxu3 %vm239_vm0, %v673_v7 }
  0x86   : > { %451 = vmatpush.bf16.msrb.mxu3 %v439_v3 }
  0x89   : > { %v349_v11 = vpop.permute.xlu1 %348  ;;  %v289_v12 = vpop.permute.xlu0 %288 }
  0x8a   : > { %301 = vmatpush.bf16.msra.mxu2 %v289_v12  ;;  %361 = vmatpush.bf16.msrb.mxu0 %v349_v11 }
  0x8d   : > { %621 = vmatmul.msk.bf16.vlgmr.msra.gmra.mxu2 %vm239_vm0, %v672_v13 }
  0x8e   : > { %421 = vmatpush.bf16.msrb.mxu2 %v409_v2 }
  0x90   : > { %v275_v22 = vpop.f32.mrf.mxu1 }
  0x91   : > { %v379_v14 = vpop.permute.xlu0 %378  ;;  %v469_v16 = vpop.permute.xlu1 %468 }
  0x92   : > { %391 = vmatpush.bf16.msrb.mxu1 %v379_v14  ;;  %481 = vmatpush.bf16.msra.mxu0 %v469_v16 }
  0x95   : > { %635 = vmatmul.msk.bf16.vlgmr.msrb.gmra.mxu0 %vm239_vm0, %v674_v15  ;;  %642 = vmatmul.msk.bf16.vlgmr.msrb.gmra.mxu1 %vm239_vm0, %v675_v17 }
  0x96   : > { %656 = vmatmul.msk.bf16.vlgmr.msrb.gmra.mxu3 %vm239_vm0, %v677_v18 }
  0x98   : > { %v277_v27 = vpop.f32.mrf.mxu1 }
  0x99   : > { %v500_v60 = vpop.permute.xlu0 %499 }
  0x9d   : > { %649 = vmatmul.msk.bf16.vlgmr.msrb.gmra.mxu2 %vm239_vm0, %v676_v19 }
  0xa5   : > { %663 = vmatmul.msk.bf16.vlgmr.msra.gmra.mxu0 %vm239_vm0, %v678_v20 }
 0x102   : > { %v252_v21 = vpop.f32.mrf.mxu0 }
 0x103   : > { %v276_v26 = vadd.f32 %v275_v22, %v252_v21 }
 0x108   : > { %v333_v24 = vpop.f32.mrf.mxu3 }
 0x10a   : > { %v254_v23 = vpop.f32.mrf.mxu0 }
 0x10b   : > { %v278_v33 = vadd.f32 %v277_v27, %v254_v23 }
 0x110   : > { %v303_v25 = vpop.f32.mrf.mxu2  ;;  %v335_v30 = vpop.f32.mrf.mxu3 }
 0x111   : > { %v308_v29 = vadd.f32 %v303_v25, %v276_v26 }
 0x112   : > { %v363_v28 = vpop.f32.mrf.mxu0  ;;  %v393_v34 = vpop.f32.mrf.mxu1 }
 0x113   : > { %v338_v31 = vadd.f32 %v333_v24, %v308_v29 }
 0x115   : > { %v368_v36 = vadd.f32 %v363_v28, %v338_v31 }
 0x117   : > { %v398_v38 = vadd.f32 %v393_v34, %v368_v36 }
 0x118   : > { %v305_v32 = vpop.f32.mrf.mxu2 }
 0x119   : > { %v309_v37 = vadd.f32 %v305_v32, %v278_v33  ;;  %v453_v40 = vpop.f32.mrf.mxu3 }
 0x11a   : > { %v365_v35 = vpop.f32.mrf.mxu0  ;;  %v395_v47 = vpop.f32.mrf.mxu1 }
 0x11b   : > { %v339_v39 = vadd.f32 %v335_v30, %v309_v37 }
 0x11d   : > { %v369_v45 = vadd.f32 %v365_v35, %v339_v39 }
 0x11f   : > { %v399_v51 = vadd.f32 %v395_v47, %v369_v45 }
 0x120   : > { %v423_v41 = vpop.f32.mrf.mxu2 }
 0x121   : > { %v428_v42 = vadd.f32 %v423_v41, %v398_v38  ;;  %v455_v56 = vpop.f32.mrf.mxu3 }
 0x122   : > { %v483_v43 = vpop.f32.mrf.mxu0 }
 0x123   : > { %v458_v46 = vadd.f32 %v453_v40, %v428_v42 }
 0x125   : > { %v488_v49 = vadd.f32 %v483_v43, %v458_v46 }
 0x127   : > { %v502_v52 = vadd.f32 %v495_v48, %v488_v49 }
 0x128   : > { %v425_v53 = vpop.f32.mrf.mxu2 }
 0x129   : > { %v508_v54 = vadd.f32 %v681_v50, %v502_v52  ;;  %v429_v55 = vadd.f32 %v425_v53, %v399_v51 }
 0x12a   : > { %v485_v59 = vpop.f32.mrf.mxu0 }
 0x12b   : > { %vm510_vm1 = vcmp.ge.f32.partialorder %v508_v54, 0.0  ;;  %v512_v57 = vmul.f32 0.2, %v508_v54  ;;  %v459_v58 = vadd.f32 %v455_v56, %v429_v55 }
 0x12d   : > { %v514_v61 = vsel %vm510_vm1, %v508_v54, %v512_v57  ;;  %v489_v62 = vadd.f32 %v485_v59, %v459_v58 }
 0x12e   : > { %v516_v0 = vpack.c.bf16 %v514_v61, %v514_v61 }
 0x12f   : > { %v503_v1 = vadd.f32 %v500_v60, %v489_v62 }
 0x130   : > { %519 = vst.msk [vmem:[%s217_s6] sm:$0xf] %vm518_vm2, %v516_v0 }
 0x131   : > { %v509_v2 = vadd.f32 %v682_v63, %v503_v1 }
 0x133   : > { %vm511_vm3 = vcmp.ge.f32.partialorder %v509_v2, 0.0  ;;  %v513_v3 = vmul.f32 0.2, %v509_v2 }
 0x135   : > { %v515_v4 = vsel %vm511_vm3, %v509_v2, %v513_v3 }
 0x136   : > { %v517_v5 = vpack.c.bf16 %v515_v4, %v515_v4 }
 0x138   : > { %520 = vst.msk [vmem:[%s217_s6 + $0x4] sm:$0xf] %vm518_vm2, %v517_v5 }
 0x139 PF: > { %s14_s15 = sadd.s32 1, %s708_s15  }
 0x13a   : > { %p11_p4 = scmp.ge.s32.totalorder %s14_s15, 4  }
 0x13c   :  { %13 = sbr.rel (!%p11_p4) target bundleno = 1 (0x1), region = 77 }

// kernel: _lambda_.11
= control target key start
LH: loop header
LB: loop body
LE: loop exit
PB: predicated region body
PF: predicated region fallthrough
CT: control target
= control target key end

     0   :  { %s526_s12 = smov 0   ;;  %s586_s0 = inlined_call_operand.vmem [shape: bf16[2,16,110], index: 0, kind: input, shape index: {}]   ;;  %s587_s1 = inlined_call_operand.vmem [shape: bf16[9,8,16], index: 1, kind: input, shape index: {}]   ;;  %s588_s2 = inlined_call_operand.vmem [shape: f32[8,1], index: 2, kind: input, shape index: {}]   ;;  %s589_s3 = inlined_call_operand.vmem [shape: bf16[2,8,80], index: 3, kind: output, shape index: {}]  }
   0x1 LB: > { %s437_s13 = sadd.s32 4294967295, %s495_s12   ;;  %p441_p0 = scmp.ge.s32.totalorder %s495_s12, 1  ;;  %s495_s12 = sphi %s526_s12, %s13_s12  }
   0x2   : > { %p137_p1 = scmp.lt.s32.totalorder %s495_s12, 3 }
   0x4   : > { %p138_p2 = pnand %p441_p0, %p137_p1 }
   0x5   : > { %p160_p3 = scmp.lt.s32.totalorder (!%p138_p2), %s437_s13, 1  ;;  %s497_s18 = smov (!%p138_p2), 118  }
   0x6   : > { %141 = sbr.rel (%p138_p2) target bundleno = 303 (0x12f), region = 32  ;;  %s498_s19 = smov (!%p138_p2), 127  }
   0x7   : > { %s499_s20 = smov (!%p138_p2), 108   ;;  %s500_s21 = smov (!%p138_p2), 117  }
   0x8   : > { %s501_s22 = smov (!%p138_p2), 126   ;;  %s502_s23 = smov (!%p138_p2), 107  }
   0x9   : > { %s503_s24 = smov (!%p138_p2), 116   ;;  %s504_s25 = smov (!%p138_p2), 106  }
   0xb   : > { %s591_s13 = smov (!%p160_p3, %s437_s13), 1  ;;  %vm183_vm0 = vcmask 130048   ;;  %v172_v1 = vld [vmem:[%s587_s1] sm:$0xf]  ;;  %v445_v6 = vld [vmem:[%s587_s1 + $0x4] sm:$0xf] }
   0xc   : > { %s468_s14 = sshll.u32 %s591_s13, 3  ;;  %v454_v7 = vld [vmem:[%s587_s1 + $0xc] sm:$0xf]  ;;  %v371_v8 = vld [vmem:[%s588_s2] sm:$0xff]  ;;  %v505_v9 = vmov 0   ;;  %vm382_vm2 = vcmask 650240  }
   0xd   : > { %s164_s17 = scalar_lea.vmem %s586_s0, %s468_s14  ;;  %487 = vset.pattern.permute.xlu2 %v505_v9  ;;  %488 = vset.pattern.permute.xlu0 %v505_v9  ;;  %v452_v12 = vld [vmem:[%s587_s1 + $0x8] sm:$0xf]  ;;  %v456_v15 = vld [vmem:[%s587_s1 + $0x10] sm:$0xf]  ;;  %v458_v16 = vld [vmem:[%s587_s1 + $0x14] sm:$0xf] }
   0xe   : > { %v469_v0 = vld [vmem:[%s164_s17] sm:$0xff]  ;;  %v462_v17 = vld [vmem:[%s587_s1 + $0x1c] sm:$0xf]  ;;  %v460_v18 = vld [vmem:[%s587_s1 + $0x18] sm:$0xf] }
   0xf   : > { %241 = vrot.lane.b32.xlu1 %v469_v0, %s497_s18  ;;  %180 = vrot.lane.b32.xlu0 %v469_v0, %s498_s19  ;;  %v464_v19 = vld [vmem:[%s587_s1 + $0x20] sm:$0xf] }
  0x10   : > { %307 = vrot.lane.b32.xlu2 %v469_v0, %s499_s20  ;;  %211 = vmatpush.bf16.msra.mxu1 %v469_v0 }
  0x13   : > { %451 = vmatmul.msk.bf16.vlgmr.msra.gmra.mxu1 %vm183_vm0, %v172_v1 }
  0x17   : > { %263 = vrot.lane.b32.xlu1 %v469_v0, %s500_s21  ;;  %219 = vrot.lane.b32.xlu0 %v469_v0, %s501_s22  ;;  %s444_s21 = sshll.u32 %s591_s13, 2 }
  0x18   : > { %329 = vrot.lane.b32.xlu2 %v469_v0, %s502_s23 }
  0x1f   : > { %285 = vrot.lane.b32.xlu0 %v469_v0, %s503_s24  ;;  %351 = vrot.lane.b32.xlu1 %v469_v0, %s504_s25  ;;  %s168_s24 = scalar_lea.vmem %s589_s3, %s444_s21 }
  0x20   : > { %374 = vperm.xlu2 %487, %v371_v8  }
  0x6a   : > { %v308_v2 = vpop.permute.xlu2 %307 }
  0x72   : > { %v330_v3 = vpop.permute.xlu2 %329 }
  0x7a   : > { %v375_v43 = vpop.permute.xlu2 %374 }
  0x81   : > { %v242_v4 = vpop.permute.xlu1 %241  ;;  %v181_v5 = vpop.permute.xlu0 %180 }
  0x82   : > { %194 = vmatpush.bf16.msra.mxu0 %v181_v5  ;;  %254 = vmatpush.bf16.msra.mxu3 %v242_v4 }
  0x85   : > { %450 = vmatmul.msk.bf16.vlgmr.msra.gmra.mxu0 %vm183_vm0, %v445_v6  ;;  %455 = vmatmul.msk.bf16.vlgmr.msra.gmra.mxu3 %vm183_vm0, %v454_v7 }
  0x86   : > { %342 = vmatpush.bf16.msrb.mxu3 %v330_v3 }
  0x89   : > { %v264_v10 = vpop.permute.xlu1 %263  ;;  %v220_v11 = vpop.permute.xlu0 %219 }
  0x8a   : > { %232 = vmatpush.bf16.msra.mxu2 %v220_v11  ;;  %276 = vmatpush.bf16.msrb.mxu0 %v264_v10 }
  0x8d   : > { %453 = vmatmul.msk.bf16.vlgmr.msra.gmra.mxu2 %vm183_vm0, %v452_v12 }
  0x8e   : > { %320 = vmatpush.bf16.msrb.mxu2 %v308_v2 }
  0x90   : > { %v213_v20 = vpop.f32.mrf.mxu1 }
  0x91   : > { %v286_v13 = vpop.permute.xlu0 %285  ;;  %v352_v14 = vpop.permute.xlu1 %351 }
  0x92   : > { %298 = vmatpush.bf16.msrb.mxu1 %v286_v13  ;;  %364 = vmatpush.bf16.msra.mxu0 %v352_v14 }
  0x95   : > { %457 = vmatmul.msk.bf16.vlgmr.msrb.gmra.mxu0 %vm183_vm0, %v456_v15  ;;  %459 = vmatmul.msk.bf16.vlgmr.msrb.gmra.mxu1 %vm183_vm0, %v458_v16 }
  0x96   : > { %463 = vmatmul.msk.bf16.vlgmr.msrb.gmra.mxu3 %vm183_vm0, %v462_v17 }
  0x98   : > { %v215_v21 = vpop.f32.mrf.mxu1 }
  0x9d   : > { %461 = vmatmul.msk.bf16.vlgmr.msrb.gmra.mxu2 %vm183_vm0, %v460_v18 }
  0xa5   : > { %465 = vmatmul.msk.bf16.vlgmr.msra.gmra.mxu0 %vm183_vm0, %v464_v19 }
 0x102   : > { %v196_v22 = vpop.f32.mrf.mxu0 }
 0x103   : > { %v214_v27 = vadd.f32 %v213_v20, %v196_v22 }
 0x108   : > { %v256_v23 = vpop.f32.mrf.mxu3 }
 0x10a   : > { %v198_v24 = vpop.f32.mrf.mxu0 }
 0x110   : > { %v234_v25 = vpop.f32.mrf.mxu2  ;;  %v258_v26 = vpop.f32.mrf.mxu3 }
 0x111   : > { %v238_v30 = vadd.f32 %v234_v25, %v214_v27 }
 0x112   : > { %v278_v28 = vpop.f32.mrf.mxu0  ;;  %v300_v29 = vpop.f32.mrf.mxu1 }
 0x113   : > { %v260_v31 = vadd.f32 %v256_v23, %v238_v30 }
 0x115   : > { %v282_v36 = vadd.f32 %v278_v28, %v260_v31 }
 0x117   : > { %v304_v37 = vadd.f32 %v300_v29, %v282_v36 }
 0x118   : > { %v236_v32 = vpop.f32.mrf.mxu2 }
 0x119   : > { %v344_v33 = vpop.f32.mrf.mxu3 }
 0x11a   : > { %v280_v34 = vpop.f32.mrf.mxu0  ;;  %v302_v35 = vpop.f32.mrf.mxu1 }
 0x120   : > { %v322_v38 = vpop.f32.mrf.mxu2 }
 0x121   : > { %v326_v39 = vadd.f32 %v322_v38, %v304_v37  ;;  %v346_v40 = vpop.f32.mrf.mxu3 }
 0x122   : > { %v366_v41 = vpop.f32.mrf.mxu0 }
 0x123   : > { %v348_v42 = vadd.f32 %v344_v33, %v326_v39 }
 0x125   : > { %v370_v44 = vadd.f32 %v366_v41, %v348_v42 }
 0x127   : > { %v377_v45 = vadd.f32 %v375_v43, %v370_v44 }
 0x128   : > { %v324_v46 = vpop.f32.mrf.mxu2 }
 0x129   : > { %vm378_vm1 = vcmp.ge.f32.partialorder %v377_v45, 0.0  ;;  %v379_v47 = vmul.f32 0.2, %v377_v45 }
 0x12a   : > { %v368_v48 = vpop.f32.mrf.mxu0 }
 0x12b   : > { %v380_v49 = vsel %vm378_vm1, %v377_v45, %v379_v47 }
 0x12c   : > { %v381_v50 = vpack.c.bf16 %v380_v49, %v380_v49 }
 0x12e   : > { %383 = vst.msk [vmem:[%s168_s24] sm:$0xf] %vm382_vm2, %v381_v50 }
 0x12f PF: > { %s13_s12 = sadd.s32 1, %s495_s12  }
 0x130   : > { %p10_p4 = scmp.ge.s32.totalorder %s13_s12, 4  }
 0x132   :  { %12 = sbr.rel (!%p10_p4) target bundleno = 1 (0x1), region = 70 }

// kernel: _lambda_.12
= control target key start
LH: loop header
LB: loop body
LE: loop exit
PB: predicated region body
PF: predicated region fallthrough
CT: control target
= control target key end

     0   :  { %s664_s18 = smov 0   ;;  %s743_s0 = inlined_call_operand.vmem [shape: bf16[2,8,110], index: 0, kind: input, shape index: {}]   ;;  %s744_s1 = inlined_call_operand.vmem [shape: bf16[9,8,8], index: 1, kind: input, shape index: {}]   ;;  %s745_s2 = inlined_call_operand.vmem [shape: f32[8,1], index: 2, kind: input, shape index: {}]   ;;  %s746_s3 = inlined_call_operand.vmem [shape: bf16[2,16,80], index: 3, kind: input, shape index: {}]   ;;  %s747_s4 = inlined_call_operand.vmem [shape: bf16[8,16], index: 4, kind: input, shape index: {}]   ;;  %s748_s5 = inlined_call_operand.vmem [shape: bf16[2,8,80], index: 5, kind: output, shape index: {}]  }
   0x1 LB: > { %s563_s19 = sadd.s32 4294967295, %s623_s18   ;;  %p567_p0 = scmp.ge.s32.totalorder %s623_s18, 1  ;;  %s623_s18 = sphi %s664_s18, %s15_s18  }
   0x2   : > { %p196_p1 = scmp.lt.s32.totalorder %s623_s18, 3 }
   0x4   : > { %p197_p2 = pnand %p567_p0, %p196_p1 }
   0x5   : > { %p227_p3 = scmp.lt.s32.totalorder (!%p197_p2), %s563_s19, 1  ;;  %s625_s24 = smov (!%p197_p2), 118  }
   0x6   : > { %200 = sbr.rel (%p197_p2) target bundleno = 310 (0x136), region = 40  ;;  %s626_s25 = smov (!%p197_p2), 127  }
   0x7   : > { %s627_s26 = smov (!%p197_p2), 116   ;;  %s628_s27 = smov (!%p197_p2), 117  }
   0x8   : > { %s629_s28 = smov (!%p197_p2), 126   ;;  %s630_s29 = smov (!%p197_p2), 108  }
   0x9   : > { %s631_s30 = smov (!%p197_p2), 107   ;;  %s632_s6 = smov (!%p197_p2), 106  }
   0xb   : > { %s750_s19 = smov (!%p227_p3, %s563_s19), 1  ;;  %vm254_vm0 = vcmask 1043456   ;;  %vm250_vm1 = vcmask 64512   ;;  %v242_v4 = vld [vmem:[%s744_s1] sm:$0xf]  ;;  %vm474_vm2 = vcmask 130048  }
   0xc   : > { %s568_s20 = sshll.u32 %s750_s19, 2  ;;  %v581_v7 = vld [vmem:[%s744_s1 + $0x14] sm:$0xf]  ;;  %s596_s11 = sshll.u32 %s750_s19, 3  ;;  %v572_v13 = vld [vmem:[%s744_s1 + $0x4] sm:$0xf] }
   0xd   : > { %s230_s23 = scalar_lea.vmem %s743_s0, %s568_s20  ;;  %s235_s14 = scalar_lea.vmem %s746_s3, %s596_s11  ;;  %v577_v14 = vld [vmem:[%s744_s1 + $0xc] sm:$0xf]  ;;  %v465_v15 = vld [vmem:[%s747_s4] sm:$0xf]  ;;  %v633_v18 = vmov 0   ;;  %vm496_vm4 = vcmask 650240  }
   0xe   : > { %v241_v0 = vld [vmem:[%s230_s23] sm:$0xf]  ;;  %615 = vset.pattern.permute.xlu2 %v633_v18  ;;  %616 = vset.pattern.permute.xlu0 %v633_v18  ;;  %v575_v24 = vld [vmem:[%s744_s1 + $0x8] sm:$0xf]  ;;  %v579_v29 = vld [vmem:[%s744_s1 + $0x10] sm:$0xf]  ;;  %s239_s13 = scalar_lea.vmem %s748_s5, %s568_s20 }
   0xf   : > { %v246_v1 = vunpack.c.l.b16 %v241_v0  ;;  %v275_v3 = vsel %vm254_vm0, %v241_v0, 0  ;;  %v597_v8 = vld [vmem:[%s235_s14] sm:$0xff]  ;;  %v585_v30 = vld [vmem:[%s744_s1 + $0x1c] sm:$0xf]  ;;  %v583_v31 = vld [vmem:[%s744_s1 + $0x18] sm:$0xf] }
  0x10   : > { %284 = vmatpush.bf16.msra.mxu1 %v275_v3  ;;  %v458_v17 = vld [vmem:[%s745_s2] sm:$0xff] }
  0x11   : > { %v247_v2 = vpack.c.b16 %v246_v1, %v246_v1  ;;  %v587_v32 = vld [vmem:[%s744_s1 + $0x20] sm:$0xf] }
  0x13   : > { %316 = vrot.lane.b32.xlu1 %v247_v2, %s625_s24  ;;  %248 = vrot.lane.b32.xlu0 %v247_v2, %s626_s25 }
  0x14   : > { %364 = vrot.lane.b32.xlu2 %v247_v2, %s627_s26  ;;  %574 = vmatmul.msk.bf16.vlgmr.msra.gmra.mxu1 %vm250_vm1, %v242_v4 }
  0x1b   : > { %340 = vrot.lane.b32.xlu1 %v247_v2, %s628_s27  ;;  %292 = vrot.lane.b32.xlu0 %v247_v2, %s629_s28 }
  0x1c   : > { %388 = vrot.lane.b32.xlu2 %v247_v2, %s630_s29 }
  0x23   : > { %412 = vrot.lane.b32.xlu0 %v247_v2, %s631_s30  ;;  %436 = vrot.lane.b32.xlu1 %v247_v2, %s632_s6 }
  0x24   : > { %461 = vperm.xlu2 %615, %v458_v17  }
  0x6e   : > { %v365_v5 = vpop.permute.xlu2 %364 }
  0x6f   : > { %v370_v6 = vsel %vm254_vm0, %v365_v5, 0 }
  0x70   : > { %379 = vmatpush.bf16.msrb.mxu1 %v370_v6 }
  0x73   : > { %582 = vmatmul.msk.bf16.vlgmr.msrb.gmra.mxu1 %vm250_vm1, %v581_v7 }
  0x74   : > { %485 = vmatpush.bf16.msra.mxu1 %v597_v8 }
  0x76   : > { %v389_v16 = vpop.permute.xlu2 %388 }
  0x77   : > { %v394_v21 = vsel %vm254_vm0, %v389_v16, 0 }
  0x7e   : > { %v462_v58 = vpop.permute.xlu2 %461 }
  0x83   : > { %593 = vmatmul.msk.bf16.vlgmr.msra.gmra.mxu1 %vm474_vm2, %v465_v15 }
  0x85   : > { %v317_v9 = vpop.permute.xlu1 %316  ;;  %v249_v10 = vpop.permute.xlu0 %248 }
  0x86   : > { %v256_v11 = vsel %vm254_vm0, %v249_v10, 0  ;;  %v322_v12 = vsel %vm254_vm0, %v317_v9, 0 }
  0x87   : > { %265 = vmatpush.bf16.msra.mxu0 %v256_v11  ;;  %331 = vmatpush.bf16.msra.mxu3 %v322_v12 }
  0x8a   : > { %573 = vmatmul.msk.bf16.vlgmr.msra.gmra.mxu0 %vm250_vm1, %v572_v13  ;;  %578 = vmatmul.msk.bf16.vlgmr.msra.gmra.mxu3 %vm250_vm1, %v577_v14 }
  0x8d   : > { %v341_v19 = vpop.permute.xlu1 %340  ;;  %v293_v20 = vpop.permute.xlu0 %292 }
  0x8e   : > { %v298_v22 = vsel %vm254_vm0, %v293_v20, 0  ;;  %v346_v23 = vsel %vm254_vm0, %v341_v19, 0 }
  0x8f   : > { %307 = vmatpush.bf16.msra.mxu2 %v298_v22  ;;  %355 = vmatpush.bf16.msrb.mxu0 %v346_v23 }
  0x91   : > { %v286_v33 = vpop.f32.mrf.mxu1 }
  0x92   : > { %576 = vmatmul.msk.bf16.vlgmr.msra.gmra.mxu2 %vm250_vm1, %v575_v24 }
  0x93   : > { %403 = vmatpush.bf16.msrb.mxu2 %v394_v21 }
  0x95   : > { %v413_v25 = vpop.permute.xlu0 %412  ;;  %v437_v26 = vpop.permute.xlu1 %436 }
  0x96   : > { %v418_v27 = vsel %vm254_vm0, %v413_v25, 0  ;;  %v442_v28 = vsel %vm254_vm0, %v437_v26, 0 }
  0x97   : > { %427 = vmatpush.bf16.msrb.mxu3 %v418_v27  ;;  %451 = vmatpush.bf16.msra.mxu0 %v442_v28 }
  0x99   : > { %v288_v34 = vpop.f32.mrf.mxu1 }
  0x9a   : > { %580 = vmatmul.msk.bf16.vlgmr.msrb.gmra.mxu0 %vm250_vm1, %v579_v29  ;;  %586 = vmatmul.msk.bf16.vlgmr.msrb.gmra.mxu3 %vm250_vm1, %v585_v30 }
  0xa2   : > { %584 = vmatmul.msk.bf16.vlgmr.msrb.gmra.mxu2 %vm250_vm1, %v583_v31 }
  0xaa   : > { %588 = vmatmul.msk.bf16.vlgmr.msra.gmra.mxu0 %vm250_vm1, %v587_v32 }
  0xf0   : > { %v381_v35 = vpop.f32.mrf.mxu1 }
  0xf8   : > { %v383_v36 = vpop.f32.mrf.mxu1 }
 0x100   : > { %v487_v37 = vpop.f32.mrf.mxu1 }
 0x107   : > { %v267_v38 = vpop.f32.mrf.mxu0 }
 0x108   : > { %v489_v40 = vpop.f32.mrf.mxu1  ;;  %v287_v44 = vadd.f32 %v286_v33, %v267_v38 }
 0x10d   : > { %v333_v39 = vpop.f32.mrf.mxu3 }
 0x10f   : > { %v269_v41 = vpop.f32.mrf.mxu0 }
 0x115   : > { %v309_v42 = vpop.f32.mrf.mxu2  ;;  %v335_v43 = vpop.f32.mrf.mxu3 }
 0x116   : > { %v313_v46 = vadd.f32 %v309_v42, %v287_v44 }
 0x117   : > { %v357_v45 = vpop.f32.mrf.mxu0 }
 0x118   : > { %v337_v47 = vadd.f32 %v333_v39, %v313_v46 }
 0x11a   : > { %v361_v51 = vadd.f32 %v357_v45, %v337_v47 }
 0x11c   : > { %v385_v52 = vadd.f32 %v381_v35, %v361_v51 }
 0x11d   : > { %v311_v48 = vpop.f32.mrf.mxu2  ;;  %v429_v49 = vpop.f32.mrf.mxu3 }
 0x11f   : > { %v359_v50 = vpop.f32.mrf.mxu0 }
 0x125   : > { %v405_v53 = vpop.f32.mrf.mxu2  ;;  %v431_v54 = vpop.f32.mrf.mxu3 }
 0x126   : > { %v409_v55 = vadd.f32 %v405_v53, %v385_v52 }
 0x127   : > { %v453_v56 = vpop.f32.mrf.mxu0 }
 0x128   : > { %v433_v57 = vadd.f32 %v429_v49, %v409_v55 }
 0x12a   : > { %v457_v59 = vadd.f32 %v453_v56, %v433_v57 }
 0x12c   : > { %v464_v60 = vadd.f32 %v462_v58, %v457_v59 }
 0x12d   : > { %v407_v61 = vpop.f32.mrf.mxu2 }
 0x12e   : > { %v491_v62 = vadd.f32 %v487_v37, %v464_v60 }
 0x12f   : > { %v455_v63 = vpop.f32.mrf.mxu0 }
 0x130   : > { %vm492_vm3 = vcmp.ge.f32.partialorder %v491_v62, 0.0  ;;  %v493_v0 = vmul.f32 0.2, %v491_v62 }
 0x132   : > { %v494_v1 = vsel %vm492_vm3, %v491_v62, %v493_v0 }
 0x133   : > { %v495_v2 = vpack.c.bf16 %v494_v1, %v494_v1 }
 0x135   : > { %497 = vst.msk [vmem:[%s239_s13] sm:$0xf] %vm496_vm4, %v495_v2 }
 0x136 PF: > { %s15_s18 = sadd.s32 1, %s623_s18  }
 0x137   : > { %p12_p4 = scmp.ge.s32.totalorder %s15_s18, 4  }
 0x139   :  { %14 = sbr.rel (!%p12_p4) target bundleno = 1 (0x1), region = 81 }

// kernel: _lambda_.13
= control target key start
LH: loop header
LB: loop body
LE: loop exit
PB: predicated region body
PF: predicated region fallthrough
CT: control target
= control target key end

     0   :  { %s931_s12 = smov 0   ;;  %s1062_s0 = inlined_call_operand.vmem [shape: bf16[2,8,342], index: 0, kind: input, shape index: {}]   ;;  %s1063_s1 = inlined_call_operand.vmem [shape: bf16[9,8,8], index: 1, kind: input, shape index: {}]   ;;  %s1064_s2 = inlined_call_operand.vmem [shape: f32[8,1], index: 2, kind: input, shape index: {}]   ;;  %s1065_s3 = inlined_call_operand.vmem [shape: bf16[2,8,288], index: 3, kind: output, shape index: {}]  }
   0x1 LB: > { %s831_s13 = sadd.s32 4294967295, %s900_s12   ;;  %p835_p0 = scmp.ge.s32.totalorder %s900_s12, 1  ;;  %s900_s12 = sphi %s931_s12, %s13_s12  }
   0x2   : > { %p137_p1 = scmp.lt.s32.totalorder %s900_s12, 3 }
   0x4   : > { %p138_p2 = pnand %p835_p0, %p137_p1 }
   0x5   : > { %p161_p3 = scmp.lt.s32.totalorder (!%p138_p2), %s831_s13, 1  ;;  %s902_s18 = smov (!%p138_p2), 127  }
   0x6   : > { %141 = sbr.rel (%p138_p2) target bundleno = 380 (0x17c), region = 32  ;;  %s903_s19 = smov (!%p138_p2), 126  }
   0x7   : > { %s904_s20 = smov (!%p138_p2), 110   ;;  %s905_s21 = smov (!%p138_p2), 109  }
   0x8   : > { %s906_s22 = smov (!%p138_p2), 108   ;;  %s907_s23 = smov (!%p138_p2), 92  }
   0x9   : > { %s908_s24 = smov (!%p138_p2), 91   ;;  %s909_s25 = smov (!%p138_p2), 90  }
   0xb   : > { %s1067_s13 = smov (!%p161_p3, %s831_s13), 1  ;;  %vm198_vm0 = vcmask 1043456   ;;  %vm194_vm1 = vcmask 64512   ;;  %v961_v9 = vld [vmem:[%s1063_s1] sm:$0xf]  ;;  %vm306_vm2 = vcmask 1031168  }
   0xc   : > { %s875_s14 = smul.u32 12, %s1067_s13  ;;  %v970_v14 = vld [vmem:[%s1063_s1 + $0x8] sm:$0xf]  ;;  %vm191_vm3 = vcmask 1039360   ;;  %v838_v21 = vld [vmem:[%s1063_s1 + $0x4] sm:$0xf] }
   0xd   : > { %vm371_vm4 = vcmask 900096   ;;  %v849_v38 = vld [vmem:[%s1063_s1 + $0xc] sm:$0xf]  ;;  %vm436_vm5 = vcmask 891904   ;;  %vm501_vm6 = vcmask 883712   ;;  %vm566_vm7 = vcmask 752640  }
   0xe   : > { %s165_s17 = scalar_lea.vmem %s1062_s0, %s875_s14  ;;  %v857_v52 = vld [vmem:[%s1063_s1 + $0x14] sm:$0xf]  ;;  %vm631_vm8 = vcmask 744448   ;;  %vm696_vm9 = vcmask 736256   ;;  %vm774_vm12 = vcmask 257024  }
   0xf   : > { %v173_v0 = vld [vmem:[%s165_s17 + $0x8] sm:$0xf]  ;;  %v172_v1 = vld [vmem:[%s165_s17] sm:$0xff] }
  0x10   : > { %v181_v2 = vunpack.c.l.b16 %v173_v0  ;;  %v180_v3 = vunpack.c.h.b16 %v172_v1  ;;  %v179_v6 = vunpack.c.l.b16 %v172_v1 }
  0x12   : > { %v184_v4 = vpack.c.b16 %v181_v2, %v181_v2  ;;  %v947_v5 = vpack.c.b16 %v180_v3, %v180_v3  ;;  %v182_v7 = vpack.c.b16 %v179_v6, %v179_v6 }
  0x14   : > { %189 = vrot.lane.b32.xlu0 %v184_v4, %s902_s18  ;;  %187 = vrot.lane.b32.xlu1 %v947_v5, %s902_s18  ;;  %v251_v8 = vsel %vm198_vm0, %v182_v7, 0  ;;  %v257_v19 = vsel %vm198_vm0, %v184_v4, 0  ;;  %v254_v26 = vsel %vm198_vm0, %v947_v5, 0 }
  0x15   : > { %302 = vrot.lane.b32.xlu2 %v947_v5, %s903_s19  ;;  %266 = vmatpush.bf16.msra.mxu3 %v251_v8  ;;  %v861_v8 = vld [vmem:[%s1063_s1 + $0x18] sm:$0xf] }
  0x18   : > { %842 = vmatmul.msk.bf16.vlgmr.msra.gmra.mxu3 %vm194_vm1, %v961_v9 }
  0x1c   : > { %300 = vrot.lane.b32.xlu1 %v182_v7, %s903_s19  ;;  %185 = vrot.lane.b32.xlu0 %v182_v7, %s902_s18 }
  0x1d   : > { %304 = vrot.lane.b32.xlu2 %v184_v4, %s903_s19 }
  0x24   : > { %369 = vrot.lane.b32.xlu1 %v184_v4, %s904_s20  ;;  %367 = vrot.lane.b32.xlu0 %v947_v5, %s904_s20 }
  0x25   : > { %365 = vrot.lane.b32.xlu2 %v182_v7, %s904_s20 }
  0x2c   : > { %430 = vrot.lane.b32.xlu1 %v182_v7, %s905_s21  ;;  %434 = vrot.lane.b32.xlu0 %v184_v4, %s905_s21 }
  0x2d   : > { %432 = vrot.lane.b32.xlu2 %v947_v5, %s905_s21 }
  0x34   : > { %497 = vrot.lane.b32.xlu1 %v947_v5, %s906_s22  ;;  %495 = vrot.lane.b32.xlu0 %v182_v7, %s906_s22 }
  0x35   : > { %560 = vrot.lane.b32.xlu2 %v182_v7, %s907_s23 }
  0x3c   : > { %499 = vrot.lane.b32.xlu1 %v184_v4, %s906_s22  ;;  %562 = vrot.lane.b32.xlu0 %v947_v5, %s907_s23 }
  0x3d   : > { %564 = vrot.lane.b32.xlu2 %v184_v4, %s907_s23 }
  0x44   : > { %629 = vrot.lane.b32.xlu1 %v184_v4, %s908_s24  ;;  %627 = vrot.lane.b32.xlu0 %v947_v5, %s908_s24 }
  0x45   : > { %625 = vrot.lane.b32.xlu2 %v182_v7, %s908_s24  ;;  %s170_s24 = scalar_lea.vmem %s1065_s3, %s875_s14 }
  0x4c   : > { %694 = vrot.lane.b32.xlu0 %v184_v4, %s909_s25  ;;  %690 = vrot.lane.b32.xlu1 %v182_v7, %s909_s25 }
  0x4d   : > { %692 = vrot.lane.b32.xlu2 %v947_v5, %s909_s25  ;;  %v853_v5 = vld [vmem:[%s1063_s1 + $0x10] sm:$0xf] }
  0x6f   : > { %v303_v10 = vpop.permute.xlu2 %302 }
  0x77   : > { %v305_v11 = vpop.permute.xlu2 %304 }
  0x78   : > { %v308_v12 = vsel %vm306_vm2, %v303_v10, %v305_v11  ;;  %v319_v29 = vsel %vm198_vm0, %v305_v11, 0 }
  0x79   : > { %v316_v13 = vsel %vm198_vm0, %v308_v12, 0 }
  0x7a   : > { %341 = vmatpush.bf16.msrb.mxu3 %v316_v13 }
  0x7d   : > { %847 = vmatmul.msk.bf16.vlgmr.msrb.gmra.mxu3 %vm194_vm1, %v970_v14 }
  0x7f   : > { %v366_v30 = vpop.permute.xlu2 %365 }
  0x86   : > { %v190_v15 = vpop.permute.xlu0 %189  ;;  %v188_v16 = vpop.permute.xlu1 %187 }
  0x87   : > { %v206_v17 = vsel %vm198_vm0, %v190_v15, 0  ;;  %v193_v18 = vsel %vm191_vm3, %v188_v16, %v190_v15  ;;  %v433_v39 = vpop.permute.xlu2 %432  ;;  %v865_v15 = vld [vmem:[%s1063_s1 + $0x1c] sm:$0xf] }
  0x88   : > { %241 = vmatpush.bf16.msra.mxu2 %v206_v17  ;;  %v203_v20 = vsel %vm198_vm0, %v193_v18, 0 }
  0x89   : > { %228 = vmatpush.bf16.msra.mxu1 %v203_v20  ;;  %v910_v20 = vmov 0  }
  0x8a   : > { %893 = vset.pattern.permute.xlu0 %v910_v20 }
  0x8b   : > { %841 = vmatmul.msk.bf16.vlgmr.msra.gmra.mxu2 %vm194_vm1, %v838_v21 }
  0x8c   : > { %840 = vmatmul.msk.bf16.vlgmr.msra.gmra.mxu1 %vm194_vm1, %v838_v21 }
  0x8d   : > { %292 = vmatpush.bf16.msrb.mxu1 %v257_v19  ;;  %v753_v19 = vld [vmem:[%s1064_s2] sm:$0xff] }
  0x8e   : > { %v301_v22 = vpop.permute.xlu1 %300  ;;  %v186_v23 = vpop.permute.xlu0 %185  ;;  %756 = vperm.xlu0 %893, %v753_v19  }
  0x8f   : > { %v192_v24 = vsel %vm191_vm3, %v186_v23, %v188_v16  ;;  %v307_v25 = vsel %vm306_vm2, %v301_v22, %v303_v10  ;;  %v561_v47 = vpop.permute.xlu2 %560 }
  0x90   : > { %v200_v27 = vsel %vm198_vm0, %v192_v24, 0  ;;  %v313_v28 = vsel %vm198_vm0, %v307_v25, 0 }
  0x91   : > { %215 = vmatpush.bf16.msra.mxu0 %v200_v27  ;;  %328 = vmatpush.bf16.msrb.mxu2 %v313_v28 }
  0x94   : > { %839 = vmatmul.msk.bf16.vlgmr.msra.gmra.mxu0 %vm194_vm1, %v838_v21  ;;  %v869_v21 = vld [vmem:[%s1063_s1 + $0x20] sm:$0xf] }
  0x95   : > { %279 = vmatpush.bf16.msrb.mxu0 %v254_v26 }
  0x96   : > { %v370_v31 = vpop.permute.xlu1 %369  ;;  %v368_v32 = vpop.permute.xlu0 %367 }
  0x97   : > { %v384_v33 = vsel %vm198_vm0, %v370_v31, 0  ;;  %v372_v34 = vsel %vm371_vm4, %v366_v30, %v368_v32  ;;  %v373_v35 = vsel %vm371_vm4, %v368_v32, %v370_v31  ;;  %v565_v53 = vpop.permute.xlu2 %564 }
  0x98   : > { %v378_v36 = vsel %vm198_vm0, %v372_v34, 0  ;;  %v381_v37 = vsel %vm198_vm0, %v373_v35, 0  ;;  %419 = vmatpush.bf16.msra.mxu3 %v384_v33 }
  0x99   : > { %354 = vmatpush.bf16.msra.mxu0 %v319_v29  ;;  %393 = vmatpush.bf16.msra.mxu1 %v378_v36 }
  0x9a   : > { %406 = vmatpush.bf16.msra.mxu2 %v381_v37 }
  0x9b   : > { %846 = vmatmul.msk.bf16.vlgmr.msrb.gmra.mxu2 %vm194_vm1, %v970_v14  ;;  %852 = vmatmul.msk.bf16.vlgmr.msra.gmra.mxu3 %vm194_vm1, %v849_v38  ;;  %v268_v22 = vpop.f32.mrf.mxu3 }
  0x9c   : > { %844 = vmatmul.msk.bf16.vlgmr.msrb.gmra.mxu1 %vm194_vm1, %v961_v9 }
  0x9e   : > { %v431_v40 = vpop.permute.xlu1 %430  ;;  %v435_v41 = vpop.permute.xlu0 %434 }
  0x9f   : > { %v437_v42 = vsel %vm436_vm5, %v431_v40, %v433_v39  ;;  %v438_v43 = vsel %vm436_vm5, %v433_v39, %v435_v41  ;;  %v449_v44 = vsel %vm198_vm0, %v435_v41, 0  ;;  %v626_v63 = vpop.permute.xlu2 %625 }
  0xa0   : > { %v446_v45 = vsel %vm198_vm0, %v438_v43, 0  ;;  %484 = vmatpush.bf16.msrb.mxu2 %v449_v44  ;;  %v443_v46 = vsel %vm198_vm0, %v437_v42, 0 }
  0xa1   : > { %471 = vmatpush.bf16.msrb.mxu1 %v446_v45 }
  0xa3   : > { %v270_v23 = vpop.f32.mrf.mxu3 }
  0xa4   : > { %843 = vmatmul.msk.bf16.vlgmr.msrb.gmra.mxu0 %vm194_vm1, %v961_v9  ;;  %v579_v9 = vsel %vm198_vm0, %v565_v53, 0 }
  0xa5   : > { %458 = vmatpush.bf16.msrb.mxu0 %v443_v46 }
  0xa6   : > { %v498_v48 = vpop.permute.xlu1 %497  ;;  %v496_v49 = vpop.permute.xlu0 %495 }
  0xa7   : > { %v502_v50 = vsel %vm501_vm6, %v496_v49, %v498_v48  ;;  %v693_v10 = vpop.permute.xlu2 %692 }
  0xa8   : > { %v508_v51 = vsel %vm198_vm0, %v502_v50, 0 }
  0xa9   : > { %523 = vmatpush.bf16.msrb.mxu3 %v508_v51 }
  0xab   : > { %851 = vmatmul.msk.bf16.vlgmr.msra.gmra.mxu2 %vm194_vm1, %v849_v38 }
  0xac   : > { %850 = vmatmul.msk.bf16.vlgmr.msra.gmra.mxu1 %vm194_vm1, %v849_v38  ;;  %858 = vmatmul.msk.bf16.vlgmr.msrb.gmra.mxu3 %vm194_vm1, %v857_v52 }
  0xae   : > { %v500_v54 = vpop.permute.xlu1 %499  ;;  %v563_v55 = vpop.permute.xlu0 %562 }
  0xaf   : > { %v503_v56 = vsel %vm501_vm6, %v498_v48, %v500_v54  ;;  %v514_v57 = vsel %vm198_vm0, %v500_v54, 0  ;;  %v567_v58 = vsel %vm566_vm7, %v561_v47, %v563_v55  ;;  %v568_v59 = vsel %vm566_vm7, %v563_v55, %v565_v53 }
  0xb0   : > { %v573_v60 = vsel %vm198_vm0, %v567_v58, 0  ;;  %v576_v61 = vsel %vm198_vm0, %v568_v59, 0  ;;  %549 = vmatpush.bf16.msra.mxu1 %v514_v57  ;;  %v511_v62 = vsel %vm198_vm0, %v503_v56, 0 }
  0xb1   : > { %588 = vmatpush.bf16.msra.mxu2 %v573_v60  ;;  %601 = vmatpush.bf16.msra.mxu3 %v576_v61 }
  0xb4   : > { %848 = vmatmul.msk.bf16.vlgmr.msra.gmra.mxu0 %vm194_vm1, %v970_v14 }
  0xb5   : > { %536 = vmatpush.bf16.msra.mxu0 %v511_v62 }
  0xb6   : > { %v630_v0 = vpop.permute.xlu1 %629  ;;  %v628_v1 = vpop.permute.xlu0 %627 }
  0xb7   : > { %v644_v2 = vsel %vm198_vm0, %v630_v0, 0  ;;  %v632_v3 = vsel %vm631_vm8, %v626_v63, %v628_v1  ;;  %v633_v4 = vsel %vm631_vm8, %v628_v1, %v630_v0 }
  0xb8   : > { %679 = vmatpush.bf16.msrb.mxu3 %v644_v2  ;;  %v638_v6 = vsel %vm198_vm0, %v632_v3, 0  ;;  %v641_v7 = vsel %vm198_vm0, %v633_v4, 0 }
  0xbb   : > { %856 = vmatmul.msk.bf16.vlgmr.msrb.gmra.mxu2 %vm194_vm1, %v853_v5 }
  0xbc   : > { %855 = vmatmul.msk.bf16.vlgmr.msrb.gmra.mxu1 %vm194_vm1, %v853_v5  ;;  %863 = vmatmul.msk.bf16.vlgmr.msra.gmra.mxu3 %vm194_vm1, %v861_v8 }
  0xbd   : > { %653 = vmatpush.bf16.msrb.mxu1 %v638_v6  ;;  %666 = vmatpush.bf16.msrb.mxu2 %v641_v7 }
  0xbe   : > { %v695_v11 = vpop.permute.xlu0 %694  ;;  %v691_v16 = vpop.permute.xlu1 %690 }
  0xbf   : > { %v698_v12 = vsel %vm696_vm9, %v693_v10, %v695_v11  ;;  %v709_v14 = vsel %vm198_vm0, %v695_v11, 0  ;;  %v697_v17 = vsel %vm696_vm9, %v691_v16, %v693_v10 }
  0xc0   : > { %v706_v13 = vsel %vm198_vm0, %v698_v12, 0  ;;  %v703_v18 = vsel %vm198_vm0, %v697_v17, 0 }
  0xc4   : > { %854 = vmatmul.msk.bf16.vlgmr.msrb.gmra.mxu0 %vm194_vm1, %v853_v5 }
  0xc5   : > { %614 = vmatpush.bf16.msrb.mxu0 %v579_v9 }
  0xcb   : > { %862 = vmatmul.msk.bf16.vlgmr.msra.gmra.mxu2 %vm194_vm1, %v861_v8 }
  0xcc   : > { %860 = vmatmul.msk.bf16.vlgmr.msra.gmra.mxu1 %vm194_vm1, %v857_v52  ;;  %868 = vmatmul.msk.bf16.vlgmr.msrb.gmra.mxu3 %vm194_vm1, %v865_v15 }
  0xcd   : > { %744 = vmatpush.bf16.msra.mxu2 %v709_v14  ;;  %731 = vmatpush.bf16.msra.mxu1 %v706_v13 }
  0xd4   : > { %859 = vmatmul.msk.bf16.vlgmr.msra.gmra.mxu0 %vm194_vm1, %v857_v52 }
  0xd5   : > { %718 = vmatpush.bf16.msra.mxu0 %v703_v18 }
  0xdb   : > { %867 = vmatmul.msk.bf16.vlgmr.msrb.gmra.mxu2 %vm194_vm1, %v865_v15 }
  0xdc   : > { %866 = vmatmul.msk.bf16.vlgmr.msrb.gmra.mxu1 %vm194_vm1, %v865_v15 }
  0xe4   : > { %864 = vmatmul.msk.bf16.vlgmr.msrb.gmra.mxu0 %vm194_vm1, %v861_v8 }
  0xeb   : > { %872 = vmatmul.msk.bf16.vlgmr.msra.gmra.mxu2 %vm194_vm1, %v869_v21 }
  0xec   : > { %871 = vmatmul.msk.bf16.vlgmr.msra.gmra.mxu1 %vm194_vm1, %v869_v21 }
  0xf4   : > { %870 = vmatmul.msk.bf16.vlgmr.msra.gmra.mxu0 %vm194_vm1, %v869_v21 }
 0x100   : > { %v343_v24 = vpop.f32.mrf.mxu3 }
 0x108   : > { %v345_v26 = vpop.f32.mrf.mxu3 }
 0x109   : > { %v230_v25 = vpop.f32.mrf.mxu1 }
 0x10e   : > { %v243_v27 = vpop.f32.mrf.mxu2 }
 0x111   : > { %v217_v28 = vpop.f32.mrf.mxu0  ;;  %v232_v29 = vpop.f32.mrf.mxu1 }
 0x112   : > { %v269_v30 = vadd.f32 %v268_v22, %v217_v28 }
 0x116   : > { %v245_v31 = vpop.f32.mrf.mxu2 }
 0x119   : > { %v219_v32 = vpop.f32.mrf.mxu0  ;;  %v294_v33 = vpop.f32.mrf.mxu1 }
 0x11a   : > { %v295_v34 = vadd.f32 %v294_v33, %v243_v27  ;;  %v757_v27 = vpop.permute.xlu0 %756 }
 0x11e   : > { %v330_v35 = vpop.f32.mrf.mxu2  ;;  %v421_v36 = vpop.f32.mrf.mxu3 }
 0x11f   : > { %v360_v37 = vadd.f32 %v330_v35, %v269_v30 }
 0x121   : > { %v281_v38 = vpop.f32.mrf.mxu0  ;;  %v296_v39 = vpop.f32.mrf.mxu1 }
 0x122   : > { %v282_v40 = vadd.f32 %v281_v38, %v230_v25 }
 0x124   : > { %v361_v41 = vadd.f32 %v343_v24, %v282_v40 }
 0x126   : > { %v332_v42 = vpop.f32.mrf.mxu2  ;;  %v423_v43 = vpop.f32.mrf.mxu3 }
 0x129   : > { %v283_v44 = vpop.f32.mrf.mxu0  ;;  %v395_v45 = vpop.f32.mrf.mxu1 }
 0x12a   : > { %v425_v15 = vadd.f32 %v395_v45, %v360_v37 }
 0x12e   : > { %v408_v46 = vpop.f32.mrf.mxu2 }
 0x12f   : > { %v525_v47 = vpop.f32.mrf.mxu3  ;;  %v426_v9 = vadd.f32 %v408_v46, %v361_v41 }
 0x131   : > { %v356_v48 = vpop.f32.mrf.mxu0  ;;  %v397_v49 = vpop.f32.mrf.mxu1 }
 0x132   : > { %v362_v50 = vadd.f32 %v356_v48, %v295_v34 }
 0x134   : > { %v427_v51 = vadd.f32 %v421_v36, %v362_v50 }
 0x136   : > { %v410_v52 = vpop.f32.mrf.mxu2 }
 0x137   : > { %v527_v53 = vpop.f32.mrf.mxu3 }
 0x139   : > { %v358_v54 = vpop.f32.mrf.mxu0  ;;  %v473_v55 = vpop.f32.mrf.mxu1 }
 0x13a   : > { %v491_v12 = vadd.f32 %v473_v55, %v426_v9 }
 0x13e   : > { %v486_v56 = vpop.f32.mrf.mxu2 }
 0x13f   : > { %v603_v57 = vpop.f32.mrf.mxu3  ;;  %v492_v14 = vadd.f32 %v486_v56, %v427_v51 }
 0x141   : > { %v460_v58 = vpop.f32.mrf.mxu0  ;;  %v475_v59 = vpop.f32.mrf.mxu1 }
 0x142   : > { %v490_v18 = vadd.f32 %v460_v58, %v425_v15 }
 0x144   : > { %v555_v24 = vadd.f32 %v525_v47, %v490_v18 }
 0x146   : > { %v488_v60 = vpop.f32.mrf.mxu2 }
 0x147   : > { %v605_v61 = vpop.f32.mrf.mxu3 }
 0x149   : > { %v462_v62 = vpop.f32.mrf.mxu0  ;;  %v551_v63 = vpop.f32.mrf.mxu1 }
 0x14a   : > { %v557_v17 = vadd.f32 %v551_v63, %v492_v14 }
 0x14e   : > { %v590_v0 = vpop.f32.mrf.mxu2 }
 0x14f   : > { %v681_v1 = vpop.f32.mrf.mxu3  ;;  %v620_v28 = vadd.f32 %v590_v0, %v555_v24 }
 0x151   : > { %v538_v2 = vpop.f32.mrf.mxu0  ;;  %v553_v3 = vpop.f32.mrf.mxu1 }
 0x152   : > { %v556_v13 = vadd.f32 %v538_v2, %v491_v12 }
 0x154   : > { %v621_v19 = vadd.f32 %v603_v57, %v556_v13 }
 0x156   : > { %v592_v4 = vpop.f32.mrf.mxu2 }
 0x157   : > { %v683_v5 = vpop.f32.mrf.mxu3 }
 0x159   : > { %v540_v6 = vpop.f32.mrf.mxu0  ;;  %v655_v7 = vpop.f32.mrf.mxu1 }
 0x15a   : > { %v685_v31 = vadd.f32 %v655_v7, %v620_v28 }
 0x15e   : > { %v668_v8 = vpop.f32.mrf.mxu2 }
 0x15f   : > { %v686_v23 = vadd.f32 %v668_v8, %v621_v19 }
 0x161   : > { %v616_v10 = vpop.f32.mrf.mxu0  ;;  %v657_v11 = vpop.f32.mrf.mxu1 }
 0x162   : > { %v622_v20 = vadd.f32 %v616_v10, %v557_v17 }
 0x164   : > { %v687_v26 = vadd.f32 %v681_v1, %v622_v20 }
 0x166   : > { %v670_v16 = vpop.f32.mrf.mxu2 }
 0x169   : > { %v618_v21 = vpop.f32.mrf.mxu0  ;;  %v733_v22 = vpop.f32.mrf.mxu1 }
 0x16a   : > { %v751_v25 = vadd.f32 %v733_v22, %v686_v23 }
 0x16c   : > { %v760_v32 = vadd.f32 %v757_v27, %v751_v25 }
 0x16e   : > { %v746_v29 = vpop.f32.mrf.mxu2  ;;  %v766_v38 = vmul.f32 0.2, %v760_v32  ;;  %vm763_vm11 = vcmp.ge.f32.partialorder %v760_v32, 0.0 }
 0x16f   : > { %v752_v30 = vadd.f32 %v746_v29, %v687_v26 }
 0x170   : > { %v769_v44 = vsel %vm763_vm11, %v760_v32, %v766_v38 }
 0x171   : > { %v761_v33 = vadd.f32 %v757_v27, %v752_v30  ;;  %v720_v34 = vpop.f32.mrf.mxu0  ;;  %v735_v35 = vpop.f32.mrf.mxu1 }
 0x172   : > { %v750_v36 = vadd.f32 %v720_v34, %v685_v31 }
 0x173   : > { %vm764_vm10 = vcmp.ge.f32.partialorder %v761_v33, 0.0  ;;  %v767_v37 = vmul.f32 0.2, %v761_v33 }
 0x174   : > { %v759_v39 = vadd.f32 %v757_v27, %v750_v36 }
 0x175   : > { %v770_v40 = vsel %vm764_vm10, %v761_v33, %v767_v37 }
 0x176   : > { %v772_v41 = vpack.c.bf16 %v770_v40, %v770_v40  ;;  %vm762_vm13 = vcmp.ge.f32.partialorder %v759_v39, 0.0  ;;  %v765_v42 = vmul.f32 0.2, %v759_v39  ;;  %v748_v43 = vpop.f32.mrf.mxu2 }
 0x178   : > { %v768_v45 = vsel %vm762_vm13, %v759_v39, %v765_v42  ;;  %775 = vst.msk [vmem:[%s170_s24 + $0x8] sm:$0xf] %vm774_vm12, %v772_v41 }
 0x179   : > { %v771_v46 = vpack.c.bf16 %v769_v44, %v768_v45  ;;  %v722_v47 = vpop.f32.mrf.mxu0 }
 0x17b   : > { %773 = vst [vmem:[%s170_s24] sm:$0xff] %v771_v46 }
 0x17c PF: > { %s13_s12 = sadd.s32 1, %s900_s12  }
 0x17d   : > { %p10_p4 = scmp.ge.s32.totalorder %s13_s12, 4  }
 0x17f   :  { %12 = sbr.rel (!%p10_p4) target bundleno = 1 (0x1), region = 70 }

// kernel: _lambda_.14
= control target key start
LH: loop header
LB: loop body
LE: loop exit
PB: predicated region body
PF: predicated region fallthrough
CT: control target
= control target key end

     0   :  { %s1004_s15 = smov 0   ;;  %s1136_s0 = inlined_call_operand.vmem [shape: bf16[2,8,342], index: 0, kind: input, shape index: {}]   ;;  %s1137_s1 = inlined_call_operand.vmem [shape: bf16[9,8,8], index: 1, kind: input, shape index: {}]   ;;  %s1138_s2 = inlined_call_operand.vmem [shape: f32[8,1], index: 2, kind: input, shape index: {}]   ;;  %s1139_s3 = inlined_call_operand.vmem [shape: bf16[2,8,288], index: 3, kind: input, shape index: {}]   ;;  %s1140_s4 = inlined_call_operand.vmem [shape: bf16[2,8,288], index: 4, kind: output, shape index: {}]  }
   0x1 LB: > { %s898_s16 = sadd.s32 4294967295, %s968_s15   ;;  %p902_p0 = scmp.ge.s32.totalorder %s968_s15, 1  ;;  %s968_s15 = sphi %s1004_s15, %s14_s15  }
   0x2   : > { %p172_p1 = scmp.lt.s32.totalorder %s968_s15, 3 }
   0x4   : > { %p173_p2 = pnand %p902_p0, %p172_p1 }
   0x5   : > { %p203_p3 = scmp.lt.s32.totalorder (!%p173_p2), %s898_s16, 1  ;;  %s970_s21 = smov (!%p173_p2), 127  }
   0x6   : > { %176 = sbr.rel (%p173_p2) target bundleno = 382 (0x17e), region = 36  ;;  %s971_s22 = smov (!%p173_p2), 126  }
   0x7   : > { %s972_s23 = smov (!%p173_p2), 110   ;;  %s973_s24 = smov (!%p173_p2), 109  }
   0x8   : > { %s974_s25 = smov (!%p173_p2), 108   ;;  %s975_s26 = smov (!%p173_p2), 92  }
   0x9   : > { %s976_s27 = smov (!%p173_p2), 91   ;;  %s977_s28 = smov (!%p173_p2), 90  }
   0xb   : > { %s1142_s16 = smov (!%p203_p3, %s898_s16), 1  ;;  %vm245_vm0 = vcmask 1043456   ;;  %vm241_vm1 = vcmask 64512   ;;  %v1032_v9 = vld [vmem:[%s1137_s1] sm:$0xf]  ;;  %vm353_vm2 = vcmask 1031168  }
   0xc   : > { %s1012_s17 = smul.u32 12, %s1142_s16  ;;  %v1041_v14 = vld [vmem:[%s1137_s1 + $0x8] sm:$0xf]  ;;  %vm238_vm3 = vcmask 1039360   ;;  %v906_v21 = vld [vmem:[%s1137_s1 + $0x4] sm:$0xf] }
   0xd   : > { %vm418_vm4 = vcmask 900096   ;;  %v917_v38 = vld [vmem:[%s1137_s1 + $0xc] sm:$0xf]  ;;  %vm483_vm5 = vcmask 891904   ;;  %vm548_vm6 = vcmask 883712   ;;  %vm613_vm7 = vcmask 752640  }
   0xe   : > { %s207_s20 = scalar_lea.vmem %s1136_s0, %s1012_s17  ;;  %v925_v52 = vld [vmem:[%s1137_s1 + $0x14] sm:$0xf]  ;;  %vm678_vm8 = vcmask 744448   ;;  %vm743_vm9 = vcmask 736256   ;;  %s217_s30 = scalar_lea.vmem %s1140_s4, %s1012_s17  ;;  %vm829_vm12 = vcmask 257024  }
   0xf   : > { %v220_v0 = vld [vmem:[%s207_s20 + $0x8] sm:$0xf]  ;;  %v219_v1 = vld [vmem:[%s207_s20] sm:$0xff] }
  0x10   : > { %v228_v2 = vunpack.c.l.b16 %v220_v0  ;;  %v227_v3 = vunpack.c.h.b16 %v219_v1  ;;  %v226_v6 = vunpack.c.l.b16 %v219_v1 }
  0x12   : > { %v231_v4 = vpack.c.b16 %v228_v2, %v228_v2  ;;  %v1018_v5 = vpack.c.b16 %v227_v3, %v227_v3  ;;  %v229_v7 = vpack.c.b16 %v226_v6, %v226_v6 }
  0x14   : > { %236 = vrot.lane.b32.xlu0 %v231_v4, %s970_s21  ;;  %234 = vrot.lane.b32.xlu1 %v1018_v5, %s970_s21  ;;  %v298_v8 = vsel %vm245_vm0, %v229_v7, 0  ;;  %v304_v19 = vsel %vm245_vm0, %v231_v4, 0  ;;  %v301_v26 = vsel %vm245_vm0, %v1018_v5, 0 }
  0x15   : > { %349 = vrot.lane.b32.xlu2 %v1018_v5, %s971_s22  ;;  %313 = vmatpush.bf16.msra.mxu3 %v298_v8  ;;  %v929_v8 = vld [vmem:[%s1137_s1 + $0x18] sm:$0xf] }
  0x18   : > { %910 = vmatmul.msk.bf16.vlgmr.msra.gmra.mxu3 %vm241_vm1, %v1032_v9 }
  0x1c   : > { %347 = vrot.lane.b32.xlu1 %v229_v7, %s971_s22  ;;  %232 = vrot.lane.b32.xlu0 %v229_v7, %s970_s21 }
  0x1d   : > { %351 = vrot.lane.b32.xlu2 %v231_v4, %s971_s22 }
  0x24   : > { %416 = vrot.lane.b32.xlu1 %v231_v4, %s972_s23  ;;  %414 = vrot.lane.b32.xlu0 %v1018_v5, %s972_s23 }
  0x25   : > { %412 = vrot.lane.b32.xlu2 %v229_v7, %s972_s23 }
  0x2c   : > { %477 = vrot.lane.b32.xlu1 %v229_v7, %s973_s24  ;;  %481 = vrot.lane.b32.xlu0 %v231_v4, %s973_s24 }
  0x2d   : > { %479 = vrot.lane.b32.xlu2 %v1018_v5, %s973_s24 }
  0x34   : > { %544 = vrot.lane.b32.xlu1 %v1018_v5, %s974_s25  ;;  %542 = vrot.lane.b32.xlu0 %v229_v7, %s974_s25 }
  0x35   : > { %607 = vrot.lane.b32.xlu2 %v229_v7, %s975_s26 }
  0x3c   : > { %546 = vrot.lane.b32.xlu1 %v231_v4, %s974_s25  ;;  %609 = vrot.lane.b32.xlu0 %v1018_v5, %s975_s26 }
  0x3d   : > { %611 = vrot.lane.b32.xlu2 %v231_v4, %s975_s26 }
  0x44   : > { %676 = vrot.lane.b32.xlu1 %v231_v4, %s976_s27  ;;  %674 = vrot.lane.b32.xlu0 %v1018_v5, %s976_s27 }
  0x45   : > { %672 = vrot.lane.b32.xlu2 %v229_v7, %s976_s27  ;;  %s212_s27 = scalar_lea.vmem %s1139_s3, %s1012_s17 }
  0x4c   : > { %741 = vrot.lane.b32.xlu0 %v231_v4, %s977_s28  ;;  %737 = vrot.lane.b32.xlu1 %v229_v7, %s977_s28 }
  0x4d   : > { %739 = vrot.lane.b32.xlu2 %v1018_v5, %s977_s28  ;;  %v921_v5 = vld [vmem:[%s1137_s1 + $0x10] sm:$0xf] }
  0x6f   : > { %v350_v10 = vpop.permute.xlu2 %349 }
  0x77   : > { %v352_v11 = vpop.permute.xlu2 %351 }
  0x78   : > { %v355_v12 = vsel %vm353_vm2, %v350_v10, %v352_v11  ;;  %v366_v29 = vsel %vm245_vm0, %v352_v11, 0 }
  0x79   : > { %v363_v13 = vsel %vm245_vm0, %v355_v12, 0 }
  0x7a   : > { %388 = vmatpush.bf16.msrb.mxu3 %v363_v13 }
  0x7d   : > { %915 = vmatmul.msk.bf16.vlgmr.msrb.gmra.mxu3 %vm241_vm1, %v1041_v14 }
  0x7f   : > { %v413_v30 = vpop.permute.xlu2 %412 }
  0x86   : > { %v237_v15 = vpop.permute.xlu0 %236  ;;  %v235_v16 = vpop.permute.xlu1 %234 }
  0x87   : > { %v253_v17 = vsel %vm245_vm0, %v237_v15, 0  ;;  %v240_v18 = vsel %vm238_vm3, %v235_v16, %v237_v15  ;;  %v480_v39 = vpop.permute.xlu2 %479  ;;  %v933_v15 = vld [vmem:[%s1137_s1 + $0x1c] sm:$0xf] }
  0x88   : > { %288 = vmatpush.bf16.msra.mxu2 %v253_v17  ;;  %v250_v20 = vsel %vm245_vm0, %v240_v18, 0 }
  0x89   : > { %275 = vmatpush.bf16.msra.mxu1 %v250_v20  ;;  %v978_v20 = vmov 0  }
  0x8a   : > { %961 = vset.pattern.permute.xlu0 %v978_v20 }
  0x8b   : > { %909 = vmatmul.msk.bf16.vlgmr.msra.gmra.mxu2 %vm241_vm1, %v906_v21 }
  0x8c   : > { %908 = vmatmul.msk.bf16.vlgmr.msra.gmra.mxu1 %vm241_vm1, %v906_v21 }
  0x8d   : > { %339 = vmatpush.bf16.msrb.mxu1 %v304_v19  ;;  %v800_v19 = vld [vmem:[%s1138_s2] sm:$0xff] }
  0x8e   : > { %v348_v22 = vpop.permute.xlu1 %347  ;;  %v233_v23 = vpop.permute.xlu0 %232  ;;  %803 = vperm.xlu0 %961, %v800_v19  }
  0x8f   : > { %v239_v24 = vsel %vm238_vm3, %v233_v23, %v235_v16  ;;  %v354_v25 = vsel %vm353_vm2, %v348_v22, %v350_v10  ;;  %v608_v47 = vpop.permute.xlu2 %607 }
  0x90   : > { %v247_v27 = vsel %vm245_vm0, %v239_v24, 0  ;;  %v360_v28 = vsel %vm245_vm0, %v354_v25, 0 }
  0x91   : > { %262 = vmatpush.bf16.msra.mxu0 %v247_v27  ;;  %375 = vmatpush.bf16.msrb.mxu2 %v360_v28 }
  0x94   : > { %907 = vmatmul.msk.bf16.vlgmr.msra.gmra.mxu0 %vm241_vm1, %v906_v21  ;;  %v937_v21 = vld [vmem:[%s1137_s1 + $0x20] sm:$0xf] }
  0x95   : > { %326 = vmatpush.bf16.msrb.mxu0 %v301_v26 }
  0x96   : > { %v417_v31 = vpop.permute.xlu1 %416  ;;  %v415_v32 = vpop.permute.xlu0 %414 }
  0x97   : > { %v431_v33 = vsel %vm245_vm0, %v417_v31, 0  ;;  %v419_v34 = vsel %vm418_vm4, %v413_v30, %v415_v32  ;;  %v420_v35 = vsel %vm418_vm4, %v415_v32, %v417_v31  ;;  %v612_v53 = vpop.permute.xlu2 %611 }
  0x98   : > { %v425_v36 = vsel %vm245_vm0, %v419_v34, 0  ;;  %v428_v37 = vsel %vm245_vm0, %v420_v35, 0  ;;  %466 = vmatpush.bf16.msra.mxu3 %v431_v33 }
  0x99   : > { %401 = vmatpush.bf16.msra.mxu0 %v366_v29  ;;  %440 = vmatpush.bf16.msra.mxu1 %v425_v36 }
  0x9a   : > { %453 = vmatpush.bf16.msra.mxu2 %v428_v37 }
  0x9b   : > { %914 = vmatmul.msk.bf16.vlgmr.msrb.gmra.mxu2 %vm241_vm1, %v1041_v14  ;;  %920 = vmatmul.msk.bf16.vlgmr.msra.gmra.mxu3 %vm241_vm1, %v917_v38  ;;  %v315_v22 = vpop.f32.mrf.mxu3 }
  0x9c   : > { %912 = vmatmul.msk.bf16.vlgmr.msrb.gmra.mxu1 %vm241_vm1, %v1032_v9 }
  0x9e   : > { %v478_v40 = vpop.permute.xlu1 %477  ;;  %v482_v41 = vpop.permute.xlu0 %481 }
  0x9f   : > { %v484_v42 = vsel %vm483_vm5, %v478_v40, %v480_v39  ;;  %v485_v43 = vsel %vm483_vm5, %v480_v39, %v482_v41  ;;  %v496_v44 = vsel %vm245_vm0, %v482_v41, 0  ;;  %v673_v63 = vpop.permute.xlu2 %672 }
  0xa0   : > { %v493_v45 = vsel %vm245_vm0, %v485_v43, 0  ;;  %531 = vmatpush.bf16.msrb.mxu2 %v496_v44  ;;  %v490_v46 = vsel %vm245_vm0, %v484_v42, 0 }
  0xa1   : > { %518 = vmatpush.bf16.msrb.mxu1 %v493_v45 }
  0xa3   : > { %v317_v23 = vpop.f32.mrf.mxu3 }
  0xa4   : > { %911 = vmatmul.msk.bf16.vlgmr.msrb.gmra.mxu0 %vm241_vm1, %v1032_v9  ;;  %v626_v9 = vsel %vm245_vm0, %v612_v53, 0 }
  0xa5   : > { %505 = vmatpush.bf16.msrb.mxu0 %v490_v46 }
  0xa6   : > { %v545_v48 = vpop.permute.xlu1 %544  ;;  %v543_v49 = vpop.permute.xlu0 %542 }
  0xa7   : > { %v549_v50 = vsel %vm548_vm6, %v543_v49, %v545_v48  ;;  %v740_v10 = vpop.permute.xlu2 %739 }
  0xa8   : > { %v555_v51 = vsel %vm245_vm0, %v549_v50, 0 }
  0xa9   : > { %570 = vmatpush.bf16.msrb.mxu3 %v555_v51 }
  0xab   : > { %919 = vmatmul.msk.bf16.vlgmr.msra.gmra.mxu2 %vm241_vm1, %v917_v38 }
  0xac   : > { %918 = vmatmul.msk.bf16.vlgmr.msra.gmra.mxu1 %vm241_vm1, %v917_v38  ;;  %926 = vmatmul.msk.bf16.vlgmr.msrb.gmra.mxu3 %vm241_vm1, %v925_v52 }
  0xae   : > { %v547_v54 = vpop.permute.xlu1 %546  ;;  %v610_v55 = vpop.permute.xlu0 %609 }
  0xaf   : > { %v550_v56 = vsel %vm548_vm6, %v545_v48, %v547_v54  ;;  %v561_v57 = vsel %vm245_vm0, %v547_v54, 0  ;;  %v614_v58 = vsel %vm613_vm7, %v608_v47, %v610_v55  ;;  %v615_v59 = vsel %vm613_vm7, %v610_v55, %v612_v53 }
  0xb0   : > { %v620_v60 = vsel %vm245_vm0, %v614_v58, 0  ;;  %v623_v61 = vsel %vm245_vm0, %v615_v59, 0  ;;  %596 = vmatpush.bf16.msra.mxu1 %v561_v57  ;;  %v558_v62 = vsel %vm245_vm0, %v550_v56, 0 }
  0xb1   : > { %635 = vmatpush.bf16.msra.mxu2 %v620_v60  ;;  %648 = vmatpush.bf16.msra.mxu3 %v623_v61 }
  0xb4   : > { %916 = vmatmul.msk.bf16.vlgmr.msra.gmra.mxu0 %vm241_vm1, %v1041_v14 }
  0xb5   : > { %583 = vmatpush.bf16.msra.mxu0 %v558_v62 }
  0xb6   : > { %v677_v0 = vpop.permute.xlu1 %676  ;;  %v675_v1 = vpop.permute.xlu0 %674 }
  0xb7   : > { %v691_v2 = vsel %vm245_vm0, %v677_v0, 0  ;;  %v679_v3 = vsel %vm678_vm8, %v673_v63, %v675_v1  ;;  %v680_v4 = vsel %vm678_vm8, %v675_v1, %v677_v0 }
  0xb8   : > { %726 = vmatpush.bf16.msrb.mxu3 %v691_v2  ;;  %v685_v6 = vsel %vm245_vm0, %v679_v3, 0  ;;  %v688_v7 = vsel %vm245_vm0, %v680_v4, 0 }
  0xbb   : > { %924 = vmatmul.msk.bf16.vlgmr.msrb.gmra.mxu2 %vm241_vm1, %v921_v5 }
  0xbc   : > { %923 = vmatmul.msk.bf16.vlgmr.msrb.gmra.mxu1 %vm241_vm1, %v921_v5  ;;  %931 = vmatmul.msk.bf16.vlgmr.msra.gmra.mxu3 %vm241_vm1, %v929_v8 }
  0xbd   : > { %700 = vmatpush.bf16.msrb.mxu1 %v685_v6  ;;  %713 = vmatpush.bf16.msrb.mxu2 %v688_v7 }
  0xbe   : > { %v742_v11 = vpop.permute.xlu0 %741  ;;  %v738_v16 = vpop.permute.xlu1 %737 }
  0xbf   : > { %v745_v12 = vsel %vm743_vm9, %v740_v10, %v742_v11  ;;  %v756_v14 = vsel %vm245_vm0, %v742_v11, 0  ;;  %v744_v17 = vsel %vm743_vm9, %v738_v16, %v740_v10 }
  0xc0   : > { %v753_v13 = vsel %vm245_vm0, %v745_v12, 0  ;;  %v750_v18 = vsel %vm245_vm0, %v744_v17, 0 }
  0xc4   : > { %922 = vmatmul.msk.bf16.vlgmr.msrb.gmra.mxu0 %vm241_vm1, %v921_v5 }
  0xc5   : > { %661 = vmatpush.bf16.msrb.mxu0 %v626_v9 }
  0xcb   : > { %930 = vmatmul.msk.bf16.vlgmr.msra.gmra.mxu2 %vm241_vm1, %v929_v8 }
  0xcc   : > { %928 = vmatmul.msk.bf16.vlgmr.msra.gmra.mxu1 %vm241_vm1, %v925_v52  ;;  %936 = vmatmul.msk.bf16.vlgmr.msrb.gmra.mxu3 %vm241_vm1, %v933_v15 }
  0xcd   : > { %791 = vmatpush.bf16.msra.mxu2 %v756_v14  ;;  %778 = vmatpush.bf16.msra.mxu1 %v753_v13 }
  0xd4   : > { %927 = vmatmul.msk.bf16.vlgmr.msra.gmra.mxu0 %vm241_vm1, %v925_v52 }
  0xd5   : > { %765 = vmatpush.bf16.msra.mxu0 %v750_v18 }
  0xdb   : > { %935 = vmatmul.msk.bf16.vlgmr.msrb.gmra.mxu2 %vm241_vm1, %v933_v15 }
  0xdc   : > { %934 = vmatmul.msk.bf16.vlgmr.msrb.gmra.mxu1 %vm241_vm1, %v933_v15 }
  0xe4   : > { %932 = vmatmul.msk.bf16.vlgmr.msrb.gmra.mxu0 %vm241_vm1, %v929_v8 }
  0xeb   : > { %940 = vmatmul.msk.bf16.vlgmr.msra.gmra.mxu2 %vm241_vm1, %v937_v21 }
  0xec   : > { %939 = vmatmul.msk.bf16.vlgmr.msra.gmra.mxu1 %vm241_vm1, %v937_v21 }
  0xf4   : > { %938 = vmatmul.msk.bf16.vlgmr.msra.gmra.mxu0 %vm241_vm1, %v937_v21 }
 0x100   : > { %v390_v24 = vpop.f32.mrf.mxu3 }
 0x108   : > { %v392_v26 = vpop.f32.mrf.mxu3 }
 0x109   : > { %v277_v25 = vpop.f32.mrf.mxu1  ;;  %v804_v26 = vpop.permute.xlu0 %803 }
 0x10e   : > { %v290_v27 = vpop.f32.mrf.mxu2 }
 0x111   : > { %v264_v28 = vpop.f32.mrf.mxu0  ;;  %v279_v29 = vpop.f32.mrf.mxu1 }
 0x112   : > { %v316_v30 = vadd.f32 %v315_v22, %v264_v28  ;;  %v810_v28 = vld [vmem:[%s212_s27 + $0x8] sm:$0xf] }
 0x116   : > { %v292_v31 = vpop.f32.mrf.mxu2 }
 0x119   : > { %v266_v32 = vpop.f32.mrf.mxu0  ;;  %v341_v33 = vpop.f32.mrf.mxu1 }
 0x11a   : > { %v342_v34 = vadd.f32 %v341_v33, %v290_v27 }
 0x11e   : > { %v377_v35 = vpop.f32.mrf.mxu2  ;;  %v468_v36 = vpop.f32.mrf.mxu3 }
 0x11f   : > { %v407_v37 = vadd.f32 %v377_v35, %v316_v30  ;;  %v813_v35 = vunpack.c.l.bf16 %v810_v28 }
 0x121   : > { %v328_v38 = vpop.f32.mrf.mxu0  ;;  %v343_v39 = vpop.f32.mrf.mxu1 }
 0x122   : > { %v329_v40 = vadd.f32 %v328_v38, %v277_v25  ;;  %v809_v25 = vld [vmem:[%s212_s27] sm:$0xff] }
 0x123   : > { %v812_v31 = vunpack.c.h.bf16 %v809_v25 }
 0x124   : > { %v408_v41 = vadd.f32 %v390_v24, %v329_v40 }
 0x126   : > { %v379_v42 = vpop.f32.mrf.mxu2  ;;  %v470_v43 = vpop.f32.mrf.mxu3 }
 0x127   : > { %v811_v42 = vunpack.c.l.bf16 %v809_v25 }
 0x129   : > { %v330_v44 = vpop.f32.mrf.mxu0  ;;  %v442_v45 = vpop.f32.mrf.mxu1 }
 0x12a   : > { %v472_v15 = vadd.f32 %v442_v45, %v407_v37 }
 0x12e   : > { %v455_v46 = vpop.f32.mrf.mxu2 }
 0x12f   : > { %v572_v47 = vpop.f32.mrf.mxu3  ;;  %v473_v8 = vadd.f32 %v455_v46, %v408_v41 }
 0x131   : > { %v403_v48 = vpop.f32.mrf.mxu0  ;;  %v444_v49 = vpop.f32.mrf.mxu1 }
 0x132   : > { %v409_v50 = vadd.f32 %v403_v48, %v342_v34 }
 0x134   : > { %v474_v51 = vadd.f32 %v468_v36, %v409_v50 }
 0x136   : > { %v457_v52 = vpop.f32.mrf.mxu2 }
 0x137   : > { %v574_v53 = vpop.f32.mrf.mxu3 }
 0x139   : > { %v405_v54 = vpop.f32.mrf.mxu0  ;;  %v520_v55 = vpop.f32.mrf.mxu1 }
 0x13a   : > { %v538_v10 = vadd.f32 %v520_v55, %v473_v8 }
 0x13e   : > { %v533_v56 = vpop.f32.mrf.mxu2 }
 0x13f   : > { %v650_v57 = vpop.f32.mrf.mxu3  ;;  %v539_v14 = vadd.f32 %v533_v56, %v474_v51 }
 0x141   : > { %v507_v58 = vpop.f32.mrf.mxu0  ;;  %v522_v59 = vpop.f32.mrf.mxu1 }
 0x142   : > { %v537_v19 = vadd.f32 %v507_v58, %v472_v15 }
 0x144   : > { %v602_v27 = vadd.f32 %v572_v47, %v537_v19 }
 0x146   : > { %v535_v60 = vpop.f32.mrf.mxu2 }
 0x147   : > { %v652_v61 = vpop.f32.mrf.mxu3 }
 0x149   : > { %v509_v62 = vpop.f32.mrf.mxu0  ;;  %v598_v63 = vpop.f32.mrf.mxu1 }
 0x14a   : > { %v604_v18 = vadd.f32 %v598_v63, %v539_v14 }
 0x14e   : > { %v637_v0 = vpop.f32.mrf.mxu2 }
 0x14f   : > { %v728_v1 = vpop.f32.mrf.mxu3  ;;  %v667_v30 = vadd.f32 %v637_v0, %v602_v27 }
 0x151   : > { %v585_v2 = vpop.f32.mrf.mxu0  ;;  %v600_v3 = vpop.f32.mrf.mxu1 }
 0x152   : > { %v603_v13 = vadd.f32 %v585_v2, %v538_v10 }
 0x154   : > { %v668_v16 = vadd.f32 %v650_v57, %v603_v13 }
 0x156   : > { %v639_v4 = vpop.f32.mrf.mxu2 }
 0x157   : > { %v730_v5 = vpop.f32.mrf.mxu3 }
 0x159   : > { %v587_v6 = vpop.f32.mrf.mxu0  ;;  %v702_v7 = vpop.f32.mrf.mxu1 }
 0x15a   : > { %v732_v36 = vadd.f32 %v702_v7, %v667_v30 }
 0x15e   : > { %v715_v9 = vpop.f32.mrf.mxu2 }
 0x15f   : > { %v733_v20 = vadd.f32 %v715_v9, %v668_v16 }
 0x161   : > { %v663_v11 = vpop.f32.mrf.mxu0  ;;  %v704_v12 = vpop.f32.mrf.mxu1 }
 0x162   : > { %v669_v21 = vadd.f32 %v663_v11, %v604_v18 }
 0x164   : > { %v734_v29 = vadd.f32 %v728_v1, %v669_v21 }
 0x166   : > { %v717_v17 = vpop.f32.mrf.mxu2 }
 0x169   : > { %v665_v22 = vpop.f32.mrf.mxu0  ;;  %v780_v23 = vpop.f32.mrf.mxu1 }
 0x16a   : > { %v798_v24 = vadd.f32 %v780_v23, %v733_v20 }
 0x16c   : > { %v807_v32 = vadd.f32 %v804_v26, %v798_v24 }
 0x16e   : > { %v793_v33 = vpop.f32.mrf.mxu2  ;;  %v815_v40 = vadd.f32 %v812_v31, %v807_v32 }
 0x16f   : > { %v799_v34 = vadd.f32 %v793_v33, %v734_v29 }
 0x170   : > { %v821_v46 = vmul.f32 0.2, %v815_v40  ;;  %vm818_vm11 = vcmp.ge.f32.partialorder %v815_v40, 0.0 }
 0x171   : > { %v808_v37 = vadd.f32 %v804_v26, %v799_v34  ;;  %v767_v38 = vpop.f32.mrf.mxu0  ;;  %v782_v39 = vpop.f32.mrf.mxu1 }
 0x172   : > { %v797_v41 = vadd.f32 %v767_v38, %v732_v36  ;;  %v824_v53 = vsel %vm818_vm11, %v815_v40, %v821_v46 }
 0x173   : > { %v816_v43 = vadd.f32 %v813_v35, %v808_v37 }
 0x174   : > { %v806_v44 = vadd.f32 %v804_v26, %v797_v41 }
 0x175   : > { %vm819_vm10 = vcmp.ge.f32.partialorder %v816_v43, 0.0  ;;  %v822_v45 = vmul.f32 0.2, %v816_v43 }
 0x176   : > { %v814_v47 = vadd.f32 %v811_v42, %v806_v44  ;;  %v795_v48 = vpop.f32.mrf.mxu2 }
 0x177   : > { %v825_v49 = vsel %vm819_vm10, %v816_v43, %v822_v45 }
 0x178   : > { %v827_v50 = vpack.c.bf16 %v825_v49, %v825_v49  ;;  %vm817_vm13 = vcmp.ge.f32.partialorder %v814_v47, 0.0  ;;  %v820_v51 = vmul.f32 0.2, %v814_v47 }
 0x179   : > { %v769_v52 = vpop.f32.mrf.mxu0 }
 0x17a   : > { %v823_v54 = vsel %vm817_vm13, %v814_v47, %v820_v51  ;;  %830 = vst.msk [vmem:[%s217_s30 + $0x8] sm:$0xf] %vm829_vm12, %v827_v50 }
 0x17b   : > { %v826_v55 = vpack.c.bf16 %v824_v53, %v823_v54 }
 0x17d   : > { %828 = vst [vmem:[%s217_s30] sm:$0xff] %v826_v55 }
 0x17e PF: > { %s14_s15 = sadd.s32 1, %s968_s15  }
 0x17f   : > { %p11_p4 = scmp.ge.s32.totalorder %s14_s15, 4  }
 0x181   :  { %13 = sbr.rel (!%p11_p4) target bundleno = 1 (0x1), region = 77 }

// kernel: _lambda_.15
= control target key start
LH: loop header
LB: loop body
LE: loop exit
PB: predicated region body
PF: predicated region fallthrough
CT: control target
= control target key end

     0   :  { %s2077_s12 = smov 0   ;;  %s2532_s0 = inlined_call_operand.vmem [shape: bf16[2,8,420], index: 0, kind: input, shape index: {}]   ;;  %s2533_s1 = inlined_call_operand.vmem [shape: bf16[25,8,8], index: 1, kind: input, shape index: {}]   ;;  %s2534_s2 = inlined_call_operand.vmem [shape: f32[8,1], index: 2, kind: input, shape index: {}]   ;;  %s2535_s3 = inlined_call_operand.vmem [shape: f32[2,8,320], index: 3, kind: output, shape index: {}]  }
   0x1 LB: > { %s1878_s13 = sadd.s32 4294967295, %s2030_s12   ;;  %p1882_p0 = scmp.ge.s32.totalorder %s2030_s12, 1  ;;  %s2030_s12 = sphi %s2077_s12, %s13_s12  }
   0x2   : > { %p137_p1 = scmp.lt.s32.totalorder %s2030_s12, 3 }
   0x4   : > { %p138_p2 = pnand %p1882_p0, %p137_p1 }
   0x5   : > { %p161_p3 = scmp.lt.s32.totalorder (!%p138_p2), %s1878_s13, 1  ;;  %s2032_s18 = smov (!%p138_p2), 127  }
   0x6   : > { %141 = sbr.rel (%p138_p2) target bundleno = 569 (0x239), region = 32  ;;  %s2033_s19 = smov (!%p138_p2), 126  }
   0x7   : > { %s2034_s20 = smov (!%p138_p2), 125   ;;  %s2035_s21 = smov (!%p138_p2), 124  }
   0x8   : > { %s2036_s22 = smov (!%p138_p2), 108   ;;  %s2037_s23 = smov (!%p138_p2), 107  }
   0x9   : > { %s2038_s24 = smov (!%p138_p2), 106   ;;  %s2039_s25 = smov (!%p138_p2), 105  }
   0xa   : > { %s2040_s26 = smov (!%p138_p2), 104   ;;  %s2041_s27 = smov (!%p138_p2), 88  }
   0xb   : > { %s2537_s13 = smov (!%p161_p3, %s1878_s13), 1  ;;  %s2042_s28 = smov 87   ;;  %vm198_vm0 = vcmask 1043456   ;;  %vm194_vm1 = vcmask 64512   ;;  %v2140_v9 = vld [vmem:[%s2533_s1] sm:$0xf] }
   0xc   : > { %s1987_s14 = sshll.u32 %s2537_s13, 4  ;;  %s2043_s29 = smov 86   ;;  %vm306_vm2 = vcmask 1031168   ;;  %v2155_v14 = vld [vmem:[%s2533_s1 + $0x8] sm:$0xf]  ;;  %vm191_vm3 = vcmask 1039360  }
   0xd   : > { %s165_s17 = scalar_lea.vmem %s2532_s0, %s1987_s14  ;;  %s2044_s5 = smov 85   ;;  %v1886_v21 = vld [vmem:[%s2533_s1 + $0x4] sm:$0xf]  ;;  %vm371_vm4 = vcmask 1022976   ;;  %v1897_v38 = vld [vmem:[%s2533_s1 + $0xc] sm:$0xf] }
   0xe   : > { %v2091_v0 = vld [vmem:[%s165_s17 + $0x8] sm:$0xff]  ;;  %v172_v1 = vld [vmem:[%s165_s17] sm:$0xff]  ;;  %s2045_s6 = smov 84   ;;  %s2046_s9 = smov 68   ;;  %vm436_vm5 = vcmask 1014784   ;;  %vm501_vm6 = vcmask 883712  }
   0xf   : > { %v181_v2 = vunpack.c.l.b16 %v2091_v0  ;;  %v180_v3 = vunpack.c.h.b16 %v172_v1  ;;  %v179_v6 = vunpack.c.l.b16 %v172_v1  ;;  %s2047_s14 = smov 67   ;;  %s2048_s15 = smov 66   ;;  %v2214_v52 = vld [vmem:[%s2533_s1 + $0x14] sm:$0xf]  ;;  %vm566_vm7 = vcmask 875520  }
  0x10   : > { %s2049_s16 = smov 65   ;;  %vm631_vm8 = vcmask 867328   ;;  %vm696_vm9 = vcmask 859136   ;;  %vm761_vm10 = vcmask 850944   ;;  %vm826_vm11 = vcmask 719872  }
  0x11   : > { %v2094_v4 = vpack.c.b16 %v181_v2, %v181_v2  ;;  %v2096_v5 = vpack.c.b16 %v180_v3, %v180_v3  ;;  %v2101_v7 = vpack.c.b16 %v179_v6, %v179_v6  ;;  %vm891_vm12 = vcmask 711680  }
  0x12   : > { %vm956_vm13 = vcmask 703488   ;;  %vm1021_vm14 = vcmask 695296   ;;  %vm1086_vm15 = vcmask 687104  }
  0x13   : > { %189 = vrot.lane.b32.xlu0 %v2094_v4, %s2032_s18  ;;  %187 = vrot.lane.b32.xlu1 %v2096_v5, %s2032_s18  ;;  %v251_v8 = vsel %vm198_vm0, %v2101_v7, 0  ;;  %v257_v19 = vsel %vm198_vm0, %v2094_v4, 0  ;;  %v254_v26 = vsel %vm198_vm0, %v2096_v5, 0 }
  0x14   : > { %302 = vrot.lane.b32.xlu2 %v2096_v5, %s2033_s19  ;;  %266 = vmatpush.bf16.msra.mxu3 %v251_v8 }
  0x17   : > { %1890 = vmatmul.msk.bf16.vlgmr.msra.gmra.mxu3 %vm194_vm1, %v2140_v9 }
  0x1b   : > { %300 = vrot.lane.b32.xlu1 %v2101_v7, %s2033_s19  ;;  %185 = vrot.lane.b32.xlu0 %v2101_v7, %s2032_s18 }
  0x1c   : > { %304 = vrot.lane.b32.xlu2 %v2094_v4, %s2033_s19  ;;  %s2050_s19 = smov 64  }
  0x23   : > { %369 = vrot.lane.b32.xlu1 %v2094_v4, %s2034_s20  ;;  %367 = vrot.lane.b32.xlu0 %v2096_v5, %s2034_s20 }
  0x24   : > { %365 = vrot.lane.b32.xlu2 %v2101_v7, %s2034_s20 }
  0x2b   : > { %430 = vrot.lane.b32.xlu1 %v2101_v7, %s2035_s21  ;;  %434 = vrot.lane.b32.xlu0 %v2094_v4, %s2035_s21 }
  0x2c   : > { %432 = vrot.lane.b32.xlu2 %v2096_v5, %s2035_s21 }
  0x33   : > { %497 = vrot.lane.b32.xlu1 %v2096_v5, %s2036_s22  ;;  %495 = vrot.lane.b32.xlu0 %v2101_v7, %s2036_s22 }
  0x34   : > { %560 = vrot.lane.b32.xlu2 %v2101_v7, %s2037_s23 }
  0x3b   : > { %499 = vrot.lane.b32.xlu1 %v2094_v4, %s2036_s22  ;;  %562 = vrot.lane.b32.xlu0 %v2096_v5, %s2037_s23  ;;  %s2051_s22 = smov 48  }
  0x3c   : > { %564 = vrot.lane.b32.xlu2 %v2094_v4, %s2037_s23  ;;  %s2052_s23 = smov 47  }
  0x43   : > { %629 = vrot.lane.b32.xlu1 %v2094_v4, %s2038_s24  ;;  %627 = vrot.lane.b32.xlu0 %v2096_v5, %s2038_s24 }
  0x44   : > { %625 = vrot.lane.b32.xlu2 %v2101_v7, %s2038_s24 }
  0x4b   : > { %690 = vrot.lane.b32.xlu1 %v2101_v7, %s2039_s25  ;;  %694 = vrot.lane.b32.xlu0 %v2094_v4, %s2039_s25 }
  0x4c   : > { %692 = vrot.lane.b32.xlu2 %v2096_v5, %s2039_s25 }
  0x53   : > { %757 = vrot.lane.b32.xlu1 %v2096_v5, %s2040_s26  ;;  %755 = vrot.lane.b32.xlu0 %v2101_v7, %s2040_s26 }
  0x54   : > { %820 = vrot.lane.b32.xlu2 %v2101_v7, %s2041_s27 }
  0x5b   : > { %759 = vrot.lane.b32.xlu1 %v2094_v4, %s2040_s26  ;;  %822 = vrot.lane.b32.xlu0 %v2096_v5, %s2041_s27 }
  0x5c   : > { %824 = vrot.lane.b32.xlu2 %v2094_v4, %s2041_s27 }
  0x63   : > { %889 = vrot.lane.b32.xlu1 %v2094_v4, %s2042_s28  ;;  %887 = vrot.lane.b32.xlu0 %v2096_v5, %s2042_s28 }
  0x64   : > { %885 = vrot.lane.b32.xlu2 %v2101_v7, %s2042_s28  ;;  %s2053_s28 = smov 46  }
  0x6b   : > { %950 = vrot.lane.b32.xlu1 %v2101_v7, %s2043_s29  ;;  %954 = vrot.lane.b32.xlu0 %v2094_v4, %s2043_s29 }
  0x6c   : > { %952 = vrot.lane.b32.xlu2 %v2096_v5, %s2043_s29  ;;  %s2054_s29 = smov 45  }
  0x6e   : > { %v303_v10 = vpop.permute.xlu2 %302 }
  0x73   : > { %1017 = vrot.lane.b32.xlu1 %v2096_v5, %s2044_s5  ;;  %1015 = vrot.lane.b32.xlu0 %v2101_v7, %s2044_s5 }
  0x74   : > { %1080 = vrot.lane.b32.xlu2 %v2101_v7, %s2045_s6 }
  0x76   : > { %v305_v11 = vpop.permute.xlu2 %304 }
  0x77   : > { %v308_v12 = vsel %vm306_vm2, %v303_v10, %v305_v11  ;;  %v319_v29 = vsel %vm198_vm0, %v305_v11, 0 }
  0x78   : > { %v316_v13 = vsel %vm198_vm0, %v308_v12, 0  ;;  %v2245_v12 = vld [vmem:[%s2533_s1 + $0x18] sm:$0xf] }
  0x79   : > { %341 = vmatpush.bf16.msrb.mxu3 %v316_v13 }
  0x7b   : > { %1019 = vrot.lane.b32.xlu1 %v2094_v4, %s2044_s5  ;;  %1082 = vrot.lane.b32.xlu0 %v2096_v5, %s2045_s6  ;;  %s2055_s5 = smov 44  }
  0x7c   : > { %1084 = vrot.lane.b32.xlu2 %v2094_v4, %s2045_s6  ;;  %1895 = vmatmul.msk.bf16.vlgmr.msrb.gmra.mxu3 %vm194_vm1, %v2155_v14 }
  0x7e   : > { %v366_v30 = vpop.permute.xlu2 %365 }
  0x83   : > { %1149 = vrot.lane.b32.xlu1 %v2094_v4, %s2046_s9  ;;  %1147 = vrot.lane.b32.xlu0 %v2096_v5, %s2046_s9 }
  0x84   : > { %1145 = vrot.lane.b32.xlu2 %v2101_v7, %s2046_s9 }
  0x85   : > { %v190_v15 = vpop.permute.xlu0 %189  ;;  %v188_v16 = vpop.permute.xlu1 %187 }
  0x86   : > { %v206_v17 = vsel %vm198_vm0, %v190_v15, 0  ;;  %v193_v18 = vsel %vm191_vm3, %v188_v16, %v190_v15  ;;  %v433_v39 = vpop.permute.xlu2 %432 }
  0x87   : > { %241 = vmatpush.bf16.msra.mxu2 %v206_v17  ;;  %v203_v20 = vsel %vm198_vm0, %v193_v18, 0 }
  0x88   : > { %228 = vmatpush.bf16.msra.mxu1 %v203_v20 }
  0x8a   : > { %1889 = vmatmul.msk.bf16.vlgmr.msra.gmra.mxu2 %vm194_vm1, %v1886_v21 }
  0x8b   : > { %1888 = vmatmul.msk.bf16.vlgmr.msra.gmra.mxu1 %vm194_vm1, %v1886_v21  ;;  %1210 = vrot.lane.b32.xlu1 %v2101_v7, %s2047_s14 }
  0x8c   : > { %292 = vmatpush.bf16.msrb.mxu1 %v257_v19  ;;  %1214 = vrot.lane.b32.xlu0 %v2094_v4, %s2047_s14 }
  0x8d   : > { %1212 = vrot.lane.b32.xlu2 %v2096_v5, %s2047_s14  ;;  %v301_v22 = vpop.permute.xlu1 %300  ;;  %v186_v23 = vpop.permute.xlu0 %185 }
  0x8e   : > { %v192_v24 = vsel %vm191_vm3, %v186_v23, %v188_v16  ;;  %v307_v25 = vsel %vm306_vm2, %v301_v22, %v303_v10  ;;  %v561_v47 = vpop.permute.xlu2 %560  ;;  %vm1151_vm2 = vcmask 556032   ;;  %vm1216_vm3 = vcmask 547840  }
  0x8f   : > { %v200_v27 = vsel %vm198_vm0, %v192_v24, 0  ;;  %v313_v28 = vsel %vm198_vm0, %v307_v25, 0  ;;  %v1913_v25 = vld [vmem:[%s2533_s1 + $0x1c] sm:$0xf] }
  0x90   : > { %215 = vmatpush.bf16.msra.mxu0 %v200_v27  ;;  %328 = vmatpush.bf16.msrb.mxu2 %v313_v28  ;;  %v1470_v27 = vunpack.c.h.b16 %v2091_v0 }
  0x93   : > { %1887 = vmatmul.msk.bf16.vlgmr.msra.gmra.mxu0 %vm194_vm1, %v1886_v21  ;;  %1277 = vrot.lane.b32.xlu1 %v2096_v5, %s2048_s15 }
  0x94   : > { %279 = vmatpush.bf16.msrb.mxu0 %v254_v26  ;;  %1275 = vrot.lane.b32.xlu0 %v2101_v7, %s2048_s15 }
  0x95   : > { %v370_v31 = vpop.permute.xlu1 %369  ;;  %v368_v32 = vpop.permute.xlu0 %367  ;;  %1340 = vrot.lane.b32.xlu2 %v2101_v7, %s2049_s16 }
  0x96   : > { %v384_v33 = vsel %vm198_vm0, %v370_v31, 0  ;;  %v372_v34 = vsel %vm371_vm4, %v366_v30, %v368_v32  ;;  %v373_v35 = vsel %vm371_vm4, %v368_v32, %v370_v31  ;;  %v565_v53 = vpop.permute.xlu2 %564  ;;  %vm1281_vm4 = vcmask 539648  }
  0x97   : > { %v378_v36 = vsel %vm198_vm0, %v372_v34, 0  ;;  %v381_v37 = vsel %vm198_vm0, %v373_v35, 0  ;;  %419 = vmatpush.bf16.msra.mxu3 %v384_v33  ;;  %v579_v16 = vsel %vm198_vm0, %v565_v53, 0  ;;  %v2291_v35 = vld [vmem:[%s2533_s1 + $0x24] sm:$0xf] }
  0x98   : > { %354 = vmatpush.bf16.msra.mxu0 %v319_v29  ;;  %393 = vmatpush.bf16.msra.mxu1 %v378_v36  ;;  %v1471_v29 = vpack.c.b16 %v1470_v27, %v1470_v27 }
  0x99   : > { %406 = vmatpush.bf16.msra.mxu2 %v381_v37 }
  0x9a   : > { %1894 = vmatmul.msk.bf16.vlgmr.msrb.gmra.mxu2 %vm194_vm1, %v2155_v14  ;;  %1900 = vmatmul.msk.bf16.vlgmr.msra.gmra.mxu3 %vm194_vm1, %v1897_v38 }
  0x9b   : > { %1892 = vmatmul.msk.bf16.vlgmr.msrb.gmra.mxu1 %vm194_vm1, %v2140_v9  ;;  %1279 = vrot.lane.b32.xlu1 %v2094_v4, %s2048_s15 }
  0x9c   : > { %1342 = vrot.lane.b32.xlu0 %v2096_v5, %s2049_s16 }
  0x9d   : > { %v431_v40 = vpop.permute.xlu1 %430  ;;  %v435_v41 = vpop.permute.xlu0 %434  ;;  %1344 = vrot.lane.b32.xlu2 %v2094_v4, %s2049_s16 }
  0x9e   : > { %v437_v42 = vsel %vm436_vm5, %v431_v40, %v433_v39  ;;  %v438_v43 = vsel %vm436_vm5, %v433_v39, %v435_v41  ;;  %v449_v44 = vsel %vm198_vm0, %v435_v41, 0  ;;  %v626_v63 = vpop.permute.xlu2 %625  ;;  %vm1346_vm5 = vcmask 531456  }
  0x9f   : > { %v446_v45 = vsel %vm198_vm0, %v438_v43, 0  ;;  %484 = vmatpush.bf16.msrb.mxu2 %v449_v44  ;;  %v443_v46 = vsel %vm198_vm0, %v437_v42, 0 }
  0xa0   : > { %471 = vmatpush.bf16.msrb.mxu1 %v446_v45 }
  0xa3   : > { %1891 = vmatmul.msk.bf16.vlgmr.msrb.gmra.mxu0 %vm194_vm1, %v2140_v9  ;;  %1409 = vrot.lane.b32.xlu1 %v2094_v4, %s2050_s19  ;;  %v1901_v9 = vld [vmem:[%s2533_s1 + $0x10] sm:$0xf] }
  0xa4   : > { %458 = vmatpush.bf16.msrb.mxu0 %v443_v46  ;;  %1407 = vrot.lane.b32.xlu0 %v2096_v5, %s2050_s19  ;;  %v1917_v46 = vld [vmem:[%s2533_s1 + $0x20] sm:$0xf] }
  0xa5   : > { %v498_v48 = vpop.permute.xlu1 %497  ;;  %v496_v49 = vpop.permute.xlu0 %495  ;;  %1405 = vrot.lane.b32.xlu2 %v2101_v7, %s2050_s19  ;;  %s1988_s19 = smul.u32 24, %s2537_s13 }
  0xa6   : > { %v502_v50 = vsel %vm501_vm6, %v496_v49, %v498_v48  ;;  %v693_v13 = vpop.permute.xlu2 %692  ;;  %v2320_v49 = vld [vmem:[%s2533_s1 + $0x28] sm:$0xf] }
  0xa7   : > { %v508_v51 = vsel %vm198_vm0, %v502_v50, 0 }
  0xa8   : > { %523 = vmatpush.bf16.msrb.mxu3 %v508_v51 }
  0xaa   : > { %1899 = vmatmul.msk.bf16.vlgmr.msra.gmra.mxu2 %vm194_vm1, %v1897_v38 }
  0xab   : > { %1898 = vmatmul.msk.bf16.vlgmr.msra.gmra.mxu1 %vm194_vm1, %v1897_v38  ;;  %1906 = vmatmul.msk.bf16.vlgmr.msrb.gmra.mxu3 %vm194_vm1, %v2214_v52 }
  0xac   : > { %1476 = vrot.lane.b32.xlu0 %v2094_v4, %s2051_s22  ;;  %1478 = vrot.lane.b32.xlu1 %v1471_v29, %s2051_s22 }
  0xad   : > { %v500_v54 = vpop.permute.xlu1 %499  ;;  %v563_v55 = vpop.permute.xlu0 %562  ;;  %1472 = vrot.lane.b32.xlu2 %v2101_v7, %s2051_s22 }
  0xae   : > { %v503_v56 = vsel %vm501_vm6, %v498_v48, %v500_v54  ;;  %v514_v57 = vsel %vm198_vm0, %v500_v54, 0  ;;  %v567_v58 = vsel %vm566_vm7, %v561_v47, %v563_v55  ;;  %v568_v59 = vsel %vm566_vm7, %v563_v55, %v565_v53  ;;  %v821_v17 = vpop.permute.xlu2 %820 }
  0xaf   : > { %v573_v60 = vsel %vm198_vm0, %v567_v58, 0  ;;  %v576_v61 = vsel %vm198_vm0, %v568_v59, 0  ;;  %549 = vmatpush.bf16.msra.mxu1 %v514_v57  ;;  %v511_v62 = vsel %vm198_vm0, %v503_v56, 0  ;;  %vm1411_vm6 = vcmask 523264  }
  0xb0   : > { %588 = vmatpush.bf16.msra.mxu2 %v573_v60  ;;  %601 = vmatpush.bf16.msra.mxu3 %v576_v61  ;;  %vm1480_vm7 = vcmask 392192  }
  0xb3   : > { %1896 = vmatmul.msk.bf16.vlgmr.msra.gmra.mxu0 %vm194_vm1, %v2155_v14 }
  0xb4   : > { %536 = vmatpush.bf16.msra.mxu0 %v511_v62  ;;  %1474 = vrot.lane.b32.xlu0 %v2096_v5, %s2051_s22  ;;  %s170_s22 = scalar_lea.vmem %s2535_s3, %s1988_s19 }
  0xb5   : > { %v630_v1 = vpop.permute.xlu1 %629  ;;  %v628_v2 = vpop.permute.xlu0 %627  ;;  %1542 = vrot.lane.b32.xlu2 %v2096_v5, %s2052_s23  ;;  %1540 = vrot.lane.b32.xlu1 %v2101_v7, %s2052_s23 }
  0xb6   : > { %v644_v3 = vsel %vm198_vm0, %v630_v1, 0  ;;  %v632_v6 = vsel %vm631_vm8, %v626_v63, %v628_v2  ;;  %v633_v8 = vsel %vm631_vm8, %v628_v2, %v630_v1  ;;  %v825_v26 = vpop.permute.xlu2 %824  ;;  %v1929_v63 = vld [vmem:[%s2533_s1 + $0x2c] sm:$0xf]  ;;  %vm1548_vm8 = vcmask 384000  }
  0xb7   : > { %679 = vmatpush.bf16.msrb.mxu3 %v644_v3  ;;  %v638_v10 = vsel %vm198_vm0, %v632_v6, 0  ;;  %v641_v11 = vsel %vm198_vm0, %v633_v8, 0  ;;  %v839_v53 = vsel %vm198_vm0, %v825_v26, 0 }
  0xba   : > { %1904 = vmatmul.msk.bf16.vlgmr.msrb.gmra.mxu2 %vm194_vm1, %v1901_v9 }
  0xbb   : > { %1903 = vmatmul.msk.bf16.vlgmr.msrb.gmra.mxu1 %vm194_vm1, %v1901_v9  ;;  %1911 = vmatmul.msk.bf16.vlgmr.msra.gmra.mxu3 %vm194_vm1, %v2245_v12 }
  0xbc   : > { %653 = vmatpush.bf16.msrb.mxu1 %v638_v10  ;;  %666 = vmatpush.bf16.msrb.mxu2 %v641_v11 }
  0xbd   : > { %v691_v14 = vpop.permute.xlu1 %690  ;;  %v695_v15 = vpop.permute.xlu0 %694  ;;  %1608 = vrot.lane.b32.xlu0 %v2101_v7, %s2053_s28  ;;  %1544 = vrot.lane.b32.xlu2 %v2094_v4, %s2052_s23 }
  0xbe   : > { %v698_v20 = vsel %vm696_vm9, %v693_v13, %v695_v15  ;;  %v709_v24 = vsel %vm198_vm0, %v695_v15, 0  ;;  %v697_v30 = vsel %vm696_vm9, %v691_v14, %v693_v13  ;;  %1610 = vrot.lane.b32.xlu1 %v2096_v5, %s2053_s28  ;;  %v886_v42 = vpop.permute.xlu2 %885  ;;  %v2353_v13 = vld [vmem:[%s2533_s1 + $0x34] sm:$0xf]  ;;  %vm1616_vm9 = vcmask 375808  }
  0xbf   : > { %v706_v23 = vsel %vm198_vm0, %v698_v20, 0  ;;  %v703_v0 = vsel %vm198_vm0, %v697_v30, 0 }
  0xc3   : > { %1902 = vmatmul.msk.bf16.vlgmr.msrb.gmra.mxu0 %vm194_vm1, %v1901_v9 }
  0xc4   : > { %614 = vmatpush.bf16.msrb.mxu0 %v579_v16 }
  0xc5   : > { %v758_v18 = vpop.permute.xlu1 %757  ;;  %v756_v19 = vpop.permute.xlu0 %755  ;;  %1678 = vrot.lane.b32.xlu2 %v2096_v5, %s2054_s29  ;;  %1546 = vrot.lane.b32.xlu0 %v1471_v29, %s2052_s23 }
  0xc6   : > { %v762_v21 = vsel %vm761_vm10, %v756_v19, %v758_v18  ;;  %1612 = vrot.lane.b32.xlu1 %v2094_v4, %s2053_s28 }
  0xc7   : > { %v768_v22 = vsel %vm198_vm0, %v762_v21, 0 }
  0xc8   : > { %783 = vmatpush.bf16.msra.mxu3 %v768_v22 }
  0xca   : > { %1910 = vmatmul.msk.bf16.vlgmr.msra.gmra.mxu2 %vm194_vm1, %v2245_v12 }
  0xcb   : > { %1908 = vmatmul.msk.bf16.vlgmr.msra.gmra.mxu1 %vm194_vm1, %v2214_v52  ;;  %1916 = vmatmul.msk.bf16.vlgmr.msrb.gmra.mxu3 %vm194_vm1, %v1913_v25 }
  0xcc   : > { %744 = vmatpush.bf16.msra.mxu2 %v709_v24  ;;  %731 = vmatpush.bf16.msra.mxu1 %v706_v23 }
  0xcd   : > { %v823_v28 = vpop.permute.xlu0 %822  ;;  %1676 = vrot.lane.b32.xlu2 %v2101_v7, %s2054_s29  ;;  %v760_v33 = vpop.permute.xlu1 %759  ;;  %1680 = vrot.lane.b32.xlu0 %v2094_v4, %s2054_s29 }
  0xce   : > { %v828_v31 = vsel %vm826_vm11, %v823_v28, %v825_v26  ;;  %v827_v34 = vsel %vm826_vm11, %v821_v17, %v823_v28  ;;  %v774_v36 = vsel %vm198_vm0, %v760_v33, 0  ;;  %v763_v40 = vsel %vm761_vm10, %v758_v18, %v760_v33  ;;  %1614 = vrot.lane.b32.xlu1 %v1471_v29, %s2053_s28 }
  0xcf   : > { %v836_v32 = vsel %vm198_vm0, %v828_v31, 0  ;;  %v833_v37 = vsel %vm198_vm0, %v827_v34, 0  ;;  %v771_v41 = vsel %vm198_vm0, %v763_v40, 0  ;;  %v2375_v34 = vld [vmem:[%s2533_s1 + $0x38] sm:$0xf]  ;;  %vm1684_vm10 = vcmask 367616  }
  0xd0   : > { %861 = vmatpush.bf16.msrb.mxu3 %v836_v32  ;;  %vm1752_vm11 = vcmask 359424  }
  0xd3   : > { %1907 = vmatmul.msk.bf16.vlgmr.msra.gmra.mxu0 %vm194_vm1, %v2214_v52  ;;  %v268_v52 = vpop.f32.mrf.mxu3 }
  0xd4   : > { %718 = vmatpush.bf16.msra.mxu0 %v703_v0 }
  0xd5   : > { %1750 = vrot.lane.b32.xlu2 %v1471_v29, %s2055_s5  ;;  %v890_v38 = vpop.permute.xlu1 %889  ;;  %1682 = vrot.lane.b32.xlu0 %v1471_v29, %s2054_s29  ;;  %v888_v43 = vpop.permute.xlu0 %887  ;;  %v1933_v29 = vld [vmem:[%s2533_s1 + $0x30] sm:$0xf] }
  0xd6   : > { %v904_v39 = vsel %vm198_vm0, %v890_v38, 0  ;;  %v892_v44 = vsel %vm891_vm12, %v886_v42, %v888_v43  ;;  %v893_v45 = vsel %vm891_vm12, %v888_v43, %v890_v38  ;;  %1748 = vrot.lane.b32.xlu1 %v2094_v4, %s2055_s5 }
  0xd7   : > { %v898_v47 = vsel %vm198_vm0, %v892_v44, 0  ;;  %v901_v48 = vsel %vm198_vm0, %v893_v45, 0 }
  0xda   : > { %1915 = vmatmul.msk.bf16.vlgmr.msrb.gmra.mxu2 %vm194_vm1, %v1913_v25 }
  0xdb   : > { %1914 = vmatmul.msk.bf16.vlgmr.msrb.gmra.mxu1 %vm194_vm1, %v1913_v25  ;;  %1922 = vmatmul.msk.bf16.vlgmr.msra.gmra.mxu3 %vm194_vm1, %v2291_v35  ;;  %v270_v60 = vpop.f32.mrf.mxu3 }
  0xdc   : > { %848 = vmatpush.bf16.msrb.mxu2 %v833_v37  ;;  %809 = vmatpush.bf16.msrb.mxu1 %v774_v36 }
  0xdd   : > { %939 = vmatpush.bf16.msra.mxu3 %v904_v39  ;;  %1744 = vrot.lane.b32.xlu0 %v2101_v7, %s2055_s5  ;;  %v951_v50 = vpop.permute.xlu1 %950  ;;  %v953_v7 = vpop.permute.xlu2 %952 }
  0xde   : > { %v955_v51 = vpop.permute.xlu0 %954  ;;  %v957_v1 = vsel %vm956_vm13, %v951_v50, %v953_v7  ;;  %1746 = vrot.lane.b32.xlu1 %v2096_v5, %s2055_s5 }
  0xdf   : > { %v958_v57 = vsel %vm956_vm13, %v953_v7, %v955_v51  ;;  %v969_v62 = vsel %vm198_vm0, %v955_v51, 0  ;;  %v963_v8 = vsel %vm198_vm0, %v957_v1, 0 }
  0xe0   : > { %v966_v61 = vsel %vm198_vm0, %v958_v57, 0 }
  0xe3   : > { %1912 = vmatmul.msk.bf16.vlgmr.msrb.gmra.mxu0 %vm194_vm1, %v2245_v12 }
  0xe4   : > { %796 = vmatpush.bf16.msrb.mxu0 %v771_v41 }
  0xe5   : > { %v1018_v54 = vpop.permute.xlu1 %1017  ;;  %v1081_v55 = vpop.permute.xlu2 %1080 }
  0xe6   : > { %v1016_v56 = vpop.permute.xlu0 %1015 }
  0xe7   : > { %v1022_v58 = vsel %vm1021_vm14, %v1016_v56, %v1018_v54 }
  0xe8   : > { %v1028_v59 = vsel %vm198_vm0, %v1022_v58, 0  ;;  %v1945_v58 = vld [vmem:[%s2533_s1 + $0x3c] sm:$0xf] }
  0xea   : > { %1920 = vmatmul.msk.bf16.vlgmr.msra.gmra.mxu2 %vm194_vm1, %v1917_v46 }
  0xeb   : > { %1919 = vmatmul.msk.bf16.vlgmr.msra.gmra.mxu1 %vm194_vm1, %v1917_v46  ;;  %1927 = vmatmul.msk.bf16.vlgmr.msrb.gmra.mxu3 %vm194_vm1, %v2320_v49 }
  0xec   : > { %913 = vmatpush.bf16.msra.mxu1 %v898_v47  ;;  %926 = vmatpush.bf16.msra.mxu2 %v901_v48 }
  0xed   : > { %1043 = vmatpush.bf16.msrb.mxu3 %v1028_v59  ;;  %v1085_v4 = vpop.permute.xlu2 %1084  ;;  %v1020_v10 = vpop.permute.xlu1 %1019 }
  0xee   : > { %v1083_v2 = vpop.permute.xlu0 %1082  ;;  %v1034_v5 = vsel %vm198_vm0, %v1020_v10, 0  ;;  %v1023_v19 = vsel %vm1021_vm14, %v1018_v54, %v1020_v10  ;;  %v1099_v43 = vsel %vm198_vm0, %v1085_v4, 0 }
  0xef   : > { %v1088_v3 = vsel %vm1086_vm15, %v1083_v2, %v1085_v4  ;;  %v1087_v11 = vsel %vm1086_vm15, %v1081_v55, %v1083_v2  ;;  %v1031_v23 = vsel %vm198_vm0, %v1023_v19, 0 }
  0xf0   : > { %v1096_v6 = vsel %vm198_vm0, %v1088_v3, 0  ;;  %v1093_v14 = vsel %vm198_vm0, %v1087_v11, 0 }
  0xf3   : > { %1918 = vmatmul.msk.bf16.vlgmr.msra.gmra.mxu0 %vm194_vm1, %v1917_v46 }
  0xf4   : > { %874 = vmatpush.bf16.msra.mxu0 %v839_v53 }
  0xf5   : > { %v1150_v16 = vpop.permute.xlu1 %1149  ;;  %v1146_v24 = vpop.permute.xlu2 %1145 }
  0xf6   : > { %v1164_v17 = vsel %vm198_vm0, %v1150_v16, 0  ;;  %v1148_v25 = vpop.permute.xlu0 %1147 }
  0xf7   : > { %v1152_v27 = vsel %vm1151_vm2, %v1146_v24, %v1148_v25  ;;  %v1153_v28 = vsel %vm1151_vm2, %v1148_v25, %v1150_v16 }
  0xf8   : > { %v1158_v0 = vsel %vm198_vm0, %v1152_v27, 0  ;;  %v1161_v33 = vsel %vm198_vm0, %v1153_v28, 0 }
  0xfa   : > { %1926 = vmatmul.msk.bf16.vlgmr.msrb.gmra.mxu2 %vm194_vm1, %v2320_v49 }
  0xfb   : > { %1924 = vmatmul.msk.bf16.vlgmr.msrb.gmra.mxu1 %vm194_vm1, %v2291_v35  ;;  %1932 = vmatmul.msk.bf16.vlgmr.msra.gmra.mxu3 %vm194_vm1, %v1929_v63 }
  0xfc   : > { %1004 = vmatpush.bf16.msrb.mxu2 %v969_v62  ;;  %991 = vmatpush.bf16.msrb.mxu1 %v966_v61 }
  0xfd   : > { %1121 = vmatpush.bf16.msra.mxu3 %v1096_v6  ;;  %v1213_v36 = vpop.permute.xlu2 %1212 }
  0xfe   : > { %v1215_v40 = vpop.permute.xlu0 %1214 }
  0xff   : > { %v343_v9 = vpop.f32.mrf.mxu3  ;;  %v1218_v50 = vsel %vm1216_vm3, %v1213_v36, %v1215_v40  ;;  %v1229_v57 = vsel %vm198_vm0, %v1215_v40, 0 }
 0x100   : > { %v1226_v56 = vsel %vm198_vm0, %v1218_v50, 0 }
 0x103   : > { %1923 = vmatmul.msk.bf16.vlgmr.msrb.gmra.mxu0 %vm194_vm1, %v2291_v35  ;;  %v1211_v35 = vpop.permute.xlu1 %1210 }
 0x104   : > { %978 = vmatpush.bf16.msrb.mxu0 %v963_v8  ;;  %v1217_v62 = vsel %vm1216_vm3, %v1211_v35, %v1213_v36 }
 0x105   : > { %v1341_v46 = vpop.permute.xlu2 %1340 }
 0x106   : > { %v1276_v7 = vpop.permute.xlu0 %1275 }
 0x107   : > { %v345_v15 = vpop.f32.mrf.mxu3 }
 0x108   : > { %v230_v12 = vpop.f32.mrf.mxu1 }
 0x10a   : > { %1931 = vmatmul.msk.bf16.vlgmr.msra.gmra.mxu2 %vm194_vm1, %v1929_v63 }
 0x10b   : > { %1930 = vmatmul.msk.bf16.vlgmr.msra.gmra.mxu1 %vm194_vm1, %v1929_v63  ;;  %1938 = vmatmul.msk.bf16.vlgmr.msrb.gmra.mxu3 %vm194_vm1, %v2353_v13  ;;  %v1278_v47 = vpop.permute.xlu1 %1277 }
 0x10c   : > { %1108 = vmatpush.bf16.msra.mxu2 %v1093_v14  ;;  %1069 = vmatpush.bf16.msra.mxu1 %v1034_v5  ;;  %v1282_v51 = vsel %vm1281_vm4, %v1276_v7, %v1278_v47 }
 0x10d   : > { %v243_v18 = vpop.f32.mrf.mxu2  ;;  %1199 = vmatpush.bf16.msrb.mxu3 %v1164_v17  ;;  %v1288_v54 = vsel %vm198_vm0, %v1282_v51, 0  ;;  %v2395_v59 = vpop.permute.xlu2 %1344  ;;  %v2406_v17 = vld [vmem:[%s2533_s1 + $0x44] sm:$0xf] }
 0x10e   : > { %v1343_v4 = vpop.permute.xlu0 %1342 }
 0x10f   : > { %v1348_v1 = vsel %vm1346_vm5, %v1343_v4, %v2395_v59  ;;  %v1347_v14 = vsel %vm1346_vm5, %v1341_v46, %v1343_v4 }
 0x110   : > { %v217_v20 = vpop.f32.mrf.mxu0  ;;  %v232_v21 = vpop.f32.mrf.mxu1  ;;  %v1356_v6 = vsel %vm198_vm0, %v1348_v1, 0 }
 0x111   : > { %v269_v22 = vadd.f32 %v268_v52, %v217_v20  ;;  %v1353_v20 = vsel %vm198_vm0, %v1347_v14, 0 }
 0x113   : > { %1928 = vmatmul.msk.bf16.vlgmr.msra.gmra.mxu0 %vm194_vm1, %v2320_v49  ;;  %v1280_v11 = vpop.permute.xlu1 %1279 }
 0x114   : > { %1056 = vmatpush.bf16.msra.mxu0 %v1031_v23  ;;  %v1294_v19 = vsel %vm198_vm0, %v1280_v11, 0  ;;  %v1283_v25 = vsel %vm1281_vm4, %v1278_v47, %v1280_v11 }
 0x115   : > { %v245_v26 = vpop.f32.mrf.mxu2 }
 0x118   : > { %v219_v30 = vpop.f32.mrf.mxu0  ;;  %v294_v31 = vpop.f32.mrf.mxu1 }
 0x119   : > { %v295_v32 = vadd.f32 %v294_v31, %v243_v18  ;;  %v1291_v30 = vsel %vm198_vm0, %v1283_v25, 0  ;;  %v1406_v31 = vpop.permute.xlu2 %1405 }
 0x11a   : > { %1936 = vmatmul.msk.bf16.vlgmr.msrb.gmra.mxu2 %vm194_vm1, %v1933_v29 }
 0x11b   : > { %1935 = vmatmul.msk.bf16.vlgmr.msrb.gmra.mxu1 %vm194_vm1, %v1933_v29  ;;  %1943 = vmatmul.msk.bf16.vlgmr.msra.gmra.mxu3 %vm194_vm1, %v2375_v34  ;;  %v1410_v21 = vpop.permute.xlu1 %1409 }
 0x11c   : > { %1173 = vmatpush.bf16.msrb.mxu1 %v1158_v0  ;;  %1186 = vmatpush.bf16.msrb.mxu2 %v1161_v33  ;;  %v1424_v23 = vsel %vm198_vm0, %v1410_v21, 0 }
 0x11d   : > { %v330_v37 = vpop.f32.mrf.mxu2  ;;  %v421_v38 = vpop.f32.mrf.mxu3  ;;  %1303 = vmatpush.bf16.msra.mxu3 %v1288_v54 }
 0x11e   : > { %v360_v39 = vadd.f32 %v330_v37, %v269_v22 }
 0x120   : > { %v281_v41 = vpop.f32.mrf.mxu0  ;;  %v296_v42 = vpop.f32.mrf.mxu1 }
 0x121   : > { %v282_v44 = vadd.f32 %v281_v41, %v230_v12 }
 0x123   : > { %v361_v45 = vadd.f32 %v343_v9, %v282_v44  ;;  %1934 = vmatmul.msk.bf16.vlgmr.msrb.gmra.mxu0 %vm194_vm1, %v1933_v29  ;;  %v1223_v9 = vsel %vm198_vm0, %v1217_v62, 0  ;;  %v1479_v33 = vpop.permute.xlu1 %1478  ;;  %v2430_v44 = vld [vmem:[%s2533_s1 + $0x48] sm:$0xf] }
 0x124   : > { %1134 = vmatpush.bf16.msrb.mxu0 %v1099_v43 }
 0x125   : > { %v332_v48 = vpop.f32.mrf.mxu2  ;;  %v423_v49 = vpop.f32.mrf.mxu3 }
 0x128   : > { %v283_v52 = vpop.f32.mrf.mxu0  ;;  %v395_v53 = vpop.f32.mrf.mxu1 }
 0x129   : > { %v425_v55 = vadd.f32 %v395_v53, %v360_v39  ;;  %v1949_v39 = vld [vmem:[%s2533_s1 + $0x40] sm:$0xf]  ;;  %v1359_v52 = vsel %vm198_vm0, %v2395_v59, 0 }
 0x12a   : > { %1942 = vmatmul.msk.bf16.vlgmr.msra.gmra.mxu2 %vm194_vm1, %v2375_v34 }
 0x12b   : > { %1940 = vmatmul.msk.bf16.vlgmr.msra.gmra.mxu1 %vm194_vm1, %v2353_v13  ;;  %1948 = vmatmul.msk.bf16.vlgmr.msrb.gmra.mxu3 %vm194_vm1, %v1945_v58  ;;  %v1541_v47 = vpop.permute.xlu1 %1540 }
 0x12c   : > { %1264 = vmatpush.bf16.msra.mxu2 %v1229_v57  ;;  %1251 = vmatpush.bf16.msra.mxu1 %v1226_v56 }
 0x12d   : > { %v408_v60 = vpop.f32.mrf.mxu2  ;;  %1381 = vmatpush.bf16.msrb.mxu3 %v1356_v6 }
 0x12e   : > { %v426_v61 = vadd.f32 %v408_v60, %v361_v45  ;;  %v525_v63 = vpop.f32.mrf.mxu3  ;;  %v1473_v45 = vpop.permute.xlu2 %1472 }
 0x130   : > { %v356_v2 = vpop.f32.mrf.mxu0  ;;  %v397_v3 = vpop.f32.mrf.mxu1 }
 0x131   : > { %v362_v8 = vadd.f32 %v356_v2, %v295_v32 }
 0x133   : > { %v427_v10 = vadd.f32 %v421_v38, %v362_v8  ;;  %1939 = vmatmul.msk.bf16.vlgmr.msra.gmra.mxu0 %vm194_vm1, %v2353_v13  ;;  %v1408_v13 = vpop.permute.xlu0 %1407  ;;  %v1611_v57 = vpop.permute.xlu1 %1610  ;;  %v1961_v8 = vld [vmem:[%s2533_s1 + $0x4c] sm:$0xf] }
 0x134   : > { %1238 = vmatpush.bf16.msra.mxu0 %v1223_v9  ;;  %v1412_v37 = vsel %vm1411_vm6, %v1406_v31, %v1408_v13  ;;  %v1413_v38 = vsel %vm1411_vm6, %v1408_v13, %v1410_v21 }
 0x135   : > { %v410_v12 = vpop.f32.mrf.mxu2  ;;  %v1418_v43 = vsel %vm198_vm0, %v1412_v37, 0 }
 0x136   : > { %v527_v5 = vpop.f32.mrf.mxu3 }
 0x138   : > { %v358_v15 = vpop.f32.mrf.mxu0  ;;  %v473_v16 = vpop.f32.mrf.mxu1 }
 0x139   : > { %v491_v18 = vadd.f32 %v473_v16, %v426_v61 }
 0x13a   : > { %1947 = vmatmul.msk.bf16.vlgmr.msrb.gmra.mxu2 %vm194_vm1, %v1945_v58 }
 0x13b   : > { %1946 = vmatmul.msk.bf16.vlgmr.msrb.gmra.mxu1 %vm194_vm1, %v1945_v58  ;;  %1954 = vmatmul.msk.bf16.vlgmr.msra.gmra.mxu3 %vm194_vm1, %v2406_v17  ;;  %v1477_v0 = vpop.permute.xlu0 %1476  ;;  %v2452_v9 = vpop.permute.xlu1 %1612 }
 0x13c   : > { %1368 = vmatpush.bf16.msrb.mxu2 %v1353_v20  ;;  %1329 = vmatpush.bf16.msrb.mxu1 %v1294_v19  ;;  %v1483_v60 = vsel %vm1480_vm7, %v1477_v0, %v1479_v33  ;;  %v1618_v11 = vsel %vm1616_vm9, %v1611_v57, %v2452_v9 }
 0x13d   : > { %v486_v22 = vpop.f32.mrf.mxu2  ;;  %1459 = vmatpush.bf16.msra.mxu3 %v1424_v23  ;;  %v1494_v2 = vsel %vm198_vm0, %v1483_v60, 0  ;;  %v1627_v15 = vsel %vm198_vm0, %v1618_v11, 0 }
 0x13e   : > { %v492_v24 = vadd.f32 %v486_v22, %v427_v10  ;;  %v603_v26 = vpop.f32.mrf.mxu3 }
 0x140   : > { %v460_v27 = vpop.f32.mrf.mxu0  ;;  %v475_v28 = vpop.f32.mrf.mxu1 }
 0x141   : > { %v490_v29 = vadd.f32 %v460_v27, %v425_v55  ;;  %v1543_v55 = vpop.permute.xlu2 %1542 }
 0x142   : > { %v1549_v56 = vsel %vm1548_vm8, %v1541_v47, %v1543_v55 }
 0x143   : > { %v555_v32 = vadd.f32 %v525_v63, %v490_v29  ;;  %1944 = vmatmul.msk.bf16.vlgmr.msrb.gmra.mxu0 %vm194_vm1, %v2375_v34  ;;  %v1421_v34 = vsel %vm198_vm0, %v1413_v38, 0  ;;  %v1475_v46 = vpop.permute.xlu0 %1474  ;;  %v1556_v61 = vsel %vm198_vm0, %v1549_v56, 0 }
 0x144   : > { %1316 = vmatpush.bf16.msrb.mxu0 %v1291_v30  ;;  %v1482_v59 = vsel %vm1480_vm7, %v1475_v46, %v1477_v0  ;;  %v1481_v5 = vsel %vm1480_vm7, %v1473_v45, %v1475_v46  ;;  %v2468_v0 = vld [vmem:[%s2533_s1 + $0x54] sm:$0xf] }
 0x145   : > { %v488_v35 = vpop.f32.mrf.mxu2  ;;  %v1491_v6 = vsel %vm198_vm0, %v1482_v59, 0  ;;  %v1488_v21 = vsel %vm198_vm0, %v1481_v5, 0 }
 0x146   : > { %v605_v36 = vpop.f32.mrf.mxu3 }
 0x148   : > { %v462_v40 = vpop.f32.mrf.mxu0  ;;  %v551_v41 = vpop.f32.mrf.mxu1 }
 0x149   : > { %v557_v42 = vadd.f32 %v551_v41, %v492_v24 }
 0x14a   : > { %1952 = vmatmul.msk.bf16.vlgmr.msra.gmra.mxu2 %vm194_vm1, %v1949_v39 }
 0x14b   : > { %1951 = vmatmul.msk.bf16.vlgmr.msra.gmra.mxu1 %vm194_vm1, %v1949_v39  ;;  %1959 = vmatmul.msk.bf16.vlgmr.msrb.gmra.mxu3 %vm194_vm1, %v2430_v44  ;;  %v1609_v62 = vpop.permute.xlu0 %1608 }
 0x14c   : > { %1433 = vmatpush.bf16.msra.mxu1 %v1418_v43  ;;  %1446 = vmatpush.bf16.msra.mxu2 %v1421_v34  ;;  %v1617_v24 = vsel %vm1616_vm9, %v1609_v62, %v1611_v57  ;;  %v1973_v57 = vld [vmem:[%s2533_s1 + $0x58] sm:$0xf] }
 0x14d   : > { %v590_v48 = vpop.f32.mrf.mxu2  ;;  %1571 = vmatpush.bf16.msrb.mxu3 %v1556_v61  ;;  %v1624_v30 = vsel %vm198_vm0, %v1617_v24, 0 }
 0x14e   : > { %v620_v49 = vadd.f32 %v590_v48, %v555_v32  ;;  %v681_v50 = vpop.f32.mrf.mxu3 }
 0x150   : > { %v538_v7 = vpop.f32.mrf.mxu0  ;;  %v553_v51 = vpop.f32.mrf.mxu1 }
 0x151   : > { %v556_v53 = vadd.f32 %v538_v7, %v491_v18  ;;  %v1545_v18 = vpop.permute.xlu2 %1544  ;;  %v1965_v51 = vld [vmem:[%s2533_s1 + $0x50] sm:$0xf] }
 0x152   : > { %v1550_v36 = vsel %vm1548_vm8, %v1543_v55, %v1545_v18 }
 0x153   : > { %v621_v54 = vadd.f32 %v603_v26, %v556_v53  ;;  %1950 = vmatmul.msk.bf16.vlgmr.msra.gmra.mxu0 %vm194_vm1, %v1949_v39  ;;  %v1547_v16 = vpop.permute.xlu0 %1546  ;;  %v1615_v39 = vpop.permute.xlu1 %1614  ;;  %v1559_v45 = vsel %vm198_vm0, %v1550_v36, 0 }
 0x154   : > { %1394 = vmatpush.bf16.msra.mxu0 %v1359_v52  ;;  %v1551_v26 = vsel %vm1548_vm8, %v1545_v18, %v1547_v16  ;;  %v1619_v61 = vsel %vm1616_vm9, %v2452_v9, %v1615_v39  ;;  %v1977_v18 = vld [vmem:[%s2533_s1 + $0x5c] sm:$0xf] }
 0x155   : > { %v592_v58 = vpop.f32.mrf.mxu2  ;;  %v1562_v32 = vsel %vm198_vm0, %v1551_v26, 0 }
 0x156   : > { %v683_v63 = vpop.f32.mrf.mxu3 }
 0x158   : > { %v540_v4 = vpop.f32.mrf.mxu0  ;;  %v655_v1 = vpop.f32.mrf.mxu1 }
 0x159   : > { %v685_v3 = vadd.f32 %v655_v1, %v620_v49  ;;  %v1630_v1 = vsel %vm198_vm0, %v1619_v61, 0 }
 0x15a   : > { %1958 = vmatmul.msk.bf16.vlgmr.msrb.gmra.mxu2 %vm194_vm1, %v2430_v44 }
 0x15b   : > { %1956 = vmatmul.msk.bf16.vlgmr.msrb.gmra.mxu1 %vm194_vm1, %v2406_v17  ;;  %1529 = vmatpush.bf16.msrb.mxu2 %v1494_v2  ;;  %v1681_v27 = vpop.permute.xlu0 %1680 }
 0x15c   : > { %1516 = vmatpush.bf16.msrb.mxu1 %v1491_v6  ;;  %1964 = vmatmul.msk.bf16.vlgmr.msra.gmra.mxu3 %vm194_vm1, %v1961_v8 }
 0x15d   : > { %v668_v10 = vpop.f32.mrf.mxu2  ;;  %1652 = vmatpush.bf16.msra.mxu3 %v1627_v15 }
 0x15e   : > { %v686_v12 = vadd.f32 %v668_v10, %v621_v54  ;;  %v785_v14 = vpop.f32.mrf.mxu3 }
 0x160   : > { %v616_v19 = vpop.f32.mrf.mxu0  ;;  %v657_v20 = vpop.f32.mrf.mxu1 }
 0x161   : > { %v622_v13 = vadd.f32 %v616_v19, %v557_v42 }
 0x163   : > { %v687_v22 = vadd.f32 %v681_v50, %v622_v13  ;;  %1955 = vmatmul.msk.bf16.vlgmr.msrb.gmra.mxu0 %vm194_vm1, %v2406_v17  ;;  %v1679_v17 = vpop.permute.xlu2 %1678  ;;  %v1683_v38 = vpop.permute.xlu0 %1682 }
 0x164   : > { %1503 = vmatpush.bf16.msrb.mxu0 %v1488_v21  ;;  %v1687_v40 = vsel %vm1684_vm10, %v1681_v27, %v1683_v38  ;;  %v1686_v49 = vsel %vm1684_vm10, %v1679_v17, %v1681_v27 }
 0x165   : > { %v670_v23 = vpop.f32.mrf.mxu2  ;;  %v1698_v43 = vsel %vm198_vm0, %v1687_v40, 0  ;;  %v1695_v54 = vsel %vm198_vm0, %v1686_v49, 0  ;;  %v2056_v49 = vmov 0  }
 0x166   : > { %v787_v25 = vpop.f32.mrf.mxu3  ;;  %2022 = vset.pattern.permute.xlu2 %v2056_v49  ;;  %2023 = vset.pattern.permute.xlu0 %v2056_v49 }
 0x168   : > { %v618_v28 = vpop.f32.mrf.mxu0  ;;  %v733_v29 = vpop.f32.mrf.mxu1 }
 0x169   : > { %v751_v31 = vadd.f32 %v733_v29, %v686_v12 }
 0x16a   : > { %1963 = vmatmul.msk.bf16.vlgmr.msra.gmra.mxu2 %vm194_vm1, %v1961_v8 }
 0x16b   : > { %1962 = vmatmul.msk.bf16.vlgmr.msra.gmra.mxu1 %vm194_vm1, %v1961_v8  ;;  %1639 = vmatpush.bf16.msra.mxu2 %v1624_v30  ;;  %v1677_v47 = vpop.permute.xlu2 %1676  ;;  %v1745_v19 = vpop.permute.xlu0 %1744 }
 0x16c   : > { %1970 = vmatmul.msk.bf16.vlgmr.msrb.gmra.mxu3 %vm194_vm1, %v2468_v0  ;;  %1597 = vmatpush.bf16.msra.mxu1 %v1562_v32  ;;  %v1685_v7 = vsel %vm1684_vm10, %v1677_v47, %v1679_v17 }
 0x16d   : > { %v746_v33 = vpop.f32.mrf.mxu2  ;;  %1733 = vmatpush.bf16.msrb.mxu3 %v1698_v43  ;;  %v1692_v56 = vsel %vm198_vm0, %v1685_v7, 0 }
 0x16e   : > { %v752_v35 = vadd.f32 %v746_v33, %v687_v22  ;;  %v863_v37 = vpop.f32.mrf.mxu3 }
 0x170   : > { %v720_v41 = vpop.f32.mrf.mxu0  ;;  %v735_v42 = vpop.f32.mrf.mxu1 }
 0x171   : > { %v750_v34 = vadd.f32 %v720_v41, %v685_v3  ;;  %v1981_v41 = vld [vmem:[%s2533_s1 + $0x60] sm:$0xf] }
 0x173   : > { %v815_v46 = vadd.f32 %v785_v14, %v750_v34  ;;  %1960 = vmatmul.msk.bf16.vlgmr.msra.gmra.mxu0 %vm194_vm1, %v2430_v44  ;;  %v1749_v44 = vpop.permute.xlu1 %1748  ;;  %v1751_v2 = vpop.permute.xlu2 %1750 }
 0x174   : > { %1584 = vmatpush.bf16.msra.mxu0 %v1559_v45  ;;  %v1755_v10 = vsel %vm1752_vm11, %v1749_v44, %v1751_v2 }
 0x175   : > { %v748_v48 = vpop.f32.mrf.mxu2  ;;  %v1766_v14 = vsel %vm198_vm0, %v1755_v10, 0 }
 0x176   : > { %v865_v50 = vpop.f32.mrf.mxu3  ;;  %v1810_v48 = vld [vmem:[%s2534_s2] sm:$0xff] }
 0x177   : > { %1813 = vperm.xlu2 %2022, %v1810_v48  }
 0x178   : > { %v722_v52 = vpop.f32.mrf.mxu0  ;;  %v811_v53 = vpop.f32.mrf.mxu1 }
 0x179   : > { %v817_v55 = vadd.f32 %v811_v53, %v752_v35 }
 0x17a   : > { %1968 = vmatmul.msk.bf16.vlgmr.msrb.gmra.mxu2 %vm194_vm1, %v1965_v51 }
 0x17b   : > { %1967 = vmatmul.msk.bf16.vlgmr.msrb.gmra.mxu1 %vm194_vm1, %v1965_v51  ;;  %1720 = vmatpush.bf16.msrb.mxu2 %v1695_v54  ;;  %v1747_v6 = vpop.permute.xlu1 %1746 }
 0x17c   : > { %1707 = vmatpush.bf16.msrb.mxu1 %v1692_v56  ;;  %1975 = vmatmul.msk.bf16.vlgmr.msra.gmra.mxu3 %vm194_vm1, %v1973_v57  ;;  %v1754_v12 = vsel %vm1752_vm11, %v1747_v6, %v1749_v44  ;;  %v1753_v22 = vsel %vm1752_vm11, %v1745_v19, %v1747_v6 }
 0x17d   : > { %v850_v58 = vpop.f32.mrf.mxu2  ;;  %v1763_v16 = vsel %vm198_vm0, %v1754_v12, 0  ;;  %v1760_v26 = vsel %vm198_vm0, %v1753_v22, 0 }
 0x17e   : > { %v880_v60 = vadd.f32 %v850_v58, %v815_v46  ;;  %v941_v62 = vpop.f32.mrf.mxu3 }
 0x180   : > { %v798_v63 = vpop.f32.mrf.mxu0  ;;  %v813_v59 = vpop.f32.mrf.mxu1 }
 0x181   : > { %v816_v4 = vadd.f32 %v798_v63, %v751_v31 }
 0x183   : > { %v881_v3 = vadd.f32 %v863_v37, %v816_v4  ;;  %1966 = vmatmul.msk.bf16.vlgmr.msrb.gmra.mxu0 %vm194_vm1, %v1965_v51 }
 0x184   : > { %1665 = vmatpush.bf16.msrb.mxu0 %v1630_v1 }
 0x185   : > { %v852_v8 = vpop.f32.mrf.mxu2 }
 0x186   : > { %v943_v11 = vpop.f32.mrf.mxu3 }
 0x188   : > { %v800_v9 = vpop.f32.mrf.mxu0  ;;  %v915_v5 = vpop.f32.mrf.mxu1 }
 0x189   : > { %v945_v15 = vadd.f32 %v915_v5, %v880_v60 }
 0x18a   : > { %1974 = vmatmul.msk.bf16.vlgmr.msra.gmra.mxu2 %vm194_vm1, %v1973_v57 }
 0x18b   : > { %1972 = vmatmul.msk.bf16.vlgmr.msra.gmra.mxu1 %vm194_vm1, %v2468_v0  ;;  %1801 = vmatpush.bf16.msra.mxu2 %v1766_v14 }
 0x18c   : > { %1788 = vmatpush.bf16.msra.mxu1 %v1763_v16  ;;  %1980 = vmatmul.msk.bf16.vlgmr.msrb.gmra.mxu3 %vm194_vm1, %v1977_v18 }
 0x18d   : > { %v928_v20 = vpop.f32.mrf.mxu2 }
 0x18e   : > { %v946_v13 = vadd.f32 %v928_v20, %v881_v3  ;;  %v1045_v21 = vpop.f32.mrf.mxu3 }
 0x190   : > { %v876_v23 = vpop.f32.mrf.mxu0  ;;  %v917_v24 = vpop.f32.mrf.mxu1 }
 0x191   : > { %v882_v25 = vadd.f32 %v876_v23, %v817_v55 }
 0x193   : > { %v947_v27 = vadd.f32 %v941_v62, %v882_v25  ;;  %1971 = vmatmul.msk.bf16.vlgmr.msra.gmra.mxu0 %vm194_vm1, %v2468_v0 }
 0x194   : > { %1775 = vmatpush.bf16.msra.mxu0 %v1760_v26 }
 0x195   : > { %v930_v28 = vpop.f32.mrf.mxu2 }
 0x196   : > { %v1047_v29 = vpop.f32.mrf.mxu3 }
 0x198   : > { %v878_v30 = vpop.f32.mrf.mxu0  ;;  %v993_v31 = vpop.f32.mrf.mxu1 }
 0x199   : > { %v1011_v32 = vadd.f32 %v993_v31, %v946_v13 }
 0x19a   : > { %1979 = vmatmul.msk.bf16.vlgmr.msrb.gmra.mxu2 %vm194_vm1, %v1977_v18 }
 0x19b   : > { %1978 = vmatmul.msk.bf16.vlgmr.msrb.gmra.mxu1 %vm194_vm1, %v1977_v18 }
 0x19d   : > { %v1006_v17 = vpop.f32.mrf.mxu2 }
 0x19e   : > { %v1012_v33 = vadd.f32 %v1006_v17, %v947_v27  ;;  %v1123_v35 = vpop.f32.mrf.mxu3 }
 0x1a0   : > { %v980_v36 = vpop.f32.mrf.mxu0  ;;  %v995_v37 = vpop.f32.mrf.mxu1 }
 0x1a1   : > { %v1010_v38 = vadd.f32 %v980_v36, %v945_v15 }
 0x1a3   : > { %v1075_v39 = vadd.f32 %v1045_v21, %v1010_v38  ;;  %1976 = vmatmul.msk.bf16.vlgmr.msrb.gmra.mxu0 %vm194_vm1, %v1973_v57 }
 0x1a5   : > { %v1008_v0 = vpop.f32.mrf.mxu2 }
 0x1a6   : > { %v1125_v40 = vpop.f32.mrf.mxu3 }
 0x1a8   : > { %v982_v42 = vpop.f32.mrf.mxu0  ;;  %v1071_v43 = vpop.f32.mrf.mxu1 }
 0x1a9   : > { %v1077_v34 = vadd.f32 %v1071_v43, %v1012_v33 }
 0x1aa   : > { %1984 = vmatmul.msk.bf16.vlgmr.msra.gmra.mxu2 %vm194_vm1, %v1981_v41 }
 0x1ab   : > { %1983 = vmatmul.msk.bf16.vlgmr.msra.gmra.mxu1 %vm194_vm1, %v1981_v41 }
 0x1ad   : > { %v1110_v45 = vpop.f32.mrf.mxu2 }
 0x1ae   : > { %v1140_v46 = vadd.f32 %v1110_v45, %v1075_v39  ;;  %v1201_v47 = vpop.f32.mrf.mxu3 }
 0x1b0   : > { %v1058_v50 = vpop.f32.mrf.mxu0  ;;  %v1073_v7 = vpop.f32.mrf.mxu1 }
 0x1b1   : > { %v1076_v51 = vadd.f32 %v1058_v50, %v1011_v32 }
 0x1b3   : > { %v1141_v52 = vadd.f32 %v1123_v35, %v1076_v51  ;;  %1982 = vmatmul.msk.bf16.vlgmr.msra.gmra.mxu0 %vm194_vm1, %v1981_v41 }
 0x1b5   : > { %v1112_v53 = vpop.f32.mrf.mxu2 }
 0x1b6   : > { %v1203_v54 = vpop.f32.mrf.mxu3 }
 0x1b8   : > { %v1060_v55 = vpop.f32.mrf.mxu0  ;;  %v1175_v56 = vpop.f32.mrf.mxu1 }
 0x1b9   : > { %v1205_v44 = vadd.f32 %v1175_v56, %v1140_v46 }
 0x1bd   : > { %v1188_v57 = vpop.f32.mrf.mxu2 }
 0x1be   : > { %v1206_v58 = vadd.f32 %v1188_v57, %v1141_v52  ;;  %v1305_v60 = vpop.f32.mrf.mxu3 }
 0x1c0   : > { %v1136_v61 = vpop.f32.mrf.mxu0  ;;  %v1177_v62 = vpop.f32.mrf.mxu1 }
 0x1c1   : > { %v1142_v63 = vadd.f32 %v1136_v61, %v1077_v34 }
 0x1c3   : > { %v1207_v59 = vadd.f32 %v1201_v47, %v1142_v63 }
 0x1c5   : > { %v1190_v4 = vpop.f32.mrf.mxu2 }
 0x1c6   : > { %v1307_v1 = vpop.f32.mrf.mxu3 }
 0x1c8   : > { %v1138_v2 = vpop.f32.mrf.mxu0  ;;  %v1253_v3 = vpop.f32.mrf.mxu1 }
 0x1c9   : > { %v1271_v6 = vadd.f32 %v1253_v3, %v1206_v58 }
 0x1cd   : > { %v1266_v8 = vpop.f32.mrf.mxu2 }
 0x1ce   : > { %v1272_v10 = vadd.f32 %v1266_v8, %v1207_v59  ;;  %v1383_v11 = vpop.f32.mrf.mxu3 }
 0x1d0   : > { %v1240_v12 = vpop.f32.mrf.mxu0  ;;  %v1255_v9 = vpop.f32.mrf.mxu1 }
 0x1d1   : > { %v1270_v5 = vadd.f32 %v1240_v12, %v1205_v44  ;;  %v1814_v3 = vpop.permute.xlu2 %1813 }
 0x1d3   : > { %v1335_v14 = vadd.f32 %v1305_v60, %v1270_v5 }
 0x1d5   : > { %v1268_v15 = vpop.f32.mrf.mxu2 }
 0x1d6   : > { %v1385_v16 = vpop.f32.mrf.mxu3 }
 0x1d8   : > { %v1242_v18 = vpop.f32.mrf.mxu0  ;;  %v1331_v19 = vpop.f32.mrf.mxu1 }
 0x1d9   : > { %v1337_v20 = vadd.f32 %v1331_v19, %v1272_v10 }
 0x1dd   : > { %v1370_v13 = vpop.f32.mrf.mxu2 }
 0x1de   : > { %v1400_v21 = vadd.f32 %v1370_v13, %v1335_v14 }
 0x1df   : > { %v1461_v22 = vpop.f32.mrf.mxu3 }
 0x1e0   : > { %v1318_v23 = vpop.f32.mrf.mxu0  ;;  %v1333_v24 = vpop.f32.mrf.mxu1 }
 0x1e1   : > { %v1336_v25 = vadd.f32 %v1318_v23, %v1271_v6 }
 0x1e3   : > { %v1401_v26 = vadd.f32 %v1383_v11, %v1336_v25 }
 0x1e5   : > { %v1372_v27 = vpop.f32.mrf.mxu2 }
 0x1e7   : > { %v1463_v28 = vpop.f32.mrf.mxu3 }
 0x1e8   : > { %v1320_v29 = vpop.f32.mrf.mxu0  ;;  %v1435_v30 = vpop.f32.mrf.mxu1 }
 0x1e9   : > { %v1465_v62 = vadd.f32 %v1435_v30, %v1400_v21 }
 0x1ed   : > { %v1448_v31 = vpop.f32.mrf.mxu2 }
 0x1ee   : > { %v1466_v55 = vadd.f32 %v1448_v31, %v1401_v26 }
 0x1ef   : > { %v1573_v32 = vpop.f32.mrf.mxu3 }
 0x1f0   : > { %v1396_v17 = vpop.f32.mrf.mxu0  ;;  %v1437_v33 = vpop.f32.mrf.mxu1 }
 0x1f1   : > { %v1402_v35 = vadd.f32 %v1396_v17, %v1337_v20 }
 0x1f3   : > { %v1467_v36 = vadd.f32 %v1461_v22, %v1402_v35 }
 0x1f5   : > { %v1450_v37 = vpop.f32.mrf.mxu2 }
 0x1f7   : > { %v1575_v38 = vpop.f32.mrf.mxu3 }
 0x1f8   : > { %v1398_v39 = vpop.f32.mrf.mxu0  ;;  %v1518_v0 = vpop.f32.mrf.mxu1 }
 0x1f9   : > { %v1536_v44 = vadd.f32 %v1518_v0, %v1466_v55 }
 0x1fd   : > { %v1531_v40 = vpop.f32.mrf.mxu2 }
 0x1fe   : > { %v1537_v61 = vadd.f32 %v1531_v40, %v1467_v36 }
 0x1ff   : > { %v1654_v41 = vpop.f32.mrf.mxu3 }
 0x200   : > { %v1505_v42 = vpop.f32.mrf.mxu0  ;;  %v1520_v43 = vpop.f32.mrf.mxu1 }
 0x201   : > { %v1535_v1 = vadd.f32 %v1505_v42, %v1465_v62 }
 0x203   : > { %v1603_v12 = vadd.f32 %v1573_v32, %v1535_v1 }
 0x205   : > { %v1533_v34 = vpop.f32.mrf.mxu2 }
 0x207   : > { %v1656_v45 = vpop.f32.mrf.mxu3 }
 0x208   : > { %v1507_v46 = vpop.f32.mrf.mxu0  ;;  %v1599_v47 = vpop.f32.mrf.mxu1 }
 0x209   : > { %v1605_v4 = vadd.f32 %v1599_v47, %v1537_v61 }
 0x20d   : > { %v1641_v48 = vpop.f32.mrf.mxu2 }
 0x20e   : > { %v1671_v14 = vadd.f32 %v1641_v48, %v1603_v12 }
 0x20f   : > { %v1735_v49 = vpop.f32.mrf.mxu3 }
 0x210   : > { %v1586_v50 = vpop.f32.mrf.mxu0  ;;  %v1601_v7 = vpop.f32.mrf.mxu1 }
 0x211   : > { %v1604_v60 = vadd.f32 %v1586_v50, %v1536_v44 }
 0x213   : > { %v1672_v63 = vadd.f32 %v1654_v41, %v1604_v60 }
 0x215   : > { %v1643_v51 = vpop.f32.mrf.mxu2 }
 0x217   : > { %v1737_v52 = vpop.f32.mrf.mxu3 }
 0x218   : > { %v1588_v53 = vpop.f32.mrf.mxu0  ;;  %v1709_v54 = vpop.f32.mrf.mxu1 }
 0x219   : > { %v1739_v18 = vadd.f32 %v1709_v54, %v1671_v14 }
 0x21d   : > { %v1722_v56 = vpop.f32.mrf.mxu2 }
 0x21e   : > { %v1740_v2 = vadd.f32 %v1722_v56, %v1672_v63 }
 0x220   : > { %v1667_v57 = vpop.f32.mrf.mxu0  ;;  %v1711_v58 = vpop.f32.mrf.mxu1 }
 0x221   : > { %v1673_v6 = vadd.f32 %v1667_v57, %v1605_v4 }
 0x223   : > { %v1741_v5 = vadd.f32 %v1735_v49, %v1673_v6 }
 0x225   : > { %v1724_v59 = vpop.f32.mrf.mxu2 }
 0x228   : > { %v1669_v8 = vpop.f32.mrf.mxu0  ;;  %v1790_v10 = vpop.f32.mrf.mxu1 }
 0x229   : > { %v1808_v11 = vadd.f32 %v1790_v10, %v1740_v2 }
 0x22b   : > { %v1817_v9 = vadd.f32 %v1814_v3, %v1808_v11 }
 0x22d   : > { %1820 = vst [vmem:[%s170_s22 + $0x8] sm:$0xff] %v1817_v9  ;;  %v1803_v15 = vpop.f32.mrf.mxu2 }
 0x22e   : > { %v1809_v16 = vadd.f32 %v1803_v15, %v1741_v5 }
 0x230   : > { %v1818_v19 = vadd.f32 %v1814_v3, %v1809_v16  ;;  %v1777_v20 = vpop.f32.mrf.mxu0  ;;  %v1792_v13 = vpop.f32.mrf.mxu1 }
 0x231   : > { %v1807_v21 = vadd.f32 %v1777_v20, %v1739_v18 }
 0x232   : > { %1822 = vst.msk [vmem:[%s170_s22 + $0x10] sm:$0xff] %vm1411_vm6, %v1818_v19 }
 0x233   : > { %v1816_v22 = vadd.f32 %v1814_v3, %v1807_v21 }
 0x235   : > { %1819 = vst [vmem:[%s170_s22] sm:$0xff] %v1816_v22  ;;  %v1805_v23 = vpop.f32.mrf.mxu2 }
 0x238   : > { %v1779_v24 = vpop.f32.mrf.mxu0 }
 0x239 PF: > { %s13_s12 = sadd.s32 1, %s2030_s12  }
 0x23a   : > { %p10_p4 = scmp.ge.s32.totalorder %s13_s12, 4  }
 0x23c   :  { %12 = sbr.rel (!%p10_p4) target bundleno = 1 (0x1), region = 86 }

</bundles_post_ra>
